<compile_context>
chip_gen: v7x
topology: tpu7x:2x2x1
jax: 0.10.0
libtpu: 0.0.40
codegen_flags: <defaults>
</compile_context>

<pallas_src>
import jax
import jax.numpy as jnp
from jax.experimental import pallas as pl
from jax.experimental.pallas import tpu as pltpu

LANE = 128


def _round_up(x, m):
    return ((x + m - 1) // m) * m


def _recommender_kernel(
    uid_ref,   # (TB, Lu)              int32
    rid_ref,   # (TB, Lr)              int32
    a_ref,     # (2*V_pad, H1_pad)     bf16  [ (1/Lu)*Uemb@W1[:D] ; (1/Lr)*Remb@W1[D:] ]
    b1_ref,    # (1, H1_pad)           f32
    w2_ref,    # (H1_pad, H2_pad)      bf16
    b2_ref,    # (1, H2_pad)           f32
    w3_ref,    # (1, H2_pad)           f32   == w3.T, zero padded
    b3_ref,    # (1, LANE)             f32   == b3 broadcast across lanes
    out_ref,   # (1, TB//LANE, LANE)   f32   packed logits, lane-dense
):
    tb = uid_ref.shape[0]
    v_pad = a_ref.shape[0] // 2
    tbp = out_ref.shape[1]

    # Hoisted iota reused by both count builds (JAX does not CSE broadcast_in_dim).
    iota_v = jax.lax.broadcasted_iota(jnp.int32, (tb, v_pad), 1)

    def token_counts(ids_ref):
        """(TB, L) int ids -> (TB, V_pad) f32 occurrence counts (exact small ints)."""
        ids = ids_ref[...]
        acc = jnp.zeros((tb, v_pad), jnp.float32)
        for l in range(ids.shape[1]):          # L = 6..8 -> fully unrolled
            acc = acc + (ids[:, l:l + 1] == iota_v).astype(jnp.float32)
        return acc

    # Lane-aligned concat of the two count blocks -> single (TB, 2*V_pad) bf16
    # operand.  The 1/L scaling and emb @ W1 are pre-composed into a_ref, so
    # embedding-mean + concat + layer 1 become ONE K=2*V_pad MXU matmul.
    counts = jnp.concatenate(
        [token_counts(uid_ref), token_counts(rid_ref)], axis=1
    ).astype(jnp.bfloat16)

    # Layer 1 (fused), f32 accumulation on the MXU.
    h1 = jnp.dot(counts, a_ref[...], preferred_element_type=jnp.float32) + b1_ref[...]
    h1 = jnp.maximum(h1, 0.0).astype(jnp.bfloat16)

    # Layer 2
    h2 = jnp.dot(h1, w2_ref[...], preferred_element_type=jnp.float32) + b2_ref[...]
    h2 = jnp.maximum(h2, 0.0)

    # Layer 3 (Linear(64, 1)): VPU multiply, then per 128-row chunk a 128x128
    # XLU transpose + sublane reduction packs 128 logits into one lane-dense
    # row of the output block (no (TB,128) slab, no masked lane stores).
    m = h2 * w3_ref[...]                       # (TB, H2_pad) f32
    b3 = b3_ref[0, :]                          # (LANE,) f32
    for p in range(tbp):                       # tbp <= 8 -> fully unrolled
        chunk_t = m[p * LANE:(p + 1) * LANE, :].T          # (H2_pad, LANE)
        out_ref[0, p, :] = jnp.sum(chunk_t, axis=0) + b3   # lane-dense row


def prepare_params(params, user_len, recipe_len):
    """One-time parameter prep (hoisted out of the per-call forward).

    Pre-composes the embedding tables with the first Linear layer:
      A = [ (1/Lu) * user_emb @ W1[:D] ; (1/Lr) * recipe_emb @ W1[D:] ]
    pads everything to lane multiples and casts MXU operands to bf16.
    Note: A depends on the (fixed) sequence lengths because 1/L is folded in.
    """
    V, D = params["user_emb"].shape
    H1 = params["w1"].shape[1]
    H2 = params["w2"].shape[1]
    v_pad = _round_up(V, LANE)
    h1_pad = _round_up(H1, LANE)
    h2_pad = _round_up(H2, LANE)

    def pad2(a, rows, cols, dtype):
        a = a.astype(jnp.float32)
        a = jnp.pad(a, ((0, rows - a.shape[0]), (0, cols - a.shape[1])))
        return a.astype(dtype)

    w1 = params["w1"].astype(jnp.float32)
    a_u = (params["user_emb"].astype(jnp.float32) @ w1[:D]) / float(user_len)
    a_r = (params["recipe_emb"].astype(jnp.float32) @ w1[D:]) / float(recipe_len)

    return {
        "v_pad": v_pad, "h1_pad": h1_pad, "h2_pad": h2_pad,
        "user_len": user_len, "recipe_len": recipe_len,
        "a": jnp.concatenate([pad2(a_u, v_pad, h1_pad, jnp.bfloat16),
                              pad2(a_r, v_pad, h1_pad, jnp.bfloat16)], axis=0),
        "b1": pad2(params["b1"], 1, h1_pad, jnp.float32),
        "w2": pad2(params["w2"], h1_pad, h2_pad, jnp.bfloat16),
        "b2": pad2(params["b2"], 1, h2_pad, jnp.float32),
        "w3": pad2(params["w3"].T, 1, h2_pad, jnp.float32),
        "b3": jnp.broadcast_to(params["b3"].reshape(1, 1).astype(jnp.float32), (1, LANE)),
    }


def recipe_recommender_forward(user_ing, recipe_ing, prep, *, tb=512):
    """user_ing: (B, Lu) int, recipe_ing: (B, Lr) int -> (B,) f32 logits."""
    B, Lu = user_ing.shape
    _, Lr = recipe_ing.shape
    assert Lu == prep["user_len"] and Lr == prep["recipe_len"]
    assert tb % LANE == 0
    tb = min(tb, _round_up(B, LANE))           # don't over-pad tiny batches
    b_pad = _round_up(B, tb)
    n_tiles = b_pad // tb
    tbp = tb // LANE

    uid = jnp.pad(user_ing.astype(jnp.int32), ((0, b_pad - B), (0, 0)))
    rid = jnp.pad(recipe_ing.astype(jnp.int32), ((0, b_pad - B), (0, 0)))

    v_pad, h1_pad, h2_pad = prep["v_pad"], prep["h1_pad"], prep["h2_pad"]

    resident = lambda i: (0, 0)   # weights: same block every step -> DMA'd once
    batched = lambda i: (i, 0)    # ids: tiled along the batch axis

    # TODO(synk): for vocabs whose pre-composed table no longer fits VMEM
    # (earlier on v7x's 64 MiB), keep the table in HBM via
    # BlockSpec(memory_space=pl.ANY) and gather rows with scalar-prefetched ids
    # + pltpu.make_async_copy instead of the counts @ table matmul (the
    # O(L*V_pad) count build also becomes VALU-bound at that point).
    # TODO(synk): single-buffer the resident operands (pipeline_mode) once the
    # table is large enough for double-buffering to matter on v7x.
    # TODO(synk): on v7x, verify in xprof that the batch grid shards across
    # both TensorCores; if not, switch to pltpu.CORE_PARALLEL on the batch axis.
    in_specs = [
        pl.BlockSpec((tb, Lu), batched),
        pl.BlockSpec((tb, Lr), batched),
        pl.BlockSpec((2 * v_pad, h1_pad), resident),
        pl.BlockSpec((1, h1_pad), resident),
        pl.BlockSpec((h1_pad, h2_pad), resident),
        pl.BlockSpec((1, h2_pad), resident),
        pl.BlockSpec((1, h2_pad), resident),
        pl.BlockSpec((1, LANE), resident),
    ]

    out = pl.pallas_call(
        _recommender_kernel,
        out_shape=jax.ShapeDtypeStruct((n_tiles, tbp, LANE), jnp.float32),
        grid=(n_tiles,),
        in_specs=in_specs,
        out_specs=pl.BlockSpec((1, tbp, LANE), lambda i: (i, 0, 0)),
        compiler_params=pltpu.CompilerParams(
            dimension_semantics=("parallel",),      # shard batch tiles across TCs
            vmem_limit_bytes=64 * 1024 * 1024,      # v5e defaults to 16 MiB scoped
        ),
    )(uid, rid, prep["a"], prep["b1"], prep["w2"], prep["b2"], prep["w3"], prep["b3"])

    # Packed logits: (n_tiles, tb//128, 128) row-major == original batch order.
    return out.reshape(-1)[:B]


def init_params(key, vocab_size, embed_dim=64):
    ks = jax.random.split(key, 8)
    scale = 0.05
    return {
        "user_emb": jax.random.normal(ks[0], (vocab_size, embed_dim), jnp.float32),
        "recipe_emb": jax.random.normal(ks[1], (vocab_size, embed_dim), jnp.float32),
        # Linear(embed_dim*2, 128) stored as (in, out): forward does x @ W + b
        "w1": scale * jax.random.normal(ks[2], (embed_dim * 2, 128), jnp.float32),
        "b1": scale * jax.random.normal(ks[3], (1, 128), jnp.float32),
        # Linear(128, 64)
        "w2": scale * jax.random.normal(ks[4], (128, 64), jnp.float32),
        "b2": scale * jax.random.normal(ks[5], (1, 64), jnp.float32),
        # Linear(64, 1)
        "w3": scale * jax.random.normal(ks[6], (64, 1), jnp.float32),
        "b3": scale * jax.random.normal(ks[7], (1, 1), jnp.float32),
    }


def reference_forward(user_ing, recipe_ing, params):
    """Pure-JAX f32 reference matching the PyTorch module semantics."""
    u = jnp.take(params["user_emb"], user_ing, axis=0).mean(axis=1)
    r = jnp.take(params["recipe_emb"], recipe_ing, axis=0).mean(axis=1)
    x = jnp.concatenate([u, r], axis=1)
    h1 = jnp.maximum(x @ params["w1"] + params["b1"], 0.0)
    h2 = jnp.maximum(h1 @ params["w2"] + params["b2"], 0.0)
    return (h2 @ params["w3"] + params["b3"])[:, 0]


if __name__ == "__main__":
    key = jax.random.PRNGKey(0)
    k_param, k_u, k_r = jax.random.split(key, 3)

    VOCAB = 32
    EMBED = 64
    B, LU, LR = 2, 6, 8

    params = init_params(k_param, VOCAB, EMBED)
    user_ing = jax.random.randint(k_u, (B, LU), 0, VOCAB, dtype=jnp.int32)
    recipe_ing = jax.random.randint(k_r, (B, LR), 0, VOCAB, dtype=jnp.int32)

    prep = prepare_params(params, LU, LR)   # one-time param prep (hoisted)
    out = recipe_recommender_forward(user_ing, recipe_ing, prep)
    out = jax.block_until_ready(out)

    ref = reference_forward(user_ing, recipe_ing, params)
    assert out.shape == (B,), out.shape
    # bf16 MXU operands (per perf review) -> slightly looser tolerance vs the
    # f32 reference; error is ~1e-3 absolute at these magnitudes.
    assert jnp.allclose(out, ref, atol=1e-2, rtol=1e-2), (out, ref)

    print("KERNEL_OK")
</pallas_src>

<mosaic_0001>
module attributes {stable_mosaic.version = 11 : i64} {
  func.func @_recommender_kernel(%arg0: i32, %arg1: memref<128x6xi32, #tpu.memory_space<vmem>>, %arg2: memref<128x8xi32, #tpu.memory_space<vmem>>, %arg3: memref<256x128xbf16, #tpu.memory_space<vmem>>, %arg4: memref<1x128xf32, #tpu.memory_space<vmem>>, %arg5: memref<128x128xbf16, #tpu.memory_space<vmem>>, %arg6: memref<1x128xf32, #tpu.memory_space<vmem>>, %arg7: memref<1x128xf32, #tpu.memory_space<vmem>>, %arg8: memref<1x128xf32, #tpu.memory_space<vmem>>, %arg9: memref<1x1x128xf32, #tpu.memory_space<vmem>>) attributes {dimension_semantics = [#tpu.dimension_semantics<parallel>], iteration_bounds = array<i64: 1>, scalar_prefetch = 0 : i64, scratch_operands = 0 : i64, tpu.core_type = #tpu.core_type<tc>, window_params = [{transform_indices = @transform_0, window_bounds = array<i64: 128, 6>}, {transform_indices = @transform_1, window_bounds = array<i64: 128, 8>}, {pipeline_mode = #tpu.pipeline_mode<synchronous>, transform_indices = @transform_2, window_bounds = array<i64: 256, 128>}, {pipeline_mode = #tpu.pipeline_mode<synchronous>, transform_indices = @transform_3, window_bounds = array<i64: 1, 128>}, {pipeline_mode = #tpu.pipeline_mode<synchronous>, transform_indices = @transform_4, window_bounds = array<i64: 128, 128>}, {pipeline_mode = #tpu.pipeline_mode<synchronous>, transform_indices = @transform_5, window_bounds = array<i64: 1, 128>}, {pipeline_mode = #tpu.pipeline_mode<synchronous>, transform_indices = @transform_6, window_bounds = array<i64: 1, 128>}, {pipeline_mode = #tpu.pipeline_mode<synchronous>, transform_indices = @transform_7, window_bounds = array<i64: 1, 128>}, {transform_indices = @transform_8, window_bounds = array<i64: 1, 1, 128>}]} {
    %0 = tpu.iota {dimensions = array<i32: 1>} : vector<128x128xi32>
    %c0 = arith.constant 0 : index
    %c0_0 = arith.constant 0 : index
    %1 = vector.load %arg1[%c0, %c0_0] : memref<128x6xi32, #tpu.memory_space<vmem>>, vector<128x6xi32>
    %cst = arith.constant 0.000000e+00 : f32
    %2 = vector.broadcast %cst : f32 to vector<128x128xf32>
    %3 = vector.extract_strided_slice %1 {offsets = [0, 0], sizes = [128, 1], strides = [1, 1]} : vector<128x6xi32> to vector<128x1xi32>
    %4 = vector.broadcast %3 : vector<128x1xi32> to vector<128x128xi32>
    %5 = arith.cmpi eq, %4, %0 : vector<128x128xi32>
    %6 = arith.extui %5 : vector<128x128xi1> to vector<128x128xi32>
    %7 = arith.sitofp %6 : vector<128x128xi32> to vector<128x128xf32>
    %8 = arith.addf %2, %7 : vector<128x128xf32>
    %9 = vector.extract_strided_slice %1 {offsets = [0, 1], sizes = [128, 1], strides = [1, 1]} : vector<128x6xi32> to vector<128x1xi32>
    %10 = vector.broadcast %9 : vector<128x1xi32> to vector<128x128xi32>
    %11 = arith.cmpi eq, %10, %0 : vector<128x128xi32>
    %12 = arith.extui %11 : vector<128x128xi1> to vector<128x128xi32>
    %13 = arith.sitofp %12 : vector<128x128xi32> to vector<128x128xf32>
    %14 = arith.addf %8, %13 : vector<128x128xf32>
    %15 = vector.extract_strided_slice %1 {offsets = [0, 2], sizes = [128, 1], strides = [1, 1]} : vector<128x6xi32> to vector<128x1xi32>
    %16 = vector.broadcast %15 : vector<128x1xi32> to vector<128x128xi32>
    %17 = arith.cmpi eq, %16, %0 : vector<128x128xi32>
    %18 = arith.extui %17 : vector<128x128xi1> to vector<128x128xi32>
    %19 = arith.sitofp %18 : vector<128x128xi32> to vector<128x128xf32>
    %20 = arith.addf %14, %19 : vector<128x128xf32>
    %21 = vector.extract_strided_slice %1 {offsets = [0, 3], sizes = [128, 1], strides = [1, 1]} : vector<128x6xi32> to vector<128x1xi32>
    %22 = vector.broadcast %21 : vector<128x1xi32> to vector<128x128xi32>
    %23 = arith.cmpi eq, %22, %0 : vector<128x128xi32>
    %24 = arith.extui %23 : vector<128x128xi1> to vector<128x128xi32>
    %25 = arith.sitofp %24 : vector<128x128xi32> to vector<128x128xf32>
    %26 = arith.addf %20, %25 : vector<128x128xf32>
    %27 = vector.extract_strided_slice %1 {offsets = [0, 4], sizes = [128, 1], strides = [1, 1]} : vector<128x6xi32> to vector<128x1xi32>
    %28 = vector.broadcast %27 : vector<128x1xi32> to vector<128x128xi32>
    %29 = arith.cmpi eq, %28, %0 : vector<128x128xi32>
    %30 = arith.extui %29 : vector<128x128xi1> to vector<128x128xi32>
    %31 = arith.sitofp %30 : vector<128x128xi32> to vector<128x128xf32>
    %32 = arith.addf %26, %31 : vector<128x128xf32>
    %33 = vector.extract_strided_slice %1 {offsets = [0, 5], sizes = [128, 1], strides = [1, 1]} : vector<128x6xi32> to vector<128x1xi32>
    %34 = vector.broadcast %33 : vector<128x1xi32> to vector<128x128xi32>
    %35 = arith.cmpi eq, %34, %0 : vector<128x128xi32>
    %36 = arith.extui %35 : vector<128x128xi1> to vector<128x128xi32>
    %37 = arith.sitofp %36 : vector<128x128xi32> to vector<128x128xf32>
    %38 = arith.addf %32, %37 : vector<128x128xf32>
    %c0_1 = arith.constant 0 : index
    %c0_2 = arith.constant 0 : index
    %39 = vector.load %arg2[%c0_1, %c0_2] : memref<128x8xi32, #tpu.memory_space<vmem>>, vector<128x8xi32>
    %cst_3 = arith.constant 0.000000e+00 : f32
    %40 = vector.broadcast %cst_3 : f32 to vector<128x128xf32>
    %41 = vector.extract_strided_slice %39 {offsets = [0, 0], sizes = [128, 1], strides = [1, 1]} : vector<128x8xi32> to vector<128x1xi32>
    %42 = vector.broadcast %41 : vector<128x1xi32> to vector<128x128xi32>
    %43 = arith.cmpi eq, %42, %0 : vector<128x128xi32>
    %44 = arith.extui %43 : vector<128x128xi1> to vector<128x128xi32>
    %45 = arith.sitofp %44 : vector<128x128xi32> to vector<128x128xf32>
    %46 = arith.addf %40, %45 : vector<128x128xf32>
    %47 = vector.extract_strided_slice %39 {offsets = [0, 1], sizes = [128, 1], strides = [1, 1]} : vector<128x8xi32> to vector<128x1xi32>
    %48 = vector.broadcast %47 : vector<128x1xi32> to vector<128x128xi32>
    %49 = arith.cmpi eq, %48, %0 : vector<128x128xi32>
    %50 = arith.extui %49 : vector<128x128xi1> to vector<128x128xi32>
    %51 = arith.sitofp %50 : vector<128x128xi32> to vector<128x128xf32>
    %52 = arith.addf %46, %51 : vector<128x128xf32>
    %53 = vector.extract_strided_slice %39 {offsets = [0, 2], sizes = [128, 1], strides = [1, 1]} : vector<128x8xi32> to vector<128x1xi32>
    %54 = vector.broadcast %53 : vector<128x1xi32> to vector<128x128xi32>
    %55 = arith.cmpi eq, %54, %0 : vector<128x128xi32>
    %56 = arith.extui %55 : vector<128x128xi1> to vector<128x128xi32>
    %57 = arith.sitofp %56 : vector<128x128xi32> to vector<128x128xf32>
    %58 = arith.addf %52, %57 : vector<128x128xf32>
    %59 = vector.extract_strided_slice %39 {offsets = [0, 3], sizes = [128, 1], strides = [1, 1]} : vector<128x8xi32> to vector<128x1xi32>
    %60 = vector.broadcast %59 : vector<128x1xi32> to vector<128x128xi32>
    %61 = arith.cmpi eq, %60, %0 : vector<128x128xi32>
    %62 = arith.extui %61 : vector<128x128xi1> to vector<128x128xi32>
    %63 = arith.sitofp %62 : vector<128x128xi32> to vector<128x128xf32>
    %64 = arith.addf %58, %63 : vector<128x128xf32>
    %65 = vector.extract_strided_slice %39 {offsets = [0, 4], sizes = [128, 1], strides = [1, 1]} : vector<128x8xi32> to vector<128x1xi32>
    %66 = vector.broadcast %65 : vector<128x1xi32> to vector<128x128xi32>
    %67 = arith.cmpi eq, %66, %0 : vector<128x128xi32>
    %68 = arith.extui %67 : vector<128x128xi1> to vector<128x128xi32>
    %69 = arith.sitofp %68 : vector<128x128xi32> to vector<128x128xf32>
    %70 = arith.addf %64, %69 : vector<128x128xf32>
    %71 = vector.extract_strided_slice %39 {offsets = [0, 5], sizes = [128, 1], strides = [1, 1]} : vector<128x8xi32> to vector<128x1xi32>
    %72 = vector.broadcast %71 : vector<128x1xi32> to vector<128x128xi32>
    %73 = arith.cmpi eq, %72, %0 : vector<128x128xi32>
    %74 = arith.extui %73 : vector<128x128xi1> to vector<128x128xi32>
    %75 = arith.sitofp %74 : vector<128x128xi32> to vector<128x128xf32>
    %76 = arith.addf %70, %75 : vector<128x128xf32>
    %77 = vector.extract_strided_slice %39 {offsets = [0, 6], sizes = [128, 1], strides = [1, 1]} : vector<128x8xi32> to vector<128x1xi32>
    %78 = vector.broadcast %77 : vector<128x1xi32> to vector<128x128xi32>
    %79 = arith.cmpi eq, %78, %0 : vector<128x128xi32>
    %80 = arith.extui %79 : vector<128x128xi1> to vector<128x128xi32>
    %81 = arith.sitofp %80 : vector<128x128xi32> to vector<128x128xf32>
    %82 = arith.addf %76, %81 : vector<128x128xf32>
    %83 = vector.extract_strided_slice %39 {offsets = [0, 7], sizes = [128, 1], strides = [1, 1]} : vector<128x8xi32> to vector<128x1xi32>
    %84 = vector.broadcast %83 : vector<128x1xi32> to vector<128x128xi32>
    %85 = arith.cmpi eq, %84, %0 : vector<128x128xi32>
    %86 = arith.extui %85 : vector<128x128xi1> to vector<128x128xi32>
    %87 = arith.sitofp %86 : vector<128x128xi32> to vector<128x128xf32>
    %88 = arith.addf %82, %87 : vector<128x128xf32>
    %89 = tpu.concatenate %38, %88 in 1 : vector<128x128xf32>, vector<128x128xf32> -> vector<128x256xf32>
    %90 = arith.truncf %89 : vector<128x256xf32> to vector<128x256xbf16>
    %c0_4 = arith.constant 0 : index
    %c0_5 = arith.constant 0 : index
    %91 = vector.load %arg3[%c0_4, %c0_5] : memref<256x128xbf16, #tpu.memory_space<vmem>>, vector<256x128xbf16>
    %cst_6 = arith.constant dense<0.000000e+00> : vector<128x128xf32>
    %92 = tpu.matmul %90, %91, %cst_6 {dimension_numbers = #tpu.dot_dimension_numbers<[1], [0], [0], [1], [0, 0, 1, 1], [], []>} : vector<128x256xbf16>, vector<256x128xbf16>, vector<128x128xf32> -> vector<128x128xf32>
    %c0_7 = arith.constant 0 : index
    %c0_8 = arith.constant 0 : index
    %93 = vector.load %arg4[%c0_7, %c0_8] : memref<1x128xf32, #tpu.memory_space<vmem>>, vector<1x128xf32>
    %94 = vector.broadcast %93 : vector<1x128xf32> to vector<128x128xf32>
    %95 = arith.addf %92, %94 : vector<128x128xf32>
    %cst_9 = arith.constant 0.000000e+00 : f32
    %96 = vector.broadcast %cst_9 : f32 to vector<128x128xf32>
    %97 = arith.maximumf %95, %96 : vector<128x128xf32>
    %98 = arith.truncf %97 : vector<128x128xf32> to vector<128x128xbf16>
    %c0_10 = arith.constant 0 : index
    %c0_11 = arith.constant 0 : index
    %99 = vector.load %arg5[%c0_10, %c0_11] : memref<128x128xbf16, #tpu.memory_space<vmem>>, vector<128x128xbf16>
    %cst_12 = arith.constant dense<0.000000e+00> : vector<128x128xf32>
    %100 = tpu.matmul %98, %99, %cst_12 {dimension_numbers = #tpu.dot_dimension_numbers<[1], [0], [0], [1], [0, 0, 1, 1], [], []>} : vector<128x128xbf16>, vector<128x128xbf16>, vector<128x128xf32> -> vector<128x128xf32>
    %c0_13 = arith.constant 0 : index
    %c0_14 = arith.constant 0 : index
    %101 = vector.load %arg6[%c0_13, %c0_14] : memref<1x128xf32, #tpu.memory_space<vmem>>, vector<1x128xf32>
    %102 = vector.broadcast %101 : vector<1x128xf32> to vector<128x128xf32>
    %103 = arith.addf %100, %102 : vector<128x128xf32>
    %cst_15 = arith.constant 0.000000e+00 : f32
    %104 = vector.broadcast %cst_15 : f32 to vector<128x128xf32>
    %105 = arith.maximumf %103, %104 : vector<128x128xf32>
    %c0_16 = arith.constant 0 : index
    %c0_17 = arith.constant 0 : index
    %106 = vector.load %arg7[%c0_16, %c0_17] : memref<1x128xf32, #tpu.memory_space<vmem>>, vector<1x128xf32>
    %107 = vector.broadcast %106 : vector<1x128xf32> to vector<128x128xf32>
    %108 = arith.mulf %105, %107 : vector<128x128xf32>
    %c0_18 = arith.constant 0 : index
    %c0_19 = arith.constant 0 : index
    %109 = vector.load %arg8[%c0_18, %c0_19] : memref<1x128xf32, #tpu.memory_space<vmem>>, vector<1x128xf32>
    %110 = vector.shape_cast %109 : vector<1x128xf32> to vector<128xf32>
    %111 = tpu.transpose %108, [1, 0] : vector<128x128xf32> -> vector<128x128xf32>
    %cst_20 = arith.constant dense<0.000000e+00> : vector<128xf32>
    %112 = vector.multi_reduction <add>, %111, %cst_20 [0] : vector<128x128xf32> to vector<128xf32>
    %113 = arith.addf %112, %110 : vector<128xf32>
    %c0_21 = arith.constant 0 : index
    %c0_22 = arith.constant 0 : index
    %c0_23 = arith.constant 0 : index
    %114 = vector.load %arg9[%c0_21, %c0_22, %c0_23] : memref<1x1x128xf32, #tpu.memory_space<vmem>>, vector<1x1x128xf32>
    %115 = vector.shape_cast %114 : vector<1x1x128xf32> to vector<128xf32>
    %116 = vector.shape_cast %113 : vector<128xf32> to vector<1x1x128xf32>
    tpu.vector_store %arg9[%c0_21, %c0_22, %c0_23], %116 {strides = array<i32>} : memref<1x1x128xf32, #tpu.memory_space<vmem>>, vector<1x1x128xf32>,
    return
  }
  func.func @transform_0(%arg0: i32) -> (i32, i32) {
    %c0_i32 = arith.constant 0 : i32
    %c0_i32_0 = arith.constant 0 : i32
    return %arg0, %c0_i32 : i32, i32
  }
  func.func @transform_1(%arg0: i32) -> (i32, i32) {
    %c0_i32 = arith.constant 0 : i32
    %c0_i32_0 = arith.constant 0 : i32
    return %arg0, %c0_i32 : i32, i32
  }
  func.func @transform_2(%arg0: i32) -> (i32, i32) {
    %c0_i32 = arith.constant 0 : i32
    %c0_i32_0 = arith.constant 0 : i32
    %c0_i32_1 = arith.constant 0 : i32
    return %c0_i32, %c0_i32_0 : i32, i32
  }
  func.func @transform_3(%arg0: i32) -> (i32, i32) {
    %c0_i32 = arith.constant 0 : i32
    %c0_i32_0 = arith.constant 0 : i32
    %c0_i32_1 = arith.constant 0 : i32
    return %c0_i32, %c0_i32_0 : i32, i32
  }
  func.func @transform_4(%arg0: i32) -> (i32, i32) {
    %c0_i32 = arith.constant 0 : i32
    %c0_i32_0 = arith.constant 0 : i32
    %c0_i32_1 = arith.constant 0 : i32
    return %c0_i32, %c0_i32_0 : i32, i32
  }
  func.func @transform_5(%arg0: i32) -> (i32, i32) {
    %c0_i32 = arith.constant 0 : i32
    %c0_i32_0 = arith.constant 0 : i32
    %c0_i32_1 = arith.constant 0 : i32
    return %c0_i32, %c0_i32_0 : i32, i32
  }
  func.func @transform_6(%arg0: i32) -> (i32, i32) {
    %c0_i32 = arith.constant 0 : i32
    %c0_i32_0 = arith.constant 0 : i32
    %c0_i32_1 = arith.constant 0 : i32
    return %c0_i32, %c0_i32_0 : i32, i32
  }
  func.func @transform_7(%arg0: i32) -> (i32, i32) {
    %c0_i32 = arith.constant 0 : i32
    %c0_i32_0 = arith.constant 0 : i32
    %c0_i32_1 = arith.constant 0 : i32
    return %c0_i32, %c0_i32_0 : i32, i32
  }
  func.func @transform_8(%arg0: i32) -> (i32, i32, i32) {
    %c0_i32 = arith.constant 0 : i32
    %c0_i32_0 = arith.constant 0 : i32
    %c0_i32_1 = arith.constant 0 : i32
    return %arg0, %c0_i32, %c0_i32_0 : i32, i32, i32
  }
}

</mosaic_0001>

<bundles_post_ra>
// kernel: tpu_custom_call.1
= control target key start
LH: loop header
LB: loop body
LE: loop exit
PB: predicated region body
PF: predicated region fallthrough
CT: control target
= control target key end

     0   :  { %13 = vsyncpa [#allocation3], 0  ;;  %s4697_s0 = inlined_call_operand.hbm [shape: s32[128,6], index: 0, kind: input, shape index: {}]   ;;  %s4698_s1 = inlined_call_operand.hbm [shape: s32[128,8], index: 1, kind: input, shape index: {}]   ;;  %s4699_s2 = inlined_call_operand.hbm [shape: bf16[256,128], index: 2, kind: input, shape index: {}]   ;;  %s4700_s3 = inlined_call_operand.hbm [shape: f32[1,128], index: 3, kind: input, shape index: {}]   ;;  %s4701_s4 = inlined_call_operand.hbm [shape: bf16[128,128], index: 4, kind: input, shape index: {}]   ;;  %s4702_s5 = inlined_call_operand.hbm [shape: f32[1,128], index: 5, kind: input, shape index: {}]   ;;  %s4703_s6 = inlined_call_operand.hbm [shape: f32[1,128], index: 6, kind: input, shape index: {}]   ;;  %s4704_s7 = inlined_call_operand.hbm [shape: f32[1,128], index: 7, kind: input, shape index: {}]   ;;  %s4705_s8 = inlined_call_operand.hbm [shape: f32[1,1,128], index: 8, kind: output, shape index: {}]  }
   0x1   :  { %14 = vsyncpa [#allocation6], 0 }
   0x2   :  { %15 = vsyncpa [#allocation9], 0 }
   0x3   :  { %16 = vsyncpa [#allocation12], 0 }
   0x4   :  { %17 = vsyncpa [#allocation15], 0 }
   0x5   :  { %18 = vsyncpa [#allocation4], 0  ;;  %s3015_s27 = smov [#allocation5]   ;;  %s3016_s29 = smov [#allocation8]  }
   0x6   :  { %s36_s28 = sshll.u32 %s3015_s27, 4  ;;  %s61_s30 = sshll.u32 %s3016_s29, 4  ;;  %s37_s28 = int_to_ptr.vmem [resolvable:$true] %s36_s28  ;;  %s3082_s30 = int_to_ptr.vmem [resolvable:$true] %s61_s30 }
   0x7   :  { %s2805_s11 = scalar_lea.hbm %s4698_s1, 2048 }
   0x8   :  { %p2806_p0 = scmp.ne.s32.totalorder %s4698_s1, %s2805_s11  ;;  %p2809_p1 = scmp.lt.u32.totalorder %s2805_s11, %s4698_s1 }
   0xa   :  { %p2811_p2 = pnand %p2809_p1, %p2806_p0 }
   0xc   :  { %2814 = shalt.err (!%p2811_p2)
}
   0xd   :  { %s2815_s16 = scalar_lea.vmem %s37_s28, 2048  ;;  %p2820_p4 = scmp.lt.s32.totalorder %s37_s28, %s37_s28 }
   0xe   :  { %p2816_p3 = scmp.ne.s32.totalorder %s37_s28, %s2815_s16  ;;  %p2821_p5 = scmp.lt.s32.totalorder %s2815_s16, %s2815_s16 }
  0x10   :  { %p2822_p6 = por %p2821_p5, %p2820_p4 }
  0x12   :  { %p2823_p7 = pnand %p2822_p6, %p2816_p3 }
  0x14   :  { %2826 = shalt.err (!%p2823_p7)
}
  0x15   :  { %s3017_s17 = smov 128   ;;  %s3018_s18 = smov 8  }
  0x16   :  { %42 = dma.hbm_to_vmem [thread:$0]  %s4698_s1, 2048, %s37_s28, [#allocation6], %s3017_s17, %s3017_s17, %s3018_s18  }
  0x17   :  { %s2827_s23 = scalar_lea.hbm %s4700_s3, 16 }
  0x18   :  { %p2828_p8 = scmp.ne.s32.totalorder %s4700_s3, %s2827_s23  ;;  %p2831_p9 = scmp.lt.u32.totalorder %s2827_s23, %s4700_s3 }
  0x1a   :  { %p2833_p10 = pnand %p2831_p9, %p2828_p8 }
  0x1c   :  { %2836 = shalt.err (!%p2833_p10)
}
  0x1d   :  { %s2837_s29 = scalar_lea.vmem %s3082_s30, 16  ;;  %s2841_s1 = scalar_lea.vmem %s3082_s30, 32 }
  0x1e   :  { %p2838_p11 = scmp.ne.s32.totalorder %s3082_s30, %s2837_s29  ;;  %p2842_p12 = scmp.lt.s32.totalorder %s3082_s30, %s3082_s30 }
  0x1f   :  { %p2843_p13 = scmp.lt.s32.totalorder %s2841_s1, %s2837_s29 }
  0x21   :  { %p2844_p0 = por %p2843_p13, %p2842_p12 }
  0x23   :  { %p2845_p1 = pnand %p2844_p0, %p2838_p11 }
  0x25   :  { %2848 = shalt.err (!%p2845_p1)
}
  0x26   :  { %64 = dma.hbm_to_vmem [thread:$0]  %s4700_s3, 16, %s3082_s30, [#allocation9]  }
  0x27   :  { %s3019_s10 = smov [#allocation11]   ;;  %s3020_s12 = smov [#allocation2]  }
  0x28   :  { %s83_s11 = sshll.u32 %s3019_s10, 4  ;;  %s24_s13 = sshll.u32 %s3020_s12, 4  ;;  %s84_s11 = int_to_ptr.vmem [resolvable:$true] %s83_s11  ;;  %s3117_s13 = int_to_ptr.vmem [resolvable:$true] %s24_s13 }
  0x29   :  { %s2849_s16 = scalar_lea.hbm %s4702_s5, 16 }
  0x2a   :  { %p2850_p2 = scmp.ne.s32.totalorder %s4702_s5, %s2849_s16  ;;  %p2853_p3 = scmp.lt.u32.totalorder %s2849_s16, %s4702_s5 }
  0x2c   :  { %p2855_p4 = pnand %p2853_p3, %p2850_p2 }
  0x2e   :  { %2858 = shalt.err (!%p2855_p4)
}
  0x2f   :  { %s2859_s3 = scalar_lea.vmem %s84_s11, 16  ;;  %s2863_s30 = scalar_lea.vmem %s84_s11, 32 }
  0x30   :  { %p2860_p5 = scmp.ne.s32.totalorder %s84_s11, %s2859_s3  ;;  %p2864_p6 = scmp.lt.s32.totalorder %s84_s11, %s84_s11 }
  0x31   :  { %p2865_p7 = scmp.lt.s32.totalorder %s2863_s30, %s2859_s3 }
  0x33   :  { %p2866_p8 = por %p2865_p7, %p2864_p6 }
  0x35   :  { %p2867_p9 = pnand %p2866_p8, %p2860_p5 }
  0x37   :  { %2870 = shalt.err (!%p2867_p9)
}
  0x38   :  { %86 = dma.hbm_to_vmem [thread:$0]  %s4702_s5, 16, %s84_s11, [#allocation12]  }
  0x39   :  { %s2871_s27 = scalar_lea.hbm %s4697_s0, 2048 }
  0x3a   :  { %p2872_p10 = scmp.ne.s32.totalorder %s4697_s0, %s2871_s27  ;;  %p2875_p11 = scmp.lt.u32.totalorder %s2871_s27, %s4697_s0 }
  0x3c   :  { %p2877_p12 = pnand %p2875_p11, %p2872_p10 }
  0x3e   :  { %2880 = shalt.err (!%p2877_p12)
}
  0x3f   :  { %s2881_s10 = scalar_lea.vmem %s3117_s13, 2048  ;;  %p2886_p0 = scmp.lt.s32.totalorder %s3117_s13, %s3117_s13 }
  0x40   :  { %p2882_p13 = scmp.ne.s32.totalorder %s3117_s13, %s2881_s10  ;;  %p2887_p1 = scmp.lt.s32.totalorder %s2881_s10, %s2881_s10 }
  0x42   :  { %p2888_p2 = por %p2887_p1, %p2886_p0 }
  0x44   :  { %p2889_p3 = pnand %p2888_p2, %p2882_p13 }
  0x46   :  { %2892 = shalt.err (!%p2889_p3)
}
  0x47   :  { %30 = dma.hbm_to_vmem [thread:$0]  %s4697_s0, 2048, %s3117_s13, [#allocation3], %s3017_s17, %s3017_s17, %s3018_s18  }
  0x48   :  { %s3021_s12 = smov [#allocation7]   ;;  %s2893_s19 = scalar_lea.hbm %s4699_s2, 2048 }
  0x49   :  { %s48_s14 = sshll.u32 %s3021_s12, 4  ;;  %p2894_p4 = scmp.ne.s32.totalorder %s4699_s2, %s2893_s19  ;;  %s49_s14 = int_to_ptr.vmem [resolvable:$true] %s48_s14 }
  0x4a   :  { %p2897_p5 = scmp.lt.u32.totalorder %s2893_s19, %s4699_s2 }
  0x4c   :  { %p2899_p6 = pnand %p2897_p5, %p2894_p4 }
  0x4e   :  { %2902 = shalt.err (!%p2899_p6)
}
  0x4f   :  { %s2903_s30 = scalar_lea.vmem %s49_s14, 2048  ;;  %p2908_p8 = scmp.lt.s32.totalorder %s49_s14, %s49_s14 }
  0x50   :  { %p2904_p7 = scmp.ne.s32.totalorder %s49_s14, %s2903_s30  ;;  %p2909_p9 = scmp.lt.s32.totalorder %s2903_s30, %s2903_s30 }
  0x52   :  { %p2910_p10 = por %p2909_p9, %p2908_p8 }
  0x54   :  { %p2911_p11 = pnand %p2910_p10, %p2904_p7 }
  0x56   :  { %2914 = shalt.err (!%p2911_p11)
}
  0x57   :  { %s3022_s0 = smov 64   ;;  %s3023_s17 = smov 4  }
  0x58   :  { %54 = dma.hbm_to_vmem [thread:$0]  %s4699_s2, 2048, %s49_s14, [#allocation6], %s3022_s0, %s3022_s0, %s3023_s17  }
  0x59   :  { %s3024_s23 = smov [#allocation10]   ;;  %s3025_s25 = smov [#allocation13]  }
  0x5a   :  { %s70_s24 = sshll.u32 %s3024_s23, 4  ;;  %s93_s26 = sshll.u32 %s3025_s25, 4  ;;  %s71_s24 = int_to_ptr.vmem [resolvable:$true] %s70_s24  ;;  %s94_s26 = int_to_ptr.vmem [resolvable:$true] %s93_s26 }
  0x5b   :  { %s2915_s1 = scalar_lea.hbm %s4701_s4, 1024 }
  0x5c   :  { %p2916_p12 = scmp.ne.s32.totalorder %s4701_s4, %s2915_s1  ;;  %p2919_p13 = scmp.lt.u32.totalorder %s2915_s1, %s4701_s4 }
  0x5e   :  { %p2921_p0 = pnand %p2919_p13, %p2916_p12 }
  0x60   :  { %2924 = shalt.err (!%p2921_p0)
}
  0x61   :  { %s2925_s2 = scalar_lea.vmem %s71_s24, 1024  ;;  %p2930_p2 = scmp.lt.s32.totalorder %s71_s24, %s71_s24 }
  0x62   :  { %p2926_p1 = scmp.ne.s32.totalorder %s71_s24, %s2925_s2  ;;  %p2931_p3 = scmp.lt.s32.totalorder %s2925_s2, %s2925_s2 }
  0x64   :  { %p2932_p4 = por %p2931_p3, %p2930_p2 }
  0x66   :  { %p2933_p5 = pnand %p2932_p4, %p2926_p1 }
  0x68   :  { %2936 = shalt.err (!%p2933_p5)
}
  0x69   :  { %76 = dma.hbm_to_vmem [thread:$0]  %s4701_s4, 1024, %s71_s24, [#allocation9], %s3022_s0, %s3022_s0, %s3023_s17  }
  0x6a   :  { %s2937_s16 = scalar_lea.hbm %s4703_s6, 16 }
  0x6b   :  { %p2938_p6 = scmp.ne.s32.totalorder %s4703_s6, %s2937_s16  ;;  %p2941_p7 = scmp.lt.u32.totalorder %s2937_s16, %s4703_s6 }
  0x6d   :  { %p2943_p8 = pnand %p2941_p7, %p2938_p6 }
  0x6f   :  { %2946 = shalt.err (!%p2943_p8)
}
  0x70   :  { %s2947_s3 = scalar_lea.vmem %s94_s26, 16  ;;  %s2951_s30 = scalar_lea.vmem %s94_s26, 32 }
  0x71   :  { %p2948_p9 = scmp.ne.s32.totalorder %s94_s26, %s2947_s3  ;;  %p2952_p10 = scmp.lt.s32.totalorder %s94_s26, %s94_s26 }
  0x72   :  { %p2953_p11 = scmp.lt.s32.totalorder %s2951_s30, %s2947_s3 }
  0x74   :  { %p2954_p12 = por %p2953_p11, %p2952_p10 }
  0x76   :  { %p2955_p13 = pnand %p2954_p12, %p2948_p9 }
  0x78   :  { %2958 = shalt.err (!%p2955_p13)
}
  0x79   :  { %96 = dma.hbm_to_vmem [thread:$0]  %s4703_s6, 16, %s94_s26, [#allocation12]  }
  0x7a   :  { %s3026_s17 = smov [#allocation14]   ;;  %s2959_s24 = scalar_lea.hbm %s4704_s7, 16 }
  0x7b   :  { %s103_s18 = sshll.u32 %s3026_s17, 4  ;;  %p2960_p0 = scmp.ne.s32.totalorder %s4704_s7, %s2959_s24  ;;  %s104_s18 = int_to_ptr.vmem [resolvable:$true] %s103_s18 }
  0x7c   :  { %p2963_p1 = scmp.lt.u32.totalorder %s2959_s24, %s4704_s7 }
  0x7e   :  { %p2965_p2 = pnand %p2963_p1, %p2960_p0 }
  0x80   :  { %2968 = shalt.err (!%p2965_p2)
}
  0x81   :  { %s2969_s28 = scalar_lea.vmem %s104_s18, 16  ;;  %s2973_s6 = scalar_lea.vmem %s104_s18, 32 }
  0x82   :  { %p2970_p3 = scmp.ne.s32.totalorder %s104_s18, %s2969_s28  ;;  %p2974_p4 = scmp.lt.s32.totalorder %s104_s18, %s104_s18 }
  0x83   :  { %p2975_p5 = scmp.lt.s32.totalorder %s2973_s6, %s2969_s28 }
  0x85   :  { %p2976_p6 = por %p2975_p5, %p2974_p4 }
  0x87   :  { %p2977_p7 = pnand %p2976_p6, %p2970_p3 }
  0x89   :  { %2980 = shalt.err (!%p2977_p7)
}
  0x8a   :  { %106 = dma.hbm_to_vmem [thread:$0]  %s4704_s7, 16, %s104_s18, [#allocation15]  }
  0x8b   :  { %3003 = dma.done.wait [#allocation3], 2048  }
  0x8c   :  { %3004 = vsyncadd [#allocation3], 4294965248 }
  0x8d   :  { %3005 = dma.done.wait [#allocation6], 4096  }
  0x8e   :  { %3006 = vsyncadd [#allocation6], 4294963200 }
  0x8f   :  { %3007 = dma.done.wait [#allocation9], 1040  }
  0x90   :  { %3008 = vsyncadd [#allocation9], 4294966256 }
  0x91   :  { %3009 = dma.done.wait [#allocation12], 32  }
  0x92   :  { %3010 = vsyncadd [#allocation12], 4294967264 }
  0x93   :  { %3011 = dma.done.wait [#allocation15], 16  }
  0x94   :  { %3012 = vsyncadd [#allocation15], 4294967280  ;;  %v4708_v0 = vmov 4   ;;  %v4706_v1 = vmov 0   ;;  %v3201_v2 = vld [vmem:[#allocation2 + $0x10] sm:$0xff]  ;;  %v3203_v3 = vld [vmem:[#allocation2 + $0x8] sm:$0xff] }
  0x95   :  { %2678 = vset.pattern.permute.xlu0 %v4708_v0  ;;  %2673 = vset.pattern.permute.xlu1 %v4706_v1  ;;  %v3207_v4 = vld [vmem:[#allocation2 + $0x18] sm:$0xff]  ;;  %v3209_v5 = vld [vmem:[#allocation5 + $0x8] sm:$0xff]  ;;  %v3229_v12 = vld [vmem:[#allocation5 + $0x40] sm:$0xff]  ;;  %v4710_v17 = vmov 1   ;;  %v4719_v24 = vmov 2   ;;  %v4712_v27 = vmov 3  }
  0x96   :  { %157 = vperm.xlu1 %2673, %v3201_v2   ;;  %602 = vperm.xlu0 %2678, %v3203_v3   ;;  %v3213_v6 = vld [vmem:[#allocation2 + $0x28] sm:$0xff]  ;;  %v3215_v7 = vld [vmem:[#allocation5 + $0x18] sm:$0xff]  ;;  %v3235_v14 = vld [vmem:[#allocation2 + $0x40] sm:$0xff]  ;;  %s3036_s7 = smov [#allocation16]  }
  0x97   :  { %v3217_v8 = vld [vmem:[#allocation2 + $0x38] sm:$0xff]  ;;  %v3221_v9 = vld [vmem:[#allocation5 + $0x28] sm:$0xff]  ;;  %v3250_v18 = vld [vmem:[#allocation2] sm:$0xff]  ;;  %s2275_s10 = sshll.u32 %s3036_s7, 4  ;;  %s2276_s10 = int_to_ptr.vmem [resolvable:$true] %s2275_s10 }
  0x98   :  { %v3225_v10 = vld [vmem:[#allocation2 + $0x48] sm:$0xff]  ;;  %v3227_v11 = vld [vmem:[#allocation2 + $0x58] sm:$0xff]  ;;  %v3255_v19 = vld [vmem:[#allocation2 + $0x20] sm:$0xff]  ;;  %s2981_s5 = scalar_lea.vmem %s2276_s10, 16  ;;  %s2985_s2 = scalar_lea.vmem %s2276_s10, 32 }
  0x99   :  { %v3233_v13 = vld [vmem:[#allocation2 + $0x68] sm:$0xff]  ;;  %v3241_v15 = vld [vmem:[#allocation2 + $0x78] sm:$0xff]  ;;  %v3259_v20 = vld [vmem:[#allocation2 + $0x30] sm:$0xff]  ;;  %p2982_p8 = scmp.ne.s32.totalorder %s2276_s10, %s2981_s5  ;;  %p2986_p9 = scmp.lt.s32.totalorder %s2276_s10, %s2276_s10 }
  0x9a   :  { %160 = vperm.xlu1 %2673, %v3207_v4   ;;  %1290 = vperm.xlu0 %2678, %v3209_v5   ;;  %v3243_v16 = vld [vmem:[#allocation5 + $0x58] sm:$0xff]  ;;  %v3265_v21 = vld [vmem:[#allocation2 + $0x50] sm:$0xff]  ;;  %v3269_v22 = vld [vmem:[#allocation2 + $0x60] sm:$0xff]  ;;  %p2987_p10 = scmp.lt.s32.totalorder %s2985_s2, %s2981_s5 }
  0x9b   :  { %v3273_v23 = vld [vmem:[#allocation2 + $0x70] sm:$0xff]  ;;  %v3280_v25 = vld [vmem:[#allocation5] sm:$0xff]  ;;  %v3332_v35 = vld [vmem:[#allocation5 + $0x48] sm:$0xff] }
  0x9c   :  { %v3288_v26 = vld [vmem:[#allocation5 + $0x70] sm:$0xff]  ;;  %v3316_v29 = vld [vmem:[#allocation5 + $0x20] sm:$0xff]  ;;  %v3345_v41 = vld [vmem:[#allocation5 + $0x78] sm:$0xff]  ;;  %p2988_p11 = por %p2987_p10, %p2986_p9 }
  0x9d   :  { %v3312_v28 = vld [vmem:[#allocation5 + $0x10] sm:$0xff]  ;;  %v834_v38 = vld [vmem:[#allocation5 + $0x60] sm:$0xff] }
  0x9e   :  { %166 = vperm.xlu1 %2673, %v3213_v6   ;;  %1296 = vperm.xlu0 %2678, %v3215_v7   ;;  %v3324_v32 = vld [vmem:[#allocation5 + $0x30] sm:$0xff]  ;;  %p2989_p12 = pnand %p2988_p11, %p2982_p8 }
  0xa2   :  { %172 = vperm.xlu1 %2673, %v3217_v8   ;;  %1302 = vperm.xlu0 %2678, %v3221_v9  }
  0xa6   :  { %178 = vperm.xlu1 %2673, %v3225_v10   ;;  %614 = vperm.xlu0 %2678, %v3213_v6  }
  0xaa   :  { %184 = vperm.xlu1 %2673, %v3227_v11   ;;  %1311 = vperm.xlu0 %2678, %v3229_v12  }
  0xae   :  { %190 = vperm.xlu1 %2673, %v3233_v13   ;;  %623 = vperm.xlu0 %2678, %v3235_v14  }
  0xb2   :  { %196 = vperm.xlu1 %2673, %v3241_v15   ;;  %1320 = vperm.xlu0 %2678, %v3243_v16  }
  0xb6   :  { %2674 = vset.pattern.permute.xlu1 %v4710_v17  ;;  %632 = vperm.xlu0 %2678, %v3227_v11  }
  0xb7   :  { %266 = vperm.xlu1 %2674, %v3203_v3  }
  0xba   :  { %2738 = vset.pattern.permute.xlu0 %v4706_v1 }
  0xbb   :  { %269 = vperm.xlu1 %2674, %v3201_v2   ;;  %151 = vperm.xlu0 %2738, %v3250_v18  }
  0xbf   :  { %275 = vperm.xlu1 %2674, %v3255_v19   ;;  %154 = vperm.xlu0 %2738, %v3203_v3  }
  0xc3   :  { %281 = vperm.xlu1 %2674, %v3259_v20   ;;  %163 = vperm.xlu0 %2738, %v3255_v19  }
  0xc7   :  { %287 = vperm.xlu1 %2674, %v3235_v14   ;;  %169 = vperm.xlu0 %2738, %v3259_v20  }
  0xcb   :  { %293 = vperm.xlu1 %2674, %v3265_v21   ;;  %175 = vperm.xlu0 %2738, %v3235_v14  }
  0xcf   :  { %299 = vperm.xlu1 %2674, %v3269_v22   ;;  %181 = vperm.xlu0 %2738, %v3265_v21  }
  0xd3   :  { %305 = vperm.xlu1 %2674, %v3273_v23   ;;  %187 = vperm.xlu0 %2738, %v3269_v22  }
  0xd7   :  { %2675 = vset.pattern.permute.xlu1 %v4719_v24  ;;  %193 = vperm.xlu0 %2738, %v3273_v23  }
  0xd8   :  { %375 = vperm.xlu1 %2675, %v3250_v18  }
  0xdb   :  { %839 = vperm.xlu0 %2738, %v3280_v25  }
  0xdc   :  { %381 = vperm.xlu1 %2675, %v3201_v2  }
  0xdf   :  { %863 = vperm.xlu0 %2738, %v3229_v12  }
  0xe0   :  { %384 = vperm.xlu1 %2675, %v3207_v4  }
  0xe3   :  { %872 = vperm.xlu0 %2738, %v3243_v16  }
  0xe4   :  { %390 = vperm.xlu1 %2675, %v3213_v6  }
  0xe7   :  { %881 = vperm.xlu0 %2738, %v3288_v26  }
  0xe8   :  { %396 = vperm.xlu1 %2675, %v3217_v8  }
  0xeb   :  { %2743 = vset.pattern.permute.xlu0 %v4710_v17 }
  0xec   :  { %263 = vperm.xlu0 %2743, %v3250_v18   ;;  %402 = vperm.xlu1 %2675, %v3225_v10  }
  0xf0   :  { %272 = vperm.xlu0 %2743, %v3207_v4   ;;  %408 = vperm.xlu1 %2675, %v3227_v11  }
  0xf4   :  { %278 = vperm.xlu0 %2743, %v3213_v6   ;;  %414 = vperm.xlu1 %2675, %v3233_v13  }
  0xf8   :  { %284 = vperm.xlu0 %2743, %v3217_v8   ;;  %420 = vperm.xlu1 %2675, %v3241_v15  }
  0xfc   :  { %290 = vperm.xlu0 %2743, %v3225_v10   ;;  %2676 = vset.pattern.permute.xlu1 %v4712_v27 }
  0xfd   :  { %490 = vperm.xlu1 %2676, %v3203_v3  }
 0x100   :  { %296 = vperm.xlu0 %2743, %v3227_v11  }
 0x101   :  { %493 = vperm.xlu1 %2676, %v3201_v2  }
 0x104   :  { %302 = vperm.xlu0 %2743, %v3233_v13  }
 0x105   :  { %499 = vperm.xlu1 %2676, %v3255_v19  }
 0x108   :  { %308 = vperm.xlu0 %2743, %v3241_v15  }
 0x109   :  { %505 = vperm.xlu1 %2676, %v3259_v20  }
 0x10c   :  { %954 = vperm.xlu0 %2743, %v3209_v5  }
 0x10d   :  { %511 = vperm.xlu1 %2676, %v3235_v14  }
 0x110   :  { %957 = vperm.xlu0 %2743, %v3312_v28  }
 0x111   :  { %517 = vperm.xlu1 %2676, %v3265_v21  }
 0x114   :  { %963 = vperm.xlu0 %2743, %v3316_v29  }
 0x115   :  { %v3319_v30 = vpop.permute.xlu1 %157  ;;  %523 = vperm.xlu1 %2676, %v3269_v22   ;;  %v3322_v31 = vpop.permute.xlu0 %602 }
 0x118   :  { %969 = vperm.xlu0 %2743, %v3324_v32  }
 0x119   :  { %v3327_v33 = vpop.permute.xlu1 %160  ;;  %529 = vperm.xlu1 %2676, %v3273_v23   ;;  %v3330_v34 = vpop.permute.xlu0 %1290 }
 0x11c   :  { %978 = vperm.xlu0 %2743, %v3332_v35  }
 0x11d   :  { %v3335_v36 = vpop.permute.xlu1 %166  ;;  %2677 = vset.pattern.permute.xlu1 %v4708_v0  ;;  %v3338_v37 = vpop.permute.xlu0 %1296 }
 0x11e   :  { %4739 = vst [vmem:[#allocation23_spill] sm:$0xff] %v3335_v36  ;;  %599 = vperm.xlu1 %2677, %v3250_v18   ;;  %v2772_v36 = vld [vmem:[#allocation7 + $0x58] sm:$0xff]  }
 0x120   :  { %987 = vperm.xlu0 %2743, %v834_v38  }
 0x121   :  { %v3341_v39 = vpop.permute.xlu1 %172  ;;  %v3343_v40 = vpop.permute.xlu0 %1302 }
 0x122   :  { %4740 = vst [vmem:[#allocation24_spill] sm:$0xff] %v3341_v39  ;;  %4741 = vst [vmem:[#allocation25_spill] sm:$0xff] %v3343_v40  ;;  %605 = vperm.xlu1 %2677, %v3201_v2  }
 0x124   :  { %996 = vperm.xlu0 %2743, %v3345_v41  }
 0x125   :  { %v3349_v42 = vpop.permute.xlu1 %178  ;;  %v3351_v43 = vpop.permute.xlu0 %614 }
 0x126   :  { %4742 = vst [vmem:[#allocation26_spill] sm:$0xff] %v3349_v42  ;;  %4743 = vst [vmem:[#allocation27_spill] sm:$0xff] %v3351_v43  ;;  %608 = vperm.xlu1 %2677, %v3207_v4   ;;  %v4795_v43 = vmov 7  }
 0x128   :  { %2746 = vset.pattern.permute.xlu0 %v4719_v24 }
 0x129   :  { %v3355_v44 = vpop.permute.xlu1 %184  ;;  %378 = vperm.xlu0 %2746, %v3203_v3   ;;  %v3358_v45 = vpop.permute.xlu0 %1311 }
 0x12a   :  { %4744 = vst [vmem:[#allocation28_spill] sm:$0xff] %v3355_v44  ;;  %4745 = vst [vmem:[#allocation29_spill] sm:$0xff] %v3358_v45  ;;  %2679 = vset.pattern.permute.xlu1 %v4706_v1 }
 0x12b   :  { %842 = vperm.xlu1 %2679, %v3209_v5  }
 0x12d   :  { %v3362_v46 = vpop.permute.xlu1 %190  ;;  %387 = vperm.xlu0 %2746, %v3255_v19   ;;  %v3365_v47 = vpop.permute.xlu0 %623 }
 0x12e   :  { %4746 = vst [vmem:[#allocation30_spill] sm:$0xff] %v3362_v46  ;;  %4747 = vst [vmem:[#allocation31_spill] sm:$0xff] %v3365_v47  ;;  %v4725_v47 = vmov 7  }
 0x12f   :  { %2680 = vset.pattern.permute.xlu1 %v4710_v17 }
 0x130   :  { %951 = vperm.xlu1 %2680, %v3280_v25  }
 0x131   :  { %v3369_v48 = vpop.permute.xlu1 %196  ;;  %393 = vperm.xlu0 %2746, %v3259_v20   ;;  %v3372_v49 = vpop.permute.xlu0 %1320 }
 0x132   :  { %4748 = vst [vmem:[#allocation32_spill] sm:$0xff] %v3369_v48  ;;  %4749 = vst [vmem:[#allocation33_spill] sm:$0xff] %v3372_v49 }
 0x134   :  { %2681 = vset.pattern.permute.xlu1 %v4719_v24 }
 0x135   :  { %399 = vperm.xlu0 %2746, %v3235_v14   ;;  %1063 = vperm.xlu1 %2681, %v3280_v25   ;;  %v3377_v50 = vpop.permute.xlu0 %632 }
 0x136   :  { %4750 = vst [vmem:[#allocation34_spill] sm:$0xff] %v3377_v50  ;;  %v3379_v51 = vpop.permute.xlu1 %266 }
 0x139   :  { %405 = vperm.xlu0 %2746, %v3265_v21   ;;  %1066 = vperm.xlu1 %2681, %v3209_v5   ;;  %v4714_v21 = vmov 6  }
 0x13a   :  { %v3383_v52 = vpop.permute.xlu1 %269  ;;  %v3385_v53 = vpop.permute.xlu0 %151 }
 0x13d   :  { %411 = vperm.xlu0 %2746, %v3269_v22   ;;  %2682 = vset.pattern.permute.xlu1 %v4712_v27 }
 0x13e   :  { %v3389_v54 = vpop.permute.xlu1 %275  ;;  %v3391_v55 = vpop.permute.xlu0 %154  ;;  %1178 = vperm.xlu1 %2682, %v3209_v5  }
 0x13f   :  { %4751 = vst [vmem:[#allocation35_spill] sm:$0xff] %v3389_v54  ;;  %v2769_v54 = vld [vmem:[#allocation7 + $0x8] sm:$0xff]  }
 0x141   :  { %417 = vperm.xlu0 %2746, %v3273_v23  }
 0x142   :  { %v3395_v56 = vpop.permute.xlu1 %281  ;;  %v3397_v57 = vpop.permute.xlu0 %163  ;;  %2683 = vset.pattern.permute.xlu1 %v4708_v0 }
 0x143   :  { %4752 = vst [vmem:[#allocation36_spill] sm:$0xff] %v3395_v56  ;;  %4753 = vst [vmem:[#allocation37_spill] sm:$0xff] %v3397_v57  ;;  %1287 = vperm.xlu1 %2683, %v3280_v25   ;;  %v4781_v56 = vmov 0  }
 0x145   :  { %1087 = vperm.xlu0 %2746, %v3229_v12  }
 0x146   :  { %v3402_v58 = vpop.permute.xlu1 %287  ;;  %v3404_v59 = vpop.permute.xlu0 %169 }
 0x147   :  { %4754 = vst [vmem:[#allocation38_spill] sm:$0xff] %v3402_v58  ;;  %4755 = vst [vmem:[#allocation39_spill] sm:$0xff] %v3404_v59  ;;  %2684 = vset.pattern.permute.xlu1 %v4706_v1  ;;  %v4716_v1 = vmov 5  }
 0x148   :  { %845 = vperm.xlu1 %2684, %v3312_v28  }
 0x149   :  { %1096 = vperm.xlu0 %2746, %v3243_v16  }
 0x14a   :  { %v3409_v60 = vpop.permute.xlu1 %293  ;;  %v3411_v61 = vpop.permute.xlu0 %175 }
 0x14b   :  { %4756 = vst [vmem:[#allocation40_spill] sm:$0xff] %v3409_v60  ;;  %4757 = vst [vmem:[#allocation41_spill] sm:$0xff] %v3411_v61 }
 0x14c   :  { %848 = vperm.xlu1 %2684, %v3215_v7  }
 0x14d   :  { %1105 = vperm.xlu0 %2746, %v3288_v26  }
 0x14e   :  { %v3415_v62 = vpop.permute.xlu1 %299  ;;  %v3417_v63 = vpop.permute.xlu0 %181 }
 0x14f   :  { %4758 = vst [vmem:[#allocation42_spill] sm:$0xff] %v3415_v62  ;;  %4759 = vst [vmem:[#allocation43_spill] sm:$0xff] %v3417_v63  ;;  %v4766_v62 = vmov 6   ;;  %v4770_v63 = vmov 3  }
 0x150   :  { %2685 = vset.pattern.permute.xlu1 %v4710_v17 }
 0x151   :  { %2748 = vset.pattern.permute.xlu0 %v4714_v21  ;;  %960 = vperm.xlu1 %2685, %v3215_v7  }
 0x152   :  { %v3422_v22 = vpop.permute.xlu1 %305  ;;  %1511 = vperm.xlu0 %2748, %v3280_v25   ;;  %v3425_v38 = vpop.permute.xlu0 %187 }
 0x153   :  { %4760 = vst [vmem:[#allocation44_spill] sm:$0xff] %v3422_v22  ;;  %4761 = vst [vmem:[#allocation45_spill] sm:$0xff] %v3425_v38  ;;  %v3441_v22 = vld [vmem:[#allocation5 + $0x38] sm:$0xff]  ;;  %v3457_v38 = vld [vmem:[#allocation5 + $0x68] sm:$0xff] }
 0x155   :  { %2686 = vset.pattern.permute.xlu1 %v4716_v1 }
 0x156   :  { %1517 = vperm.xlu0 %2748, %v3312_v28   ;;  %v3429_v0 = vpop.permute.xlu0 %193  ;;  %1399 = vperm.xlu1 %2686, %v3280_v25  }
 0x157   :  { %4762 = vst [vmem:[#allocation46_spill] sm:$0xff] %v3429_v0  ;;  %v3432_v17 = vpop.permute.xlu1 %375  ;;  %v3449_v0 = vld [vmem:[#allocation5 + $0x50] sm:$0xff] }
 0x158   :  { %4764 = vst [vmem:[#allocation48_spill] sm:$0xff] %v3449_v0 }
 0x15a   :  { %1523 = vperm.xlu0 %2748, %v3316_v29   ;;  %2687 = vset.pattern.permute.xlu1 %v4719_v24  ;;  %v3436_v27 = vpop.permute.xlu0 %839 }
 0x15b   :  { %1069 = vperm.xlu1 %2687, %v3312_v28   ;;  %v3439_v21 = vpop.permute.xlu1 %381 }
 0x15e   :  { %1532 = vperm.xlu0 %2748, %v3441_v22   ;;  %v3444_v1 = vpop.permute.xlu0 %863 }
 0x15f   :  { %4763 = vst [vmem:[#allocation47_spill] sm:$0xff] %v3444_v1  ;;  %1072 = vperm.xlu1 %2687, %v3215_v7   ;;  %v3447_v48 = vpop.permute.xlu1 %384 }
 0x162   :  { %1541 = vperm.xlu0 %2748, %v3449_v0   ;;  %v3452_v24 = vpop.permute.xlu0 %872 }
 0x163   :  { %4765 = vst [vmem:[#allocation49_spill] sm:$0xff] %v3452_v24  ;;  %2688 = vset.pattern.permute.xlu1 %v4766_v62  ;;  %v3455_v46 = vpop.permute.xlu1 %390  ;;  %v4779_v24 = vmov 4  }
 0x164   :  { %4767 = vst [vmem:[#allocation50_spill] sm:$0xff] %v3455_v46  ;;  %1514 = vperm.xlu1 %2688, %v3209_v5  }
 0x166   :  { %1550 = vperm.xlu0 %2748, %v3457_v38   ;;  %v3461_v50 = vpop.permute.xlu0 %881 }
 0x167   :  { %4768 = vst [vmem:[#allocation51_spill] sm:$0xff] %v3461_v50  ;;  %v3463_v60 = vpop.permute.xlu1 %396 }
 0x168   :  { %4769 = vst [vmem:[#allocation52_spill] sm:$0xff] %v3463_v60  ;;  %2689 = vset.pattern.permute.xlu1 %v4770_v63 }
 0x169   :  { %1181 = vperm.xlu1 %2689, %v3312_v28  }
 0x16a   :  { %2751 = vset.pattern.permute.xlu0 %v4770_v63 }
 0x16b   :  { %487 = vperm.xlu0 %2751, %v3250_v18   ;;  %v3469_v49 = vpop.permute.xlu0 %263  ;;  %v3471_v44 = vpop.permute.xlu1 %402 }
 0x16c   :  { %4771 = vst [vmem:[#allocation53_spill] sm:$0xff] %v3471_v44  ;;  %v4775_v44 = vmov 5  }
 0x16d   :  { %2690 = vset.pattern.permute.xlu1 %v4725_v47 }
 0x16e   :  { %1623 = vperm.xlu1 %2690, %v3280_v25  }
 0x16f   :  { %496 = vperm.xlu0 %2751, %v3207_v4   ;;  %v3476_v50 = vpop.permute.xlu0 %272  ;;  %v3478_v61 = vpop.permute.xlu1 %408 }
 0x170   :  { %4772 = vst [vmem:[#allocation54_spill] sm:$0xff] %v3478_v61 }
 0x172   :  { %1626 = vperm.xlu1 %2690, %v3209_v5  }
 0x173   :  { %502 = vperm.xlu0 %2751, %v3213_v6   ;;  %v3482_v58 = vpop.permute.xlu0 %278  ;;  %v3484_v45 = vpop.permute.xlu1 %414 }
 0x174   :  { %4773 = vst [vmem:[#allocation55_spill] sm:$0xff] %v3482_v58  ;;  %4774 = vst [vmem:[#allocation56_spill] sm:$0xff] %v3484_v45  ;;  %v2775_v58 = vld [vmem:[#allocation7 + $0x20] sm:$0xff]  }
 0x176   :  { %2691 = vset.pattern.permute.xlu1 %v4775_v44 }
 0x177   :  { %508 = vperm.xlu0 %2751, %v3217_v8   ;;  %v3488_v47 = vpop.permute.xlu0 %284  ;;  %714 = vperm.xlu1 %2691, %v3203_v3   ;;  %v3491_v42 = vpop.permute.xlu1 %420 }
 0x178   :  { %4776 = vst [vmem:[#allocation57_spill] sm:$0xff] %v3488_v47  ;;  %4777 = vst [vmem:[#allocation58_spill] sm:$0xff] %v3491_v42 }
 0x17b   :  { %514 = vperm.xlu0 %2751, %v3225_v10   ;;  %v3494_v61 = vpop.permute.xlu0 %290  ;;  %2692 = vset.pattern.permute.xlu1 %v4779_v24 }
 0x17c   :  { %4778 = vst [vmem:[#allocation59_spill] sm:$0xff] %v3494_v61  ;;  %1293 = vperm.xlu1 %2692, %v3312_v28   ;;  %v3498_v60 = vpop.permute.xlu1 %490 }
 0x17f   :  { %520 = vperm.xlu0 %2751, %v3227_v11   ;;  %v3501_v45 = vpop.permute.xlu0 %296 }
 0x180   :  { %4780 = vst [vmem:[#allocation60_spill] sm:$0xff] %v3501_v45  ;;  %2693 = vset.pattern.permute.xlu1 %v4781_v56  ;;  %v3504_v39 = vpop.permute.xlu1 %493  ;;  %v4786_v45 = vmov 1  }
 0x181   :  { %851 = vperm.xlu1 %2693, %v3316_v29  }
 0x183   :  { %526 = vperm.xlu0 %2751, %v3233_v13   ;;  %v3508_v3 = vpop.permute.xlu0 %302 }
 0x184   :  { %4782 = vst [vmem:[#allocation61_spill] sm:$0xff] %v3508_v3  ;;  %v3510_v10 = vpop.permute.xlu1 %499  ;;  %v4789_v3 = vmov 2  }
 0x185   :  { %4783 = vst [vmem:[#allocation62_spill] sm:$0xff] %v3510_v10  ;;  %854 = vperm.xlu1 %2693, %v3221_v9   ;;  %v2766_v10 = vld [vmem:[#allocation7 + $0x40] sm:$0xff]  }
 0x186   :  { %2539 = vmatprep.subr.bf16.mxu0 %v2766_v10  ;;  %v2770_v10 = vld [vmem:[#allocation7 + $0x50] sm:$0xff]  }
 0x187   :  { %532 = vperm.xlu0 %2751, %v3241_v15   ;;  %v3514_v42 = vpop.permute.xlu0 %308 }
 0x188   :  { %4784 = vst [vmem:[#allocation63_spill] sm:$0xff] %v3514_v42  ;;  %v3516_v61 = vpop.permute.xlu1 %505 }
 0x189   :  { %4785 = vst [vmem:[#allocation64_spill] sm:$0xff] %v3516_v61  ;;  %2694 = vset.pattern.permute.xlu1 %v4786_v45 }
 0x18a   :  { %966 = vperm.xlu1 %2694, %v3221_v9  }
 0x18b   :  { %1175 = vperm.xlu0 %2751, %v3280_v25   ;;  %v3521_v47 = vpop.permute.xlu0 %954 }
 0x18c   :  { %v3523_v13 = vpop.permute.xlu1 %511 }
 0x18d   :  { %4787 = vst [vmem:[#allocation65_spill] sm:$0xff] %v3523_v13 }
 0x18e   :  { %2695 = vset.pattern.permute.xlu1 %v4775_v44 }
 0x18f   :  { %1184 = vperm.xlu0 %2751, %v3215_v7   ;;  %1405 = vperm.xlu1 %2695, %v3312_v28   ;;  %v3528_v15 = vpop.permute.xlu0 %957 }
 0x190   :  { %v3530_v42 = vpop.permute.xlu1 %517 }
 0x191   :  { %4788 = vst [vmem:[#allocation66_spill] sm:$0xff] %v3530_v42 }
 0x193   :  { %1190 = vperm.xlu0 %2751, %v3221_v9   ;;  %2696 = vset.pattern.permute.xlu1 %v4789_v3  ;;  %v3534_v61 = vpop.permute.xlu0 %963 }
 0x194   :  { %1075 = vperm.xlu1 %2696, %v3316_v29   ;;  %v3537_v25 = vpop.permute.xlu1 %523 }
 0x195   :  { %4790 = vst [vmem:[#allocation67_spill] sm:$0xff] %v3537_v25 }
 0x197   :  { %1199 = vperm.xlu0 %2751, %v3229_v12   ;;  %v3540_v13 = vpop.permute.xlu0 %969 }
 0x198   :  { %4791 = vst [vmem:[#allocation68_spill] sm:$0xff] %v3540_v13  ;;  %1078 = vperm.xlu1 %2696, %v3221_v9   ;;  %v3543_v59 = vpop.permute.xlu1 %529  ;;  %v2767_v13 = vld [vmem:[#allocation7] sm:$0xff]  }
 0x199   :  { %4792 = vst [vmem:[#allocation69_spill] sm:$0xff] %v3543_v59  ;;  %2540 = vmatpush3.bf16.msra.mxu0 %v2767_v13  ;;  %v2771_v13 = vld [vmem:[#allocation7 + $0x10] sm:$0xff]  }
 0x19b   :  { %1208 = vperm.xlu0 %2751, %v3243_v16   ;;  %v3546_v42 = vpop.permute.xlu0 %978 }
 0x19c   :  { %4793 = vst [vmem:[#allocation70_spill] sm:$0xff] %v3546_v42  ;;  %2697 = vset.pattern.permute.xlu1 %v4766_v62  ;;  %v2768_v42 = vld [vmem:[#allocation7 + $0x48] sm:$0xff]  }
 0x19d   :  { %1520 = vperm.xlu1 %2697, %v3215_v7   ;;  %v3550_v1 = vpop.permute.xlu1 %599  ;;  %2541 = vmatprep.subr.bf16.mxu0 %v2768_v42  ;;  %v2773_v42 = vld [vmem:[#allocation7 + $0x18] sm:$0xff]  }
 0x19e   :  { %2542 = vmatpush3.bf16.msra.mxu0 %v2769_v54 }
 0x19f   :  { %1217 = vperm.xlu0 %2751, %v3288_v26   ;;  %v3553_v25 = vpop.permute.xlu0 %987  ;;  %2543 = vmatprep.subr.bf16.mxu0 %v2770_v10 }
 0x1a0   :  { %4794 = vst [vmem:[#allocation71_spill] sm:$0xff] %v3553_v25 }
 0x1a1   :  { %2698 = vset.pattern.permute.xlu1 %v4770_v63  ;;  %v3556_v59 = vpop.permute.xlu1 %605 }
 0x1a2   :  { %1187 = vperm.xlu1 %2698, %v3316_v29   ;;  %2544 = vmatpush3.bf16.msra.mxu0 %v2771_v13  ;;  %v2776_v13 = vld [vmem:[#allocation7 + $0x68] sm:$0xff]  }
 0x1a3   :  { %2753 = vset.pattern.permute.xlu0 %v4795_v43  ;;  %v3560_v46 = vpop.permute.xlu0 %996  ;;  %2545 = vmatprep.subr.bf16.mxu0 %v2772_v36 }
 0x1a4   :  { %4796 = vst [vmem:[#allocation72_spill] sm:$0xff] %v3560_v46  ;;  %1635 = vperm.xlu0 %2753, %v3316_v29  }
 0x1a5   :  { %v3563_v57 = vpop.permute.xlu1 %608 }
 0x1a6   :  { %2699 = vset.pattern.permute.xlu1 %v4795_v43  ;;  %2546 = vmatpush3.bf16.msra.mxu0 %v2773_v42 }
 0x1a7   :  { %1629 = vperm.xlu1 %2699, %v3312_v28   ;;  %v2774_v28 = vld [vmem:[#allocation7 + $0x60] sm:$0xff]  }
 0x1a8   :  { %1644 = vperm.xlu0 %2753, %v3441_v22   ;;  %v3568_v25 = vpop.permute.xlu0 %378  ;;  %2547 = vmatprep.subr.bf16.mxu0 %v2774_v28 }
 0x1aa   :  { %v3570_v46 = vpop.permute.xlu1 %842  ;;  %2548 = vmatpush3.bf16.msra.mxu0 %v2775_v58 }
 0x1ab   :  { %1632 = vperm.xlu1 %2699, %v3215_v7   ;;  %2549 = vmatprep.subr.bf16.mxu0 %v2776_v13 }
 0x1ac   :  { %1653 = vperm.xlu0 %2753, %v3449_v0   ;;  %v3574_v54 = vpop.permute.xlu0 %387  ;;  %v2777_v0 = vld [vmem:[#allocation7 + $0x28] sm:$0xff]  }
 0x1ad   :  { %4797 = vst [vmem:[#allocation73_spill] sm:$0xff] %v3574_v54 }
 0x1ae   :  { %2550 = vmatpush3.bf16.msra.mxu0 %v2777_v0 }
 0x1af   :  { %2700 = vset.pattern.permute.xlu1 %v4775_v44  ;;  %v3577_v40 = vpop.permute.xlu1 %951 }
 0x1b0   :  { %1662 = vperm.xlu0 %2753, %v3457_v38   ;;  %v3580_v10 = vpop.permute.xlu0 %393  ;;  %720 = vperm.xlu1 %2700, %v3207_v4   ;;  %v2778_v38 = vld [vmem:[#allocation7 + $0x70] sm:$0xff]  }
 0x1b1   :  { %4798 = vst [vmem:[#allocation74_spill] sm:$0xff] %v3580_v10  ;;  %v2779_v4 = vld [vmem:[#allocation7 + $0x30] sm:$0xff]   ;;  %2551 = vmatprep.subr.bf16.mxu0 %v2778_v38 }
 0x1b2   :  { %2552 = vmatpush3.bf16.msra.mxu0 %v2779_v4 }
 0x1b4   :  { %2756 = vset.pattern.permute.xlu0 %v4775_v44  ;;  %v3584_v36 = vpop.permute.xlu0 %399  ;;  %2701 = vset.pattern.permute.xlu1 %v4779_v24  ;;  %v3587_v42 = vpop.permute.xlu1 %1063 }
 0x1b5   :  { %4799 = vst [vmem:[#allocation75_spill] sm:$0xff] %v3584_v36  ;;  %1402 = vperm.xlu0 %2756, %v3209_v5   ;;  %1299 = vperm.xlu1 %2701, %v3316_v29   ;;  %v2780_v36 = vld [vmem:[#allocation7 + $0x78] sm:$0xff]  }
 0x1b6   :  { %v2781_v5 = vld [vmem:[#allocation7 + $0x38] sm:$0xff]   ;;  %2553 = vmatprep.subr.bf16.mxu0 %v2780_v36 }
 0x1b7   :  { %2554 = vmatpush3.bf16.msra.mxu0 %v2781_v5 }
 0x1b8   :  { %v3591_v28 = vpop.permute.xlu0 %405  ;;  %v3593_v58 = vpop.permute.xlu1 %1066 }
 0x1b9   :  { %4800 = vst [vmem:[#allocation76_spill] sm:$0xff] %v3591_v28  ;;  %711 = vperm.xlu0 %2756, %v3250_v18   ;;  %2702 = vset.pattern.permute.xlu1 %v4781_v56 }
 0x1ba   :  { %857 = vperm.xlu1 %2702, %v3324_v32  }
 0x1bc   :  { %v3598_v10 = vpop.permute.xlu0 %411 }
 0x1bd   :  { %4801 = vst [vmem:[#allocation77_spill] sm:$0xff] %v3598_v10  ;;  %1408 = vperm.xlu0 %2756, %v3215_v7   ;;  %v3601_v0 = vpop.permute.xlu1 %1178 }
 0x1be   :  { %860 = vperm.xlu1 %2702, %v3441_v22  }
 0x1c0   :  { %v3604_v13 = vpop.permute.xlu0 %417 }
 0x1c1   :  { %4802 = vst [vmem:[#allocation78_spill] sm:$0xff] %v3604_v13  ;;  %717 = vperm.xlu0 %2756, %v3201_v2  }
 0x1c2   :  { %2703 = vset.pattern.permute.xlu1 %v4786_v45  ;;  %v3608_v18 = vpop.permute.xlu1 %1287 }
 0x1c3   :  { %972 = vperm.xlu1 %2703, %v3441_v22  }
 0x1c4   :  { %v3611_v38 = vpop.permute.xlu0 %1087 }
 0x1c5   :  { %4803 = vst [vmem:[#allocation79_spill] sm:$0xff] %v3611_v38  ;;  %1414 = vperm.xlu0 %2756, %v3221_v9  }
 0x1c7   :  { %2704 = vset.pattern.permute.xlu1 %v4775_v44  ;;  %v3615_v7 = vpop.permute.xlu1 %845 }
 0x1c8   :  { %1411 = vperm.xlu1 %2704, %v3316_v29   ;;  %v3618_v36 = vpop.permute.xlu0 %1096 }
 0x1c9   :  { %4804 = vst [vmem:[#allocation80_spill] sm:$0xff] %v3618_v36  ;;  %726 = vperm.xlu0 %2756, %v3213_v6  }
 0x1cb   :  { %v3621_v2 = vpop.permute.xlu1 %848 }
 0x1cc   :  { %2705 = vset.pattern.permute.xlu1 %v4789_v3  ;;  %v3624_v4 = vpop.permute.xlu0 %1105 }
 0x1cd   :  { %4805 = vst [vmem:[#allocation81_spill] sm:$0xff] %v3624_v4  ;;  %1423 = vperm.xlu0 %2756, %v3229_v12   ;;  %1081 = vperm.xlu1 %2705, %v3324_v32  }
 0x1d0   :  { %v3628_v5 = vpop.permute.xlu1 %960 }
 0x1d1   :  { %735 = vperm.xlu0 %2756, %v3235_v14   ;;  %1084 = vperm.xlu1 %2705, %v3441_v22   ;;  %v3632_v29 = vpop.permute.xlu0 %1511 }
 0x1d5   :  { %1432 = vperm.xlu0 %2756, %v3243_v16   ;;  %2706 = vset.pattern.permute.xlu1 %v4766_v62  ;;  %v3636_v6 = vpop.permute.xlu1 %1399  ;;  %v3638_v13 = vpop.permute.xlu0 %1517 }
 0x1d6   :  { %1526 = vperm.xlu1 %2706, %v3221_v9  }
 0x1d9   :  { %744 = vperm.xlu0 %2756, %v3227_v11   ;;  %v3642_v10 = vpop.permute.xlu0 %1523 }
 0x1da   :  { %4806 = vst [vmem:[#allocation82_spill] sm:$0xff] %v3642_v10  ;;  %2707 = vset.pattern.permute.xlu1 %v4779_v24  ;;  %v3645_v14 = vpop.permute.xlu1 %1069 }
 0x1db   :  { %611 = vperm.xlu1 %2707, %v3255_v19  }
 0x1dd   :  { %1444 = vperm.xlu0 %2756, %v3345_v41   ;;  %v3649_v16 = vpop.permute.xlu0 %1532 }
 0x1de   :  { %4807 = vst [vmem:[#allocation83_spill] sm:$0xff] %v3649_v16  ;;  %v3651_v4 = vpop.permute.xlu1 %1072 }
 0x1df   :  { %2708 = vset.pattern.permute.xlu1 %v4770_v63 }
 0x1e0   :  { %1193 = vperm.xlu1 %2708, %v3324_v32  }
 0x1e1   :  { %2760 = vset.pattern.permute.xlu0 %v4779_v24  ;;  %v3656_v11 = vpop.permute.xlu0 %1541 }
 0x1e2   :  { %4808 = vst [vmem:[#allocation84_spill] sm:$0xff] %v3656_v11  ;;  %1329 = vperm.xlu0 %2760, %v3288_v26  }
 0x1e3   :  { %v3659_v28 = vpop.permute.xlu1 %1514 }
 0x1e4   :  { %1196 = vperm.xlu1 %2708, %v3441_v22  }
 0x1e5   :  { %v3662_v36 = vpop.permute.xlu0 %1550 }
 0x1e6   :  { %4809 = vst [vmem:[#allocation85_spill] sm:$0xff] %v3662_v36  ;;  %641 = vperm.xlu0 %2760, %v3273_v23  }
 0x1e8   :  { %2709 = vset.pattern.permute.xlu1 %v4795_v43  ;;  %v3666_v16 = vpop.permute.xlu1 %1181 }
 0x1e9   :  { %1638 = vperm.xlu1 %2709, %v3221_v9  }
 0x1ea   :  { %v3669_v38 = vpop.permute.xlu0 %487  ;;  %2764 = vset.pattern.permute.xlu0 %v4795_v43 }
 0x1eb   :  { %1668 = vperm.xlu0 %2764, %v3345_v41  }
 0x1ed   :  { %2710 = vset.pattern.permute.xlu1 %v4775_v44  ;;  %v3674_v26 = vpop.permute.xlu1 %1623 }
 0x1ee   :  { %4810 = vst [vmem:[#allocation86_spill] sm:$0xff] %v3674_v26  ;;  %v3676_v11 = vpop.permute.xlu0 %496  ;;  %723 = vperm.xlu1 %2710, %v3255_v19  }
 0x1f1   :  { %v3679_v23 = vpop.permute.xlu1 %1626 }
 0x1f2   :  { %4811 = vst [vmem:[#allocation87_spill] sm:$0xff] %v3679_v23  ;;  %v3681_v36 = vpop.permute.xlu0 %502  ;;  %2711 = vset.pattern.permute.xlu1 %v4779_v24 }
 0x1f3   :  { %4812 = vst [vmem:[#allocation88_spill] sm:$0xff] %v3681_v36  ;;  %1305 = vperm.xlu1 %2711, %v3324_v32  }
 0x1f6   :  { %v3685_v9 = vpop.permute.xlu0 %508  ;;  %v3687_v54 = vpop.permute.xlu1 %714 }
 0x1f7   :  { %4813 = vst [vmem:[#allocation89_spill] sm:$0xff] %v3685_v9  ;;  %1308 = vperm.xlu1 %2711, %v3441_v22  }
 0x1fa   :  { %v3690_v41 = vpop.permute.xlu0 %514 }
 0x1fb   :  { %4814 = vst [vmem:[#allocation90_spill] sm:$0xff] %v3690_v41  ;;  %2712 = vset.pattern.permute.xlu1 %v4781_v56  ;;  %v3693_v10 = vpop.permute.xlu1 %1293 }
 0x1fc   :  { %866 = vperm.xlu1 %2712, %v3332_v35  }
 0x1fe   :  { %v3696_v19 = vpop.permute.xlu0 %520 }
 0x1ff   :  { %4815 = vst [vmem:[#allocation91_spill] sm:$0xff] %v3696_v19 }
 0x200   :  { %2713 = vset.pattern.permute.xlu1 %v4786_v45  ;;  %v3699_v36 = vpop.permute.xlu1 %851 }
 0x201   :  { %975 = vperm.xlu1 %2713, %v3229_v12  }
 0x202   :  { %v3702_v9 = vpop.permute.xlu0 %526 }
 0x203   :  { %4816 = vst [vmem:[#allocation92_spill] sm:$0xff] %v3702_v9  ;;  %v132_v9 = vlaneseq }
 0x204   :  { %v3704_v23 = vpop.permute.xlu1 %854 }
 0x205   :  { %4817 = vst [vmem:[#allocation93_spill] sm:$0xff] %v3704_v23  ;;  %2714 = vset.pattern.permute.xlu1 %v4775_v44 }
 0x206   :  { %v3707_v41 = vpop.permute.xlu0 %532  ;;  %1417 = vperm.xlu1 %2714, %v3324_v32  }
 0x207   :  { %4818 = vst [vmem:[#allocation94_spill] sm:$0xff] %v3707_v41 }
 0x209   :  { %v3710_v56 = vpop.permute.xlu1 %966 }
 0x20a   :  { %4819 = vst [vmem:[#allocation95_spill] sm:$0xff] %v3710_v56  ;;  %v3712_v26 = vpop.permute.xlu0 %1175  ;;  %1420 = vperm.xlu1 %2714, %v3441_v22   ;;  %v3726_v56 = vand.u32 127, %v132_v9 }
 0x20c   :  { %vm200_vm0 = vcmp.eq.s32.totalorder %v3319_v30, %v3726_v56  ;;  %vm647_vm1 = vcmp.eq.s32.totalorder %v3322_v31, %v3726_v56  ;;  %vm201_vm2 = vcmp.eq.s32.totalorder %v3327_v33, %v3726_v56  ;;  %vm198_vm3 = vcmp.eq.s32.totalorder %v3385_v53, %v3726_v56 }
 0x20d   :  { %vm310_vm4 = vcmp.eq.s32.totalorder %v3469_v49, %v3726_v56  ;;  %vm312_vm5 = vcmp.eq.s32.totalorder %v3383_v52, %v3726_v56  ;;  %vm199_vm6 = vcmp.eq.s32.totalorder %v3391_v55, %v3726_v56  ;;  %vm313_vm7 = vcmp.eq.s32.totalorder %v3476_v50, %v3726_v56 }
 0x20e   :  { %v3715_v19 = vpop.permute.xlu0 %1184  ;;  %2715 = vset.pattern.permute.xlu1 %v4789_v3  ;;  %v3718_v12 = vpop.permute.xlu1 %1405  ;;  %v3035_v31 = vmov 0.0   ;;  %vm1335_vm8 = vcmp.eq.s32.totalorder %v3330_v34, %v3726_v56  ;;  %vm311_vm9 = vcmp.eq.s32.totalorder %v3379_v51, %v3726_v56  ;;  %vm424_vm10 = vcmp.eq.s32.totalorder %v3439_v21, %v3726_v56 }
 0x20f   :  { %1090 = vperm.xlu1 %2715, %v3332_v35   ;;  %v2290_v33 = vsel %vm200_vm0, 1.0, %v3035_v31  ;;  %v3755_v53 = vsel %vm647_vm1, 1.0, %v3035_v31  ;;  %v2291_v49 = vsel %vm201_vm2, 1.0, %v3035_v31  ;;  %v2288_v52 = vsel %vm198_vm3, 1.0, %v3035_v31 }
 0x210   :  { %v2304_v50 = vsel %vm310_vm4, 1.0, %v3035_v31  ;;  %vm1337_vm11 = vcmp.eq.s32.totalorder %v3338_v37, %v3726_v56  ;;  %v2306_v9 = vsel %vm312_vm5, 1.0, %v3035_v31  ;;  %v2289_v34 = vsel %vm199_vm6, 1.0, %v3035_v31 }
 0x211   :  { %v2307_v51 = vsel %vm313_vm7, 1.0, %v3035_v31  ;;  %v2305_v21 = vsel %vm311_vm9, 1.0, %v3035_v31  ;;  %vm422_vm12 = vcmp.eq.s32.totalorder %v3432_v17, %v3726_v56  ;;  %vm886_vm13 = vcmp.eq.s32.totalorder %v3436_v27, %v3726_v56 }
 0x212   :  { %v3721_v23 = vpop.permute.xlu0 %1190  ;;  %vm425_vm14 = vcmp.eq.s32.totalorder %v3447_v48, %v3726_v56  ;;  %vm423_vm15 = vcmp.eq.s32.totalorder %v3568_v25, %v3726_v56  ;;  %v361_v17 = vadd.f32 %v2307_v51, %v2291_v49  ;;  %v2320_v3 = vsel %vm422_vm12, 1.0, %v3035_v31 }
 0x213   :  { %4820 = vst [vmem:[#allocation96_spill] sm:$0xff] %v3721_v23  ;;  %2716 = vset.pattern.permute.xlu1 %v4766_v62  ;;  %v3724_v41 = vpop.permute.xlu1 %1075  ;;  %v358_v23 = vadd.f32 %v2304_v50, %v2288_v52  ;;  %v359_v62 = vadd.f32 %v2305_v21, %v2289_v34  ;;  %v2384_v27 = vsel %vm886_vm13, 1.0, %v3035_v31  ;;  %vm999_vm0 = vcmp.eq.s32.totalorder %v3521_v47, %v3726_v56 }
 0x214   :  { %1529 = vperm.xlu1 %2716, %v3324_v32   ;;  %vm998_vm1 = vcmp.eq.s32.totalorder %v3577_v40, %v3726_v56  ;;  %v2323_v52 = vsel %vm425_vm14, 1.0, %v3035_v31  ;;  %vm887_vm2 = vcmp.eq.s32.totalorder %v3570_v46, %v3726_v56  ;;  %vm535_vm3 = vcmp.eq.s32.totalorder %v3498_v60, %v3726_v56 }
 0x215   :  { %vm536_vm4 = vcmp.eq.s32.totalorder %v3504_v39, %v3726_v56  ;;  %vm1110_vm5 = vcmp.eq.s32.totalorder %v3587_v42, %v3726_v56  ;;  %v3812_v40 = vadd.f32 %v2320_v3, %v358_v23  ;;  %v2401_v47 = vsel %vm999_vm0, 1.0, %v3035_v31 }
 0x216   :  { %v3729_v22 = vpop.permute.xlu0 %1199  ;;  %vm1111_vm6 = vcmp.eq.s32.totalorder %v3593_v58, %v3726_v56  ;;  %v3820_v46 = vadd.f32 %v2323_v52, %v361_v17  ;;  %vm648_vm7 = vcmp.eq.s32.totalorder %v3556_v59, %v3726_v56  ;;  %v2385_v60 = vsel %vm887_vm2, 1.0, %v3035_v31 }
 0x217   :  { %4821 = vst [vmem:[#allocation97_spill] sm:$0xff] %v3729_v22  ;;  %v3731_v45 = vpop.permute.xlu1 %1078  ;;  %v2322_v22 = vsel %vm424_vm10, 1.0, %v3035_v31  ;;  %v2337_v3 = vsel %vm535_vm3, 1.0, %v3035_v31  ;;  %v2338_v42 = vsel %vm536_vm4, 1.0, %v3035_v31  ;;  %v2416_v23 = vsel %vm1110_vm5, 1.0, %v3035_v31 }
 0x218   :  { %4822 = vst [vmem:[#allocation98_spill] sm:$0xff] %v3731_v45  ;;  %2717 = vset.pattern.permute.xlu1 %v4779_v24  ;;  %v360_v45 = vadd.f32 %v2306_v9, %v2290_v33  ;;  %v2321_v33 = vsel %vm423_vm15, 1.0, %v3035_v31  ;;  %vm1223_vm9 = vcmp.eq.s32.totalorder %v3601_v0, %v3726_v56  ;;  %vm1000_vm10 = vcmp.eq.s32.totalorder %v3528_v15, %v3726_v56 }
 0x219   :  { %617 = vperm.xlu1 %2717, %v3259_v20   ;;  %v471_v39 = vadd.f32 %v2321_v33, %v359_v62  ;;  %v2417_v49 = vsel %vm1111_vm6, 1.0, %v3035_v31  ;;  %vm646_vm12 = vcmp.eq.s32.totalorder %v3550_v1, %v3726_v56  ;;  %v2354_v9 = vsel %vm648_vm7, 1.0, %v3035_v31 }
 0x21a   :  { %v3751_v30 = vpop.permute.xlu0 %1208  ;;  %v472_v25 = vadd.f32 %v2322_v22, %v360_v45  ;;  %v2400_v22 = vsel %vm998_vm1, 1.0, %v3035_v31  ;;  %v1047_v34 = vadd.f32 %v2401_v47, %v2385_v60  ;;  %vm649_vm13 = vcmp.eq.s32.totalorder %v3563_v57, %v3726_v56 }
 0x21b   :  { %4823 = vst [vmem:[#allocation99_spill] sm:$0xff] %v3751_v30  ;;  %v3775_v30 = vsel %vm1335_vm8, 1.0, %v3035_v31  ;;  %vm1222_vm8 = vcmp.eq.s32.totalorder %v3712_v26, %v3726_v56  ;;  %v1046_v62 = vadd.f32 %v2400_v22, %v2384_v27  ;;  %v2433_v51 = vsel %vm1223_vm9, 1.0, %v3035_v31 }
 0x21c   :  { %v3766_v55 = vpop.permute.xlu1 %1520  ;;  %v584_v21 = vadd.f32 %v2338_v42, %v472_v25  ;;  %v2402_v59 = vsel %vm1000_vm10, 1.0, %v3035_v31  ;;  %v1159_v27 = vadd.f32 %v2417_v49, %v1047_v34  ;;  %vm1334_vm14 = vcmp.eq.s32.totalorder %v3608_v18, %v3726_v56 }
 0x21d   :  { %620 = vperm.xlu1 %2717, %v3217_v8   ;;  %v3790_v8 = vsel %vm1337_vm11, 1.0, %v3035_v31  ;;  %vm1002_vm11 = vcmp.eq.s32.totalorder %v3534_v61, %v3726_v56  ;;  %v2432_v61 = vsel %vm1222_vm8, 1.0, %v3035_v31  ;;  %v1158_v15 = vadd.f32 %v2416_v23, %v1046_v62 }
 0x21e   :  { %v3782_v37 = vpop.permute.xlu0 %1217  ;;  %v3861_v17 = vsel %vm1002_vm11, 1.0, %v3035_v31  ;;  %vm888_vm15 = vcmp.eq.s32.totalorder %v3615_v7, %v3726_v56  ;;  %vm1001_vm0 = vcmp.eq.s32.totalorder %v3628_v5, %v3726_v56  ;;  %v2352_v25 = vsel %vm646_vm12, 1.0, %v3035_v31 }
 0x21f   :  { %v1270_v0 = vadd.f32 %v2432_v61, %v1158_v15  ;;  %v3878_v33 = vadd.f32 %v2354_v9, %v584_v21  ;;  %v3884_v18 = vsel %vm649_vm13, 1.0, %v3035_v31  ;;  %v1271_v7 = vadd.f32 %v2433_v51, %v1159_v27  ;;  %v4824_v61 = vld [vmem:[#allocation86_spill] sm:$0xff] }
 0x220   :  { %vm889_vm1 = vcmp.eq.s32.totalorder %v3621_v2, %v3726_v56  ;;  %vm1112_vm2 = vcmp.eq.s32.totalorder %v3645_v14, %v3726_v56  ;;  %vm1113_vm3 = vcmp.eq.s32.totalorder %v3651_v4, %v3726_v56  ;;  %v2448_v5 = vsel %vm1334_vm14, 1.0, %v3035_v31 }
 0x221   :  { %2718 = vset.pattern.permute.xlu1 %v4770_v63  ;;  %v3799_v48 = vpop.permute.xlu1 %1187  ;;  %v2386_v57 = vsel %vm888_vm15, 1.0, %v3035_v31  ;;  %v2403_v47 = vsel %vm1001_vm0, 1.0, %v3035_v31  ;;  %vm534_vm4 = vcmp.eq.s32.totalorder %v3669_v38, %v3726_v56  ;;  %vm1558_vm5 = vcmp.eq.s32.totalorder %v3632_v29, %v3726_v56 }
 0x222   :  { %1202 = vperm.xlu1 %2718, %v3332_v35   ;;  %vm1446_vm6 = vcmp.eq.s32.totalorder %v3636_v6, %v3726_v56  ;;  %vm1224_vm7 = vcmp.eq.s32.totalorder %v3666_v16, %v3726_v56  ;;  %v2387_v14 = vsel %vm889_vm1, 1.0, %v3035_v31  ;;  %v2419_v22 = vsel %vm1113_vm3, 1.0, %v3035_v31 }
 0x223   :  { %v3814_v45 = vpop.permute.xlu0 %1635  ;;  %v1383_v60 = vadd.f32 %v3775_v30, %v1271_v7  ;;  %v1049_v42 = vadd.f32 %v2403_v47, %v2387_v14  ;;  %vm1559_vm8 = vcmp.eq.s32.totalorder %v3659_v28, %v3726_v56  ;;  %v2336_v23 = vsel %vm534_vm4, 1.0, %v3035_v31 }
 0x224   :  { %v2480_v62 = vsel %vm1558_vm5, 1.0, %v3035_v31  ;;  %v2464_v30 = vsel %vm1446_vm6, 1.0, %v3035_v31  ;;  %v2434_v28 = vsel %vm1224_vm7, 1.0, %v3035_v31  ;;  %vm1225_vm9 = vcmp.eq.s32.totalorder %v3715_v19, %v3726_v56 }
 0x225   :  { %vm1560_vm10 = vcmp.eq.s32.totalorder %v3638_v13, %v3726_v56  ;;  %v1161_v49 = vadd.f32 %v2419_v22, %v1049_v42  ;;  %vm537_vm11 = vcmp.eq.s32.totalorder %v3676_v11, %v3726_v56  ;;  %v2481_v6 = vsel %vm1559_vm8, 1.0, %v3035_v31 }
 0x226   :  { %2719 = vset.pattern.permute.xlu1 %v4795_v43  ;;  %v3833_v58 = vpop.permute.xlu1 %1629  ;;  %v582_v9 = vadd.f32 %v2336_v23, %v3812_v40  ;;  %vm759_vm12 = vcmp.eq.s32.totalorder %v3687_v54, %v3726_v56  ;;  %vm1336_vm13 = vcmp.eq.s32.totalorder %v3693_v10, %v3726_v56  ;;  %vm1670_vm14 = vcmp.eq.s32.totalorder %v4824_v61, %v3726_v56  ;;  %v4825_v40 = vld [vmem:[#allocation87_spill] sm:$0xff] }
 0x227   :  { %1641 = vperm.xlu1 %2719, %v3324_v32   ;;  %v3841_v50 = vpop.permute.xlu0 %1644  ;;  %v583_v32 = vadd.f32 %v2337_v3, %v471_v39  ;;  %v2790_v39 = vld [vmem:[#allocation2 + $0x38] sm:$0xff]  ;;  %v1048_v3 = vadd.f32 %v2402_v59, %v2386_v57  ;;  %v2435_v11 = vsel %vm1225_vm9, 1.0, %v3035_v31  ;;  %v2339_v54 = vsel %vm537_vm11, 1.0, %v3035_v31 }
 0x228   :  { %vm1671_vm0 = vcmp.eq.s32.totalorder %v4825_v40, %v3726_v56  ;;  %vm1448_vm1 = vcmp.eq.s32.totalorder %v3718_v12, %v3726_v56  ;;  %v2450_v15 = vsel %vm1336_vm13, 1.0, %v3035_v31  ;;  %v2496_v59 = vsel %vm1670_vm14, 1.0, %v3035_v31 }
 0x229   :  { %v695_v1 = vadd.f32 %v3755_v53, %v583_v32  ;;  %v2418_v53 = vsel %vm1112_vm2, 1.0, %v3035_v31  ;;  %v2369_v32 = vsel %vm759_vm12, 1.0, %v3035_v31  ;;  %vm890_vm2 = vcmp.eq.s32.totalorder %v3699_v36, %v3726_v56 }
 0x22a   :  { %v3863_v52 = vpop.permute.xlu1 %1632  ;;  %v1160_v38 = vadd.f32 %v2418_v53, %v1048_v3  ;;  %v585_v7 = vadd.f32 %v2339_v54, %v3820_v46  ;;  %v2466_v12 = vsel %vm1448_vm1, 1.0, %v3035_v31  ;;  %v4827_v53 = vld [vmem:[#allocation48_spill] sm:$0xff]  ;;  %v2388_v46 = vsel %vm890_vm2, 1.0, %v3035_v31 }
 0x22b   :  { %2720 = vset.pattern.permute.xlu1 %v4775_v44  ;;  %v3872_v26 = vpop.permute.xlu0 %1653  ;;  %v807_v36 = vadd.f32 %v2369_v32, %v695_v1  ;;  %vm1561_vm4 = vcmp.eq.s32.totalorder %v3766_v55, %v3726_v56  ;;  %vm1672_vm5 = vcmp.eq.s32.totalorder %v3833_v58, %v3726_v56  ;;  %vm1114_vm8 = vcmp.eq.s32.totalorder %v3724_v41, %v3726_v56  ;;  %v4022_v54 = vld [vmem:[#allocation5 + $0x58] sm:$0xff] }
 0x22c   :  { %729 = vperm.xlu1 %2720, %v3259_v20   ;;  %v1382_v20 = vadd.f32 %v2448_v5, %v1270_v0  ;;  %v1272_v34 = vadd.f32 %v2434_v28, %v1160_v38  ;;  %v694_v0 = vadd.f32 %v2352_v25, %v582_v9  ;;  %v4826_v5 = vmov 0  }
 0x22d   :  { %v2482_v28 = vsel %vm1560_vm10, 1.0, %v3035_v31  ;;  %v697_v38 = vadd.f32 %v3884_v18, %v585_v7  ;;  %vm1226_vm9 = vcmp.eq.s32.totalorder %v3799_v48, %v3726_v56  ;;  %vm1673_vm11 = vcmp.eq.s32.totalorder %v3863_v52, %v3726_v56 }
 0x22e   :  { %v1494_v29 = vadd.f32 %v2464_v30, %v1382_v20  ;;  %v2497_v20 = vsel %vm1671_vm0, 1.0, %v3035_v31  ;;  %v1384_v14 = vadd.f32 %v2450_v15, %v1272_v34  ;;  %v1050_v13 = vadd.f32 %v3861_v17, %v2388_v46  ;;  %v2793_v46 = vld [vmem:[#allocation5 + $0x40] sm:$0xff] }
 0x22f   :  { %v3905_v2 = vpop.permute.xlu1 %720  ;;  %v3907_v4 = vpop.permute.xlu0 %1662  ;;  %v2483_v41 = vsel %vm1561_vm4, 1.0, %v3035_v31  ;;  %v2498_v18 = vsel %vm1672_vm5, 1.0, %v3035_v31  ;;  %v2436_v55 = vsel %vm1226_vm9, 1.0, %v3035_v31  ;;  %vm1674_vm14 = vcmp.eq.s32.totalorder %v3814_v45, %v3726_v56 }
 0x230   :  { %732 = vperm.xlu1 %2720, %v2790_v39   ;;  %v1606_v21 = vadd.f32 %v2480_v62, %v1494_v29  ;;  %v1496_v3 = vadd.f32 %v2466_v12, %v1384_v14  ;;  %vm761_vm6 = vcmp.eq.s32.totalorder %v3905_v2, %v3726_v56  ;;  %v2500_v12 = vsel %vm1674_vm14, 1.0, %v3035_v31 }
 0x231   :  { %v2371_v48 = vsel %vm761_vm6, 1.0, %v3035_v31 }
 0x232   :  { %v1718_v39 = vadd.f32 %v2496_v59, %v1606_v21  ;;  %v1608_v17 = vadd.f32 %v2482_v28, %v1496_v3  ;;  %v809_v61 = vadd.f32 %v2371_v48, %v697_v38  ;;  %v4834_v3 = vld [vmem:[#allocation98_spill] sm:$0xff]  ;;  %v4835_v38 = vld [vmem:[#allocation96_spill] sm:$0xff]  ;;  %v4837_v48 = vld [vmem:[#allocation25_spill] sm:$0xff] }
 0x233   :  { %vm1115_vm2 = vcmp.eq.s32.totalorder %v4834_v3, %v3726_v56  ;;  %vm1339_vm5 = vcmp.eq.s32.totalorder %v4837_v48, %v3726_v56 }
 0x234   :  { %v1403_v16 = vpop.permute.xlu0 %1402  ;;  %2721 = vset.pattern.permute.xlu1 %v4779_v24  ;;  %v3944_v19 = vpop.permute.xlu1 %1299  ;;  %v1720_v2 = vadd.f32 %v2498_v18, %v1608_v17  ;;  %v4839_v17 = vld [vmem:[#allocation37_spill] sm:$0xff] }
 0x235   :  { %vm1447_vm15 = vcmp.eq.s32.totalorder %v1403_v16, %v3726_v56  ;;  %1314 = vperm.xlu1 %2721, %v3332_v35   ;;  %v1273_v35 = vadd.f32 %v2435_v11, %v1161_v49  ;;  %v4828_v49 = vmov 1   ;;  %v2499_v16 = vsel %vm1673_vm11, 1.0, %v3035_v31 }
 0x236   :  { %v2465_v10 = vsel %vm1447_vm15, 1.0, %v3035_v31  ;;  %vm1338_vm12 = vcmp.eq.s32.totalorder %v3944_v19, %v3726_v56  ;;  %v4829_v19 = vld [vmem:[#allocation82_spill] sm:$0xff] }
 0x237   :  { %v1495_v51 = vadd.f32 %v2465_v10, %v1383_v60  ;;  %v1385_v1 = vadd.f32 %v3790_v8, %v1273_v35  ;;  %v2452_v32 = vsel %vm1338_vm12, 1.0, %v3035_v31  ;;  %vm1562_vm13 = vcmp.eq.s32.totalorder %v4829_v19, %v3726_v56  ;;  %v4032_v35 = vld [vmem:[#allocation5 + $0x48] sm:$0xff] }
 0x238   :  { %v712_v27 = vpop.permute.xlu0 %711 }
 0x239   :  { %vm758_vm3 = vcmp.eq.s32.totalorder %v712_v27, %v3726_v56  ;;  %2722 = vset.pattern.permute.xlu1 %v4826_v5  ;;  %v3966_v57 = vpop.permute.xlu1 %857  ;;  %v1607_v47 = vadd.f32 %v2481_v6, %v1495_v51  ;;  %v2420_v6 = vsel %vm1114_vm8, 1.0, %v3035_v31  ;;  %v2484_v27 = vsel %vm1562_vm13, 1.0, %v3035_v31 }
 0x23a   :  { %v2368_v25 = vsel %vm758_vm3, 1.0, %v3035_v31  ;;  %869 = vperm.xlu1 %2722, %v4827_v53   ;;  %v1162_v10 = vadd.f32 %v2420_v6, %v1050_v13  ;;  %vm1227_vm3 = vcmp.eq.s32.totalorder %v4835_v38, %v3726_v56  ;;  %v4836_v13 = vld [vmem:[#allocation55_spill] sm:$0xff] }
 0x23b   :  { %v806_v22 = vadd.f32 %v2368_v25, %v694_v0  ;;  %v1719_v60 = vadd.f32 %v2497_v20, %v1607_v47  ;;  %v4830_v20 = vmov 2   ;;  %v4831_v25 = vmov 6   ;;  %v4838_v6 = vld [vmem:[#allocation23_spill] sm:$0xff] }
 0x23c   :  { %v1409_v42 = vpop.permute.xlu0 %1408  ;;  %v1274_v21 = vadd.f32 %v2436_v55, %v1162_v10  ;;  %vm315_vm4 = vcmp.eq.s32.totalorder %v4836_v13, %v3726_v56  ;;  %vm203_vm6 = vcmp.eq.s32.totalorder %v4838_v6, %v3726_v56 }
 0x23d   :  { %vm1449_vm7 = vcmp.eq.s32.totalorder %v1409_v42, %v3726_v56  ;;  %v3983_v23 = vpop.permute.xlu1 %860  ;;  %v1735_v62 = vpack.c.bf16 %v1719_v60, %v1718_v39  ;;  %v1734_v30 = vpack.c.bf16 %v807_v36, %v806_v22  ;;  %v4832_v22 = vld [vmem:[#allocation95_spill] sm:$0xff]  ;;  %v4833_v60 = vld [vmem:[#allocation93_spill] sm:$0xff] }
 0x23e   :  { %v2467_v8 = vsel %vm1449_vm7, 1.0, %v3035_v31  ;;  %2723 = vset.pattern.permute.xlu1 %v4828_v49  ;;  %vm1003_vm0 = vcmp.eq.s32.totalorder %v4832_v22, %v3726_v56  ;;  %vm891_vm1 = vcmp.eq.s32.totalorder %v4833_v60, %v3726_v56  ;;  %vm202_vm7 = vcmp.eq.s32.totalorder %v4839_v17, %v3726_v56  ;;  %v4845_v22 = vld [vmem:[#allocation62_spill] sm:$0xff] }
 0x23f   :  { %v1497_v29 = vadd.f32 %v2467_v8, %v1385_v1  ;;  %981 = vperm.xlu1 %2723, %v4827_v53   ;;  %1917 = vmatprep.mubr.bf16.mxu0 %v1735_v62  ;;  %v2405_v42 = vsel %vm1003_vm0, 1.0, %v3035_v31  ;;  %v2389_v1 = vsel %vm891_vm1, 1.0, %v3035_v31  ;;  %v2421_v62 = vsel %vm1115_vm2, 1.0, %v3035_v31  ;;  %v2794_v8 = vld [vmem:[#allocation2 + $0x48] sm:$0xff] }
 0x240   :  { %v718_v52 = vpop.permute.xlu0 %717  ;;  %1918 = vmatmul.mubr.bf16.vlgmr.msra.gmra.mrb[0].mxu0 %v1734_v30  ;;  %v1051_v28 = vadd.f32 %v2405_v42, %v2389_v1 }
 0x241   :  { %v1609_v9 = vadd.f32 %v2483_v41, %v1497_v29  ;;  %vm760_vm10 = vcmp.eq.s32.totalorder %v718_v52, %v3726_v56  ;;  %v2437_v41 = vsel %vm1227_vm3, 1.0, %v3035_v31 }
 0x242   :  { %v2370_v58 = vsel %vm760_vm10, 1.0, %v3035_v31  ;;  %v4019_v34 = vpop.permute.xlu1 %972  ;;  %v1163_v29 = vadd.f32 %v2421_v62, %v1051_v28 }
 0x243   :  { %v808_v11 = vadd.f32 %v2370_v58, %v3878_v33  ;;  %984 = vperm.xlu1 %2723, %v4022_v54   ;;  %v1721_v40 = vadd.f32 %v2499_v16, %v1609_v9  ;;  %v1386_v33 = vadd.f32 %v2452_v32, %v1274_v21  ;;  %v2309_v9 = vsel %vm315_vm4, 1.0, %v3035_v31  ;;  %v4840_v58 = vld [vmem:[#allocation35_spill] sm:$0xff]  ;;  %v4843_v32 = vld [vmem:[#allocation88_spill] sm:$0xff] }
 0x244   :  { %v1415_v18 = vpop.permute.xlu0 %1414  ;;  %v1275_v55 = vadd.f32 %v2437_v41, %v1163_v29  ;;  %v2453_v16 = vsel %vm1339_vm5, 1.0, %v3035_v31  ;;  %vm314_vm9 = vcmp.eq.s32.totalorder %v4840_v58, %v3726_v56  ;;  %vm539_vm13 = vcmp.eq.s32.totalorder %v4843_v32, %v3726_v56  ;;  %v2795_v58 = vld [vmem:[#allocation5 + $0x50] sm:$0xff]  ;;  %v4848_v32 = vld [vmem:[#allocation97_spill] sm:$0xff] }
 0x245   :  { %v1737_v15 = vpack.c.bf16 %v1721_v40, %v1720_v2  ;;  %v1736_v51 = vpack.c.bf16 %v809_v61, %v808_v11  ;;  %vm1451_vm8 = vcmp.eq.s32.totalorder %v1415_v18, %v3726_v56  ;;  %v4841_v2 = vld [vmem:[#allocation73_spill] sm:$0xff]  ;;  %v2293_v61 = vsel %vm203_vm6, 1.0, %v3035_v31  ;;  %v4842_v40 = vld [vmem:[#allocation50_spill] sm:$0xff] }
 0x246   :  { %vm426_vm11 = vcmp.eq.s32.totalorder %v4841_v2, %v3726_v56  ;;  %v2292_v11 = vsel %vm202_vm7, 1.0, %v3035_v31  ;;  %vm427_vm12 = vcmp.eq.s32.totalorder %v4842_v40, %v3726_v56  ;;  %v363_v10 = vadd.f32 %v2309_v9, %v2293_v61  ;;  %v4125_v61 = vld [vmem:[#allocation5 + $0x68] sm:$0xff] }
 0x247   :  { %2724 = vset.pattern.permute.xlu1 %v4775_v44  ;;  %1925 = vmatprep.mubr.bf16.mxu0 %v1737_v15  ;;  %v1412_v59 = vpop.permute.xlu1 %1411  ;;  %v2469_v15 = vsel %vm1451_vm8, 1.0, %v3035_v31  ;;  %v2324_v19 = vsel %vm426_vm11, 1.0, %v3035_v31  ;;  %v1387_v21 = vadd.f32 %v2453_v16, %v1275_v55  ;;  %vm1005_vm4 = vcmp.eq.s32.totalorder %v4019_v34, %v3726_v56  ;;  %v4847_v40 = vld [vmem:[#allocation79_spill] sm:$0xff] }
 0x248   :  { %vm1450_vm15 = vcmp.eq.s32.totalorder %v1412_v59, %v3726_v56  ;;  %1426 = vperm.xlu1 %2724, %v4032_v35   ;;  %1926 = vmatmul.mubr.bf16.gmra.mrb[4].mxu0 %v1736_v51  ;;  %v2308_v51 = vsel %vm314_vm9, 1.0, %v3035_v31  ;;  %vm1118_vm6 = vcmp.eq.s32.totalorder %v4847_v40, %v3726_v56  ;;  %vm893_vm7 = vcmp.eq.s32.totalorder %v3983_v23, %v3726_v56 }
 0x249   :  { %v2468_v0 = vsel %vm1450_vm15, 1.0, %v3035_v31  ;;  %v362_v59 = vadd.f32 %v2308_v51, %v2292_v11  ;;  %vm538_vm15 = vcmp.eq.s32.totalorder %v4845_v22, %v3726_v56  ;;  %v4846_v11 = vld [vmem:[#allocation47_spill] sm:$0xff]  ;;  %vm1230_vm9 = vcmp.eq.s32.totalorder %v4848_v32, %v3726_v56 }
 0x24a   :  { %v1498_v7 = vadd.f32 %v2468_v0, %v1386_v33  ;;  %v2325_v0 = vsel %vm427_vm12, 1.0, %v3035_v31  ;;  %v2340_v28 = vsel %vm538_vm15, 1.0, %v3035_v31  ;;  %vm894_vm5 = vcmp.eq.s32.totalorder %v4846_v11, %v3726_v56  ;;  %v4851_v32 = vld [vmem:[#allocation39_spill] sm:$0xff] }
 0x24b   :  { %v475_v60 = vadd.f32 %v2325_v0, %v363_v10  ;;  %v2407_v34 = vsel %vm1005_vm4, 1.0, %v3035_v31  ;;  %v2424_v51 = vsel %vm1118_vm6, 1.0, %v3035_v31  ;;  %vm204_vm6 = vcmp.eq.s32.totalorder %v4851_v32, %v3726_v56 }
 0x24c   :  { %v1610_v47 = vadd.f32 %v2484_v27, %v1498_v7  ;;  %2725 = vset.pattern.permute.xlu1 %v4830_v20  ;;  %v4039_v36 = vpop.permute.xlu1 %1081  ;;  %v4844_v27 = vld [vmem:[#allocation27_spill] sm:$0xff]  ;;  %v2341_v7 = vsel %vm539_vm13, 1.0, %v3035_v31 }
 0x24d   :  { %1093 = vperm.xlu1 %2725, %v4827_v53   ;;  %vm651_vm14 = vcmp.eq.s32.totalorder %v4844_v27, %v3726_v56  ;;  %v587_v42 = vadd.f32 %v2341_v7, %v475_v60 }
 0x24e   :  { %v4042_v45 = vadd.f32 %v2500_v12, %v1610_v47  ;;  %v1499_v12 = vadd.f32 %v2469_v15, %v1387_v21  ;;  %v727_v47 = vpop.permute.xlu0 %726  ;;  %v2357_v62 = vsel %vm651_vm14, 1.0, %v3035_v31  ;;  %v2392_v15 = vsel %vm894_vm5, 1.0, %v3035_v31 }
 0x24f   :  { %vm763_vm2 = vcmp.eq.s32.totalorder %v727_v47, %v3726_v56  ;;  %v699_v18 = vadd.f32 %v2357_v62, %v587_v42  ;;  %vm1677_vm14 = vcmp.eq.s32.totalorder %v3841_v50, %v3726_v56 }
 0x250   :  { %v4044_v14 = vpop.permute.xlu1 %1084  ;;  %v2373_v13 = vsel %vm763_vm2, 1.0, %v3035_v31  ;;  %vm1116_vm2 = vcmp.eq.s32.totalorder %v4039_v36, %v3726_v56  ;;  %v2788_v36 = vld [vmem:[#allocation10 + $0x30] sm:$0xff]  }
 0x251   :  { %2726 = vset.pattern.permute.xlu1 %v4831_v25  ;;  %v811_v17 = vadd.f32 %v2373_v13, %v699_v18  ;;  %vm1117_vm8 = vcmp.eq.s32.totalorder %v4044_v14, %v3726_v56  ;;  %v2391_v14 = vsel %vm893_vm7, 1.0, %v3035_v31  ;;  %v2786_v18 = vld [vmem:[#allocation10 + $0x20] sm:$0xff]  }
 0x252   :  { %1535 = vperm.xlu1 %2726, %v2793_v46  }
 0x255   :  { %v1527_v39 = vpop.permute.xlu1 %1526 }
 0x256   :  { %1538 = vperm.xlu1 %2726, %v4032_v35   ;;  %vm1563_vm10 = vcmp.eq.s32.totalorder %v1527_v39, %v3726_v56  ;;  %v474_v39 = vadd.f32 %v2324_v19, %v362_v59  ;;  %v2423_v19 = vsel %vm1117_vm8, 1.0, %v3035_v31  ;;  %v2440_v59 = vsel %vm1230_vm9, 1.0, %v3035_v31 }
 0x257   :  { %v2485_v33 = vsel %vm1563_vm10, 1.0, %v3035_v31 }
 0x258   :  { %v1611_v3 = vadd.f32 %v2485_v33, %v1499_v12  ;;  %v586_v29 = vadd.f32 %v2340_v28, %v474_v39  ;;  %v1053_v33 = vadd.f32 %v2407_v34, %v2391_v14  ;;  %v4849_v39 = vld [vmem:[#allocation83_spill] sm:$0xff]  ;;  %v4853_v14 = vld [vmem:[#allocation24_spill] sm:$0xff] }
 0x259   :  { %vm1565_vm13 = vcmp.eq.s32.totalorder %v4849_v39, %v3726_v56  ;;  %vm205_vm9 = vcmp.eq.s32.totalorder %v4853_v14, %v3726_v56  ;;  %v4859_v14 = vld [vmem:[#allocation49_spill] sm:$0xff] }
 0x25a   :  { %2727 = vset.pattern.permute.xlu1 %v4779_v24  ;;  %v612_v30 = vpop.permute.xlu1 %611  ;;  %v1165_v12 = vadd.f32 %v2423_v19, %v1053_v33  ;;  %v4854_v19 = vld [vmem:[#allocation36_spill] sm:$0xff]  ;;  %v4855_v33 = vld [vmem:[#allocation74_spill] sm:$0xff] }
 0x25b   :  { %626 = vperm.xlu1 %2727, %v2794_v8   ;;  %vm650_vm0 = vcmp.eq.s32.totalorder %v612_v30, %v3726_v56 }
 0x25c   :  { %v2356_v30 = vsel %vm650_vm0, 1.0, %v3035_v31 }
 0x25d   :  { %v698_v48 = vadd.f32 %v2356_v30, %v586_v29  ;;  %v2503_v30 = vsel %vm1677_vm14, 1.0, %v3035_v31 }
 0x25f   :  { %2728 = vset.pattern.permute.xlu1 %v4770_v63  ;;  %v4066_v52 = vpop.permute.xlu1 %1193 }
 0x260   :  { %1205 = vperm.xlu1 %2728, %v4827_v53  }
 0x263   :  { %v4083_v53 = vpop.permute.xlu1 %1196 }
 0x264   :  { %2729 = vset.pattern.permute.xlu1 %v4795_v43  ;;  %vm1229_vm10 = vcmp.eq.s32.totalorder %v4083_v53, %v3726_v56  ;;  %v2782_v53 = vld [vmem:[#allocation10] sm:$0xff]  }
 0x265   :  { %1647 = vperm.xlu1 %2729, %v2793_v46   ;;  %v2439_v27 = vsel %vm1229_vm10, 1.0, %v3035_v31  ;;  %2619 = vmatprep.subr.bf16.mxu1 %v2782_v53  ;;  %vm428_vm10 = vcmp.eq.s32.totalorder %v4855_v33, %v3726_v56 }
 0x266   :  { %v1277_v60 = vadd.f32 %v2439_v27, %v1165_v12  ;;  %2620 = vmatpush3.bf16.msra.mxu1 %v2782_v53  ;;  %v2295_v53 = vsel %vm205_vm9, 1.0, %v3035_v31 }
 0x268   :  { %v1639_v46 = vpop.permute.xlu1 %1638 }
 0x269   :  { %vm1675_vm1 = vcmp.eq.s32.totalorder %v1639_v46, %v3726_v56  ;;  %1650 = vperm.xlu1 %2729, %v4032_v35  }
 0x26a   :  { %v2501_v1 = vsel %vm1675_vm1, 1.0, %v3035_v31  ;;  %vm892_vm1 = vcmp.eq.s32.totalorder %v3966_v57, %v3726_v56  ;;  %v2422_v57 = vsel %vm1116_vm2, 1.0, %v3035_v31 }
 0x26b   :  { %v1723_v38 = vadd.f32 %v2501_v1, %v1611_v3  ;;  %v2783_v3 = vld [vmem:[#allocation10 + $0x8] sm:$0xff]   ;;  %v2487_v1 = vsel %vm1565_vm13, 1.0, %v3035_v31 }
 0x26c   :  { %2621 = vmatprep.subr.bf16.mxu1 %v2783_v3 }
 0x26d   :  { %2730 = vset.pattern.permute.xlu1 %v4775_v44  ;;  %v724_v35 = vpop.permute.xlu1 %723  ;;  %v1739_v41 = vpack.c.bf16 %v1723_v38, %v4042_v45  ;;  %v4120_v45 = vld [vmem:[#allocation5 + $0x60] sm:$0xff]  ;;  %2622 = vmatpush3.bf16.msra.mxu1 %v2783_v3  ;;  %v2784_v38 = vld [vmem:[#allocation10 + $0x10] sm:$0xff]  }
 0x26e   :  { %vm762_vm3 = vcmp.eq.s32.totalorder %v724_v35, %v3726_v56  ;;  %738 = vperm.xlu1 %2730, %v2794_v8   ;;  %2623 = vmatprep.subr.bf16.mxu1 %v2784_v38  ;;  %v2785_v35 = vld [vmem:[#allocation10 + $0x18] sm:$0xff]   ;;  %v4856_v3 = vld [vmem:[#allocation52_spill] sm:$0xff] }
 0x26f   :  { %v2372_v6 = vsel %vm762_vm3, 1.0, %v3035_v31  ;;  %1933 = vmatprep.mubr.bf16.mxu0 %v1739_v41  ;;  %vm1228_vm3 = vcmp.eq.s32.totalorder %v4066_v52, %v3726_v56  ;;  %vm429_vm13 = vcmp.eq.s32.totalorder %v4856_v3, %v3726_v56 }
 0x270   :  { %v810_v9 = vadd.f32 %v2372_v6, %v698_v48  ;;  %v4850_v48 = vld [vmem:[#allocation68_spill] sm:$0xff]  ;;  %v2438_v40 = vsel %vm1228_vm3, 1.0, %v3035_v31 }
 0x271   :  { %2624 = vmatpush3.bf16.msra.mxu1 %v2784_v38  ;;  %vm1004_vm0 = vcmp.eq.s32.totalorder %v4850_v48, %v3726_v56 }
 0x272   :  { %2731 = vset.pattern.permute.xlu1 %v4779_v24  ;;  %v4117_v55 = vpop.permute.xlu1 %1305  ;;  %v1738_v16 = vpack.c.bf16 %v811_v17, %v810_v9  ;;  %2625 = vmatprep.subr.bf16.mxu1 %v2785_v35  ;;  %v4186_v17 = vld [vmem:[#allocation2 + $0x50] sm:$0xff] }
 0x273   :  { %1317 = vperm.xlu1 %2731, %v2795_v58   ;;  %v2787_v9 = vld [vmem:[#allocation10 + $0x28] sm:$0xff]   ;;  %vm1340_vm4 = vcmp.eq.s32.totalorder %v4117_v55, %v3726_v56 }
 0x274   :  { %1934 = vmatmul.mubr.bf16.gmra.mrb[8].mxu0 %v1738_v16  ;;  %v2406_v16 = vsel %vm1004_vm0, 1.0, %v3035_v31  ;;  %v2454_v52 = vsel %vm1340_vm4, 1.0, %v3035_v31 }
 0x275   :  { %2626 = vmatpush3.bf16.msra.mxu1 %v2785_v35 }
 0x276   :  { %v1309_v2 = vpop.permute.xlu1 %1308  ;;  %2627 = vmatprep.subr.bf16.mxu1 %v2786_v18 }
 0x277   :  { %2732 = vset.pattern.permute.xlu1 %v4826_v5  ;;  %vm1341_vm12 = vcmp.eq.s32.totalorder %v1309_v2, %v3726_v56 }
 0x278   :  { %875 = vperm.xlu1 %2732, %v4120_v45   ;;  %v2455_v47 = vsel %vm1341_vm12, 1.0, %v3035_v31 }
 0x279   :  { %v1389_v42 = vadd.f32 %v2455_v47, %v1277_v60  ;;  %2628 = vmatpush3.bf16.msra.mxu1 %v2786_v18  ;;  %v2326_v60 = vsel %vm428_vm10, 1.0, %v3035_v31 }
 0x27a   :  { %2629 = vmatprep.subr.bf16.mxu1 %v2787_v9 }
 0x27b   :  { %v4123_v8 = vpop.permute.xlu1 %866 }
 0x27c   :  { %878 = vperm.xlu1 %2732, %v4125_v61  }
 0x27d   :  { %2630 = vmatpush3.bf16.msra.mxu1 %v2787_v9 }
 0x27e   :  { %2631 = vmatprep.subr.bf16.mxu1 %v2788_v36 }
 0x280   :  { %2733 = vset.pattern.permute.xlu1 %v4828_v49  ;;  %v976_v10 = vpop.permute.xlu1 %975 }
 0x281   :  { %vm1006_vm11 = vcmp.eq.s32.totalorder %v976_v10, %v3726_v56  ;;  %990 = vperm.xlu1 %2733, %v4125_v61   ;;  %2632 = vmatpush3.bf16.msra.mxu1 %v2788_v36 }
 0x282   :  { %v2408_v23 = vsel %vm1006_vm11, 1.0, %v3035_v31  ;;  %vm316_vm11 = vcmp.eq.s32.totalorder %v4854_v19, %v3726_v56  ;;  %v4860_v19 = vld [vmem:[#allocation80_spill] sm:$0xff] }
 0x283   :  { %v1054_v21 = vadd.f32 %v2408_v23, %v2392_v15  ;;  %v2789_v15 = vld [vmem:[#allocation10 + $0x38] sm:$0xff]   ;;  %v2310_v12 = vsel %vm316_vm11, 1.0, %v3035_v31 }
 0x284   :  { %2633 = vmatprep.subr.bf16.mxu1 %v2789_v15 }
 0x285   :  { %v1166_v0 = vadd.f32 %v2424_v51, %v1054_v21  ;;  %2734 = vset.pattern.permute.xlu1 %v4775_v44  ;;  %v4155_v7 = vpop.permute.xlu1 %1417  ;;  %v4852_v51 = vld [vmem:[#allocation57_spill] sm:$0xff]  ;;  %2634 = vmatpush3.bf16.msra.mxu1 %v2789_v15 }
 0x286   :  { %1429 = vperm.xlu1 %2734, %v2795_v58   ;;  %v2390_v58 = vsel %vm892_vm1, 1.0, %v3035_v31  ;;  %vm1452_vm5 = vcmp.eq.s32.totalorder %v4155_v7, %v3726_v56  ;;  %vm317_vm8 = vcmp.eq.s32.totalorder %v4852_v51, %v3726_v56  ;;  %v4260_v51 = vld [vmem:[#allocation5 + $0x70] sm:$0xff] }
 0x287   :  { %v4158_v22 = vadd.f32 %v2440_v59, %v1166_v0  ;;  %v1052_v11 = vadd.f32 %v2406_v16, %v2390_v58  ;;  %v2470_v23 = vsel %vm1452_vm5, 1.0, %v3035_v31  ;;  %v2294_v59 = vsel %vm204_vm6, 1.0, %v3035_v31 }
 0x288   :  { %v2311_v0 = vsel %vm317_vm8, 1.0, %v3035_v31  ;;  %v364_v39 = vadd.f32 %v2310_v12, %v2294_v59  ;;  %vm897_vm6 = vcmp.eq.s32.totalorder %v4859_v14, %v3726_v56  ;;  %v4870_v14 = vld [vmem:[#allocation65_spill] sm:$0xff] }
 0x289   :  { %v1421_v46 = vpop.permute.xlu1 %1420  ;;  %v1164_v10 = vadd.f32 %v2422_v57, %v1052_v11  ;;  %v2395_v33 = vsel %vm897_vm6, 1.0, %v3035_v31 }
 0x28a   :  { %vm1453_vm15 = vcmp.eq.s32.totalorder %v1421_v46, %v3726_v56  ;;  %2735 = vset.pattern.permute.xlu1 %v4830_v20  ;;  %v476_v38 = vadd.f32 %v2326_v60, %v364_v39 }
 0x28b   :  { %v2471_v62 = vsel %vm1453_vm15, 1.0, %v3035_v31  ;;  %1099 = vperm.xlu1 %2735, %v4120_v45   ;;  %v1276_v34 = vadd.f32 %v2438_v40, %v1164_v10 }
 0x28c   :  { %v1501_v28 = vadd.f32 %v2471_v62, %v1389_v42  ;;  %v365_v42 = vadd.f32 %v2311_v0, %v2295_v53 }
 0x28d   :  { %v1388_v21 = vadd.f32 %v2454_v52, %v1276_v34  ;;  %v4254_v34 = vld [vmem:[#allocation5 + $0x78] sm:$0xff] }
 0x28e   :  { %v1613_v29 = vadd.f32 %v2487_v1, %v1501_v28  ;;  %v4170_v13 = vpop.permute.xlu1 %1090  ;;  %v4857_v1 = vld [vmem:[#allocation89_spill] sm:$0xff] }
 0x28f   :  { %1102 = vperm.xlu1 %2735, %v4125_v61   ;;  %v1500_v7 = vadd.f32 %v2470_v23, %v1388_v21  ;;  %vm541_vm14 = vcmp.eq.s32.totalorder %v4857_v1, %v3726_v56 }
 0x290   :  { %v4173_v50 = vadd.f32 %v2503_v30, %v1613_v29  ;;  %v4858_v30 = vld [vmem:[#allocation64_spill] sm:$0xff]  ;;  %v2343_v29 = vsel %vm541_vm14, 1.0, %v3035_v31 }
 0x291   :  { %vm540_vm15 = vcmp.eq.s32.totalorder %v4858_v30, %v3726_v56 }
 0x292   :  { %v2342_v48 = vsel %vm540_vm15, 1.0, %v3035_v31 }
 0x293   :  { %2736 = vset.pattern.permute.xlu1 %v4831_v25  ;;  %v1530_v41 = vpop.permute.xlu1 %1529  ;;  %v588_v16 = vadd.f32 %v2342_v48, %v476_v38 }
 0x294   :  { %1544 = vperm.xlu1 %2736, %v4022_v54   ;;  %vm1564_vm7 = vcmp.eq.s32.totalorder %v1530_v41, %v3726_v56 }
 0x295   :  { %v2486_v27 = vsel %vm1564_vm7, 1.0, %v3035_v31  ;;  %vm1121_vm7 = vcmp.eq.s32.totalorder %v4860_v19, %v3726_v56 }
 0x296   :  { %v1612_v46 = vadd.f32 %v2486_v27, %v1500_v7  ;;  %v2427_v27 = vsel %vm1121_vm7, 1.0, %v3035_v31 }
 0x298   :  { %2737 = vset.pattern.permute.xlu1 %v4779_v24  ;;  %v4182_v6 = vpop.permute.xlu1 %617 }
 0x299   :  { %629 = vperm.xlu1 %2737, %v4186_v17   ;;  %vm652_vm0 = vcmp.eq.s32.totalorder %v4182_v6, %v3726_v56 }
 0x29a   :  { %v2358_v6 = vsel %vm652_vm0, 1.0, %v3035_v31 }
 0x29b   :  { %v700_v11 = vadd.f32 %v2358_v6, %v588_v16  ;;  %v1424_v16 = vpop.permute.xlu0 %1423 }
 0x29c   :  { %v621_v2 = vpop.permute.xlu1 %620  ;;  %vm1454_vm6 = vcmp.eq.s32.totalorder %v1424_v16, %v3726_v56 }
 0x29d   :  { %2739 = vset.pattern.permute.xlu1 %v4770_v63  ;;  %vm653_vm1 = vcmp.eq.s32.totalorder %v621_v2, %v3726_v56 }
 0x29e   :  { %1211 = vperm.xlu1 %2739, %v4120_v45   ;;  %v2359_v9 = vsel %vm653_vm1, 1.0, %v3035_v31 }
 0x2a1   :  { %v4205_v55 = vpop.permute.xlu1 %1202 }
 0x2a2   :  { %1214 = vperm.xlu1 %2739, %v4125_v61   ;;  %vm1231_vm0 = vcmp.eq.s32.totalorder %v4205_v55, %v3726_v56 }
 0x2a6   :  { %2740 = vset.pattern.permute.xlu1 %v4795_v43  ;;  %v1642_v47 = vpop.permute.xlu1 %1641 }
 0x2a7   :  { %vm1676_vm12 = vcmp.eq.s32.totalorder %v1642_v47, %v3726_v56  ;;  %1656 = vperm.xlu1 %2740, %v4022_v54   ;;  %v2327_v54 = vsel %vm429_vm13, 1.0, %v3035_v31  ;;  %vm1119_vm13 = vcmp.eq.s32.totalorder %v4170_v13, %v3726_v56  ;;  %v4866_v13 = vld [vmem:[#allocation41_spill] sm:$0xff] }
 0x2a8   :  { %v2502_v62 = vsel %vm1676_vm12, 1.0, %v3035_v31  ;;  %v477_v18 = vadd.f32 %v2327_v54, %v365_v42  ;;  %vm895_vm12 = vcmp.eq.s32.totalorder %v4123_v8, %v3726_v56  ;;  %v4863_v54 = vld [vmem:[#allocation26_spill] sm:$0xff] }
 0x2a9   :  { %v1724_v28 = vadd.f32 %v2502_v62, %v1612_v46  ;;  %v2393_v38 = vsel %vm895_vm12, 1.0, %v3035_v31  ;;  %vm207_vm14 = vcmp.eq.s32.totalorder %v4863_v54, %v3726_v56  ;;  %v4865_v8 = vld [vmem:[#allocation38_spill] sm:$0xff] }
 0x2aa   :  { %v589_v58 = vadd.f32 %v2343_v29, %v477_v18  ;;  %v4864_v29 = vld [vmem:[#allocation29_spill] sm:$0xff]  ;;  %vm318_vm1 = vcmp.eq.s32.totalorder %v4865_v8, %v3726_v56  ;;  %v4868_v18 = vld [vmem:[#allocation75_spill] sm:$0xff]  ;;  %v2297_v6 = vsel %vm207_vm14, 1.0, %v3035_v31 }
 0x2ab   :  { %2741 = vset.pattern.permute.xlu1 %v4775_v44  ;;  %v730_v35 = vpop.permute.xlu1 %729  ;;  %v1741_v41 = vpack.c.bf16 %v4173_v50, %v1724_v28  ;;  %v4301_v28 = vld [vmem:[#allocation2 + $0x68] sm:$0xff]  ;;  %vm1342_vm15 = vcmp.eq.s32.totalorder %v4864_v29, %v3726_v56 }
 0x2ac   :  { %vm764_vm2 = vcmp.eq.s32.totalorder %v730_v35, %v3726_v56  ;;  %741 = vperm.xlu1 %2741, %v4186_v17   ;;  %v701_v36 = vadd.f32 %v2359_v9, %v589_v58  ;;  %v2425_v35 = vsel %vm1119_vm13, 1.0, %v3035_v31  ;;  %v2456_v9 = vsel %vm1342_vm15, 1.0, %v3035_v31 }
 0x2ad   :  { %1941 = vmatprep.mubr.bf16.mxu0 %v1741_v41  ;;  %v2374_v57 = vsel %vm764_vm2, 1.0, %v3035_v31  ;;  %vm206_vm2 = vcmp.eq.s32.totalorder %v4866_v13, %v3726_v56  ;;  %v4867_v41 = vld [vmem:[#allocation59_spill] sm:$0xff]  ;;  %v2441_v58 = vsel %vm1231_vm0, 1.0, %v3035_v31 }
 0x2ae   :  { %v812_v17 = vadd.f32 %v2374_v57, %v700_v11  ;;  %v2296_v57 = vsel %vm206_vm2, 1.0, %v3035_v31 }
 0x2af   :  { %v733_v2 = vpop.permute.xlu1 %732 }
 0x2b0   :  { %vm765_vm3 = vcmp.eq.s32.totalorder %v733_v2, %v3726_v56  ;;  %2742 = vset.pattern.permute.xlu1 %v4779_v24 }
 0x2b1   :  { %v2375_v50 = vsel %vm765_vm3, 1.0, %v3035_v31  ;;  %1323 = vperm.xlu1 %2742, %v4120_v45   ;;  %vm319_vm3 = vcmp.eq.s32.totalorder %v4867_v41, %v3726_v56 }
 0x2b2   :  { %v813_v40 = vadd.f32 %v2375_v50, %v701_v36  ;;  %v2313_v11 = vsel %vm319_vm3, 1.0, %v3035_v31 }
 0x2b4   :  { %v4250_v10 = vpop.permute.xlu1 %1314  ;;  %v1740_v52 = vpack.c.bf16 %v813_v40, %v812_v17  ;;  %v1390_v40 = vadd.f32 %v2456_v9, %v4158_v22 }
 0x2b5   :  { %1326 = vperm.xlu1 %2742, %v4125_v61  }
 0x2b6   :  { %1942 = vmatmul.mubr.bf16.gmra.mrb[12].mxu0 %v1740_v52  ;;  %v4869_v52 = vld [vmem:[#allocation53_spill] sm:$0xff] }
 0x2b9   :  { %2744 = vset.pattern.permute.xlu1 %v4826_v5  ;;  %v870_v32 = vpop.permute.xlu1 %869 }
 0x2ba   :  { %884 = vperm.xlu1 %2744, %v4254_v34   ;;  %vm896_vm4 = vcmp.eq.s32.totalorder %v870_v32, %v3726_v56  ;;  %v2472_v32 = vsel %vm1454_vm6, 1.0, %v3035_v31 }
 0x2bb   :  { %v2394_v23 = vsel %vm896_vm4, 1.0, %v3035_v31  ;;  %vm430_vm4 = vcmp.eq.s32.totalorder %v4868_v18, %v3726_v56 }
 0x2bc   :  { %v2328_v36 = vsel %vm430_vm4, 1.0, %v3035_v31 }
 0x2be   :  { %2745 = vset.pattern.permute.xlu1 %v4828_v49  ;;  %v982_v15 = vpop.permute.xlu1 %981  ;;  %v4861_v49 = vld [vmem:[#allocation99_spill] sm:$0xff] }
 0x2bf   :  { %vm1008_vm5 = vcmp.eq.s32.totalorder %v982_v15, %v3726_v56  ;;  %993 = vperm.xlu1 %2745, %v4260_v51   ;;  %vm1233_vm8 = vcmp.eq.s32.totalorder %v4861_v49, %v3726_v56 }
 0x2c0   :  { %v2410_v5 = vsel %vm1008_vm5, 1.0, %v3035_v31  ;;  %v2443_v53 = vsel %vm1233_vm8, 1.0, %v3035_v31  ;;  %vm1343_vm5 = vcmp.eq.s32.totalorder %v4250_v10, %v3726_v56 }
 0x2c1   :  { %v1056_v21 = vadd.f32 %v2410_v5, %v2394_v23  ;;  %v2457_v50 = vsel %vm1343_vm5, 1.0, %v3035_v31  ;;  %v367_v5 = vadd.f32 %v2313_v11, %v2297_v6 }
 0x2c2   :  { %v985_v59 = vpop.permute.xlu1 %984 }
 0x2c3   :  { %vm1009_vm9 = vcmp.eq.s32.totalorder %v985_v59, %v3726_v56  ;;  %2747 = vset.pattern.permute.xlu1 %v4775_v44 }
 0x2c4   :  { %v2411_v0 = vsel %vm1009_vm9, 1.0, %v3035_v31  ;;  %1435 = vperm.xlu1 %2747, %v4120_v45  }
 0x2c5   :  { %v1057_v7 = vadd.f32 %v2411_v0, %v2395_v33  ;;  %v4872_v33 = vld [vmem:[#allocation31_spill] sm:$0xff] }
 0x2c6   :  { %vm654_vm14 = vcmp.eq.s32.totalorder %v4872_v33, %v3726_v56 }
 0x2c7   :  { %v1169_v12 = vadd.f32 %v2427_v27, %v1057_v7  ;;  %v1427_v47 = vpop.permute.xlu1 %1426  ;;  %v736_v27 = vpop.permute.xlu0 %735  ;;  %v1502_v7 = vadd.f32 %v2472_v32, %v1390_v40  ;;  %v4873_v40 = vld [vmem:[#allocation84_spill] sm:$0xff] }
 0x2c8   :  { %1438 = vperm.xlu1 %2747, %v4125_v61   ;;  %v4290_v61 = vld [vmem:[#allocation2 + $0x60] sm:$0xff]  ;;  %vm1455_vm7 = vcmp.eq.s32.totalorder %v1427_v47, %v3726_v56 }
 0x2c9   :  { %v4279_v39 = vadd.f32 %v2443_v53, %v1169_v12  ;;  %v2473_v15 = vsel %vm1455_vm7, 1.0, %v3035_v31 }
 0x2cc   :  { %2749 = vset.pattern.permute.xlu1 %v4830_v20  ;;  %v1094_v60 = vpop.permute.xlu1 %1093  ;;  %v4862_v20 = vld [vmem:[#allocation70_spill] sm:$0xff] }
 0x2cd   :  { %vm1120_vm11 = vcmp.eq.s32.totalorder %v1094_v60, %v3726_v56  ;;  %1108 = vperm.xlu1 %2749, %v4254_v34   ;;  %vm1007_vm10 = vcmp.eq.s32.totalorder %v4862_v20, %v3726_v56 }
 0x2ce   :  { %v2426_v46 = vsel %vm1120_vm11, 1.0, %v3035_v31  ;;  %v2409_v30 = vsel %vm1007_vm10, 1.0, %v3035_v31  ;;  %vm431_vm11 = vcmp.eq.s32.totalorder %v4869_v52, %v3726_v56  ;;  %vm542_vm10 = vcmp.eq.s32.totalorder %v4870_v14, %v3726_v56  ;;  %v4874_v52 = vld [vmem:[#allocation71_spill] sm:$0xff] }
 0x2cf   :  { %v4285_v3 = vadd.f32 %v2426_v46, %v1056_v21  ;;  %v1055_v48 = vadd.f32 %v2409_v30, %v2393_v38  ;;  %v4871_v21 = vld [vmem:[#allocation90_spill] sm:$0xff]  ;;  %v2329_v53 = vsel %vm431_vm11, 1.0, %v3035_v31 }
 0x2d0   :  { %vm543_vm13 = vcmp.eq.s32.totalorder %v4871_v21, %v3726_v56  ;;  %v479_v20 = vadd.f32 %v2329_v53, %v367_v5  ;;  %v4431_v53 = vld [vmem:[#allocation8] ss:$0 sm:$0xff] }
 0x2d1   :  { %2750 = vset.pattern.permute.xlu1 %v4831_v25  ;;  %v1536_v42 = vpop.permute.xlu1 %1535  ;;  %v1167_v2 = vadd.f32 %v2425_v35, %v1055_v48  ;;  %v2345_v60 = vsel %vm543_vm13, 1.0, %v3035_v31 }
 0x2d2   :  { %1547 = vperm.xlu1 %2750, %v4120_v45   ;;  %vm1566_vm8 = vcmp.eq.s32.totalorder %v1536_v42, %v3726_v56  ;;  %v591_v8 = vadd.f32 %v2345_v60, %v479_v20 }
 0x2d3   :  { %v1279_v17 = vadd.f32 %v2441_v58, %v1167_v2  ;;  %v2488_v59 = vsel %vm1566_vm8, 1.0, %v3035_v31  ;;  %vm1568_vm8 = vcmp.eq.s32.totalorder %v4873_v40, %v3726_v56 }
 0x2d4   :  { %v1614_v46 = vadd.f32 %v2488_v59, %v1502_v7 }
 0x2d5   :  { %v1539_v1 = vpop.permute.xlu1 %1538  ;;  %v1391_v22 = vadd.f32 %v2457_v50, %v1279_v17 }
 0x2d6   :  { %2752 = vset.pattern.permute.xlu1 %v4779_v24  ;;  %vm1567_vm9 = vcmp.eq.s32.totalorder %v1539_v1, %v3726_v56 }
 0x2d7   :  { %635 = vperm.xlu1 %2752, %v4290_v61   ;;  %v2489_v49 = vsel %vm1567_vm9, 1.0, %v3035_v31  ;;  %v1503_v0 = vadd.f32 %v2473_v15, %v1391_v22  ;;  %vm1680_vm9 = vcmp.eq.s32.totalorder %v3872_v26, %v3726_v56  ;;  %v2490_v15 = vsel %vm1568_vm8, 1.0, %v3035_v31 }
 0x2d9   :  { %v1615_v42 = vadd.f32 %v2489_v49, %v1503_v0 }
 0x2da   :  { %v4297_v62 = vpop.permute.xlu1 %626 }
 0x2db   :  { %638 = vperm.xlu1 %2752, %v4301_v28   ;;  %vm655_vm15 = vcmp.eq.s32.totalorder %v4297_v62, %v3726_v56  ;;  %v2360_v62 = vsel %vm654_vm14, 1.0, %v3035_v31 }
 0x2dc   :  { %v2361_v38 = vsel %vm655_vm15, 1.0, %v3035_v31 }
 0x2dd   :  { %v703_v48 = vadd.f32 %v2361_v38, %v591_v8 }
 0x2df   :  { %2754 = vset.pattern.permute.xlu1 %v4770_v63  ;;  %v4324_v55 = vpop.permute.xlu1 %1205  ;;  %v2312_v63 = vsel %vm318_vm1, 1.0, %v3035_v31  ;;  %vm766_vm1 = vcmp.eq.s32.totalorder %v736_v27, %v3726_v56 }
 0x2e0   :  { %1220 = vperm.xlu1 %2754, %v4254_v34   ;;  %v366_v10 = vadd.f32 %v2312_v63, %v2296_v57  ;;  %v2376_v13 = vsel %vm766_vm1, 1.0, %v3035_v31  ;;  %vm1232_vm3 = vcmp.eq.s32.totalorder %v4324_v55, %v3726_v56 }
 0x2e1   :  { %v2442_v63 = vsel %vm1232_vm3, 1.0, %v3035_v31 }
 0x2e2   :  { %v478_v19 = vadd.f32 %v2328_v36, %v366_v10  ;;  %v1280_v55 = vadd.f32 %v2442_v63, %v4285_v3  ;;  %v2803_v10 = vld [vmem:[#allocation2 + $0x78] sm:$0xff] }
 0x2e4   :  { %2755 = vset.pattern.permute.xlu1 %v4795_v43  ;;  %v1648_v23 = vpop.permute.xlu1 %1647 }
 0x2e5   :  { %vm1678_vm12 = vcmp.eq.s32.totalorder %v1648_v23, %v3726_v56  ;;  %1659 = vperm.xlu1 %2755, %v4120_v45   ;;  %v2344_v45 = vsel %vm542_vm10, 1.0, %v3035_v31  ;;  %vm1010_vm10 = vcmp.eq.s32.totalorder %v4874_v52, %v3726_v56  ;;  %v2506_v23 = vsel %vm1680_vm9, 1.0, %v3035_v31 }
 0x2e6   :  { %v2504_v12 = vsel %vm1678_vm12, 1.0, %v3035_v31  ;;  %v590_v1 = vadd.f32 %v2344_v45, %v478_v19  ;;  %v2412_v5 = vsel %vm1010_vm10, 1.0, %v3035_v31 }
 0x2e7   :  { %v1726_v54 = vadd.f32 %v2504_v12, %v1614_v46 }
 0x2e8   :  { %v1651_v47 = vpop.permute.xlu1 %1650  ;;  %v702_v18 = vadd.f32 %v2360_v62, %v590_v1  ;;  %v4875_v62 = vld [vmem:[#allocation60_spill] sm:$0xff] }
 0x2e9   :  { %vm1679_vm0 = vcmp.eq.s32.totalorder %v1651_v47, %v3726_v56  ;;  %2757 = vset.pattern.permute.xlu1 %v4775_v44  ;;  %vm321_vm14 = vcmp.eq.s32.totalorder %v4875_v62, %v3726_v56 }
 0x2ea   :  { %v2505_v30 = vsel %vm1679_vm0, 1.0, %v3035_v31  ;;  %747 = vperm.xlu1 %2757, %v4290_v61   ;;  %v814_v6 = vadd.f32 %v2376_v13, %v702_v18  ;;  %v4878_v18 = vld [vmem:[#allocation43_spill] sm:$0xff] }
 0x2eb   :  { %v1727_v29 = vadd.f32 %v2505_v30, %v1615_v42  ;;  %vm208_vm1 = vcmp.eq.s32.totalorder %v4878_v18, %v3726_v56 }
 0x2ec   :  { %v2298_v63 = vsel %vm208_vm1, 1.0, %v3035_v31 }
 0x2ed   :  { %v739_v35 = vpop.permute.xlu1 %738  ;;  %v1743_v41 = vpack.c.bf16 %v1727_v29, %v1726_v54  ;;  %v4876_v54 = vld [vmem:[#allocation28_spill] sm:$0xff]  ;;  %v4877_v29 = vld [vmem:[#allocation33_spill] sm:$0xff] }
 0x2ee   :  { %vm767_vm2 = vcmp.eq.s32.totalorder %v739_v35, %v3726_v56  ;;  %750 = vperm.xlu1 %2757, %v4301_v28   ;;  %vm209_vm15 = vcmp.eq.s32.totalorder %v4876_v54, %v3726_v56  ;;  %vm1345_vm0 = vcmp.eq.s32.totalorder %v4877_v29, %v3726_v56 }
 0x2ef   :  { %v2377_v61 = vsel %vm767_vm2, 1.0, %v3035_v31  ;;  %1949 = vmatprep.mubr.bf16.mxu0 %v1743_v41 }
 0x2f0   :  { %v815_v9 = vadd.f32 %v2377_v61, %v703_v48  ;;  %v1433_v48 = vpop.permute.xlu0 %1432 }
 0x2f1   :  { %vm1457_vm2 = vcmp.eq.s32.totalorder %v1433_v48, %v3726_v56 }
 0x2f2   :  { %2758 = vset.pattern.permute.xlu1 %v4779_v24  ;;  %v1318_v16 = vpop.permute.xlu1 %1317  ;;  %v1742_v58 = vpack.c.bf16 %v815_v9, %v814_v6  ;;  %v2315_v6 = vsel %vm321_vm14, 1.0, %v3035_v31  ;;  %v2475_v40 = vsel %vm1457_vm2, 1.0, %v3035_v31  ;;  %vm1236_vm2 = vcmp.eq.s32.totalorder %v3782_v37, %v3726_v56  ;;  %v4887_v37 = vld [vmem:[#allocation85_spill] sm:$0xff] }
 0x2f3   :  { %1332 = vperm.xlu1 %2758, %v4254_v34   ;;  %vm1344_vm5 = vcmp.eq.s32.totalorder %v1318_v16, %v3726_v56 }
 0x2f4   :  { %1950 = vmatmul.mubr.bf16.gmra.mrb[16].mxu0 %v1742_v58  ;;  %v2458_v36 = vsel %vm1344_vm5, 1.0, %v3035_v31  ;;  %v2299_v58 = vsel %vm209_vm15, 1.0, %v3035_v31 }
 0x2f7   :  { %2759 = vset.pattern.permute.xlu1 %v4775_v44  ;;  %v876_v57 = vpop.permute.xlu1 %875 }
 0x2f8   :  { %1441 = vperm.xlu1 %2759, %v4260_v51   ;;  %vm898_vm7 = vcmp.eq.s32.totalorder %v876_v57, %v3726_v56  ;;  %v2459_v57 = vsel %vm1345_vm0, 1.0, %v3035_v31 }
 0x2f9   :  { %v2396_v32 = vsel %vm898_vm7, 1.0, %v3035_v31 }
 0x2fa   :  { %v1058_v22 = vadd.f32 %v2412_v5, %v2396_v32  ;;  %v745_v5 = vpop.permute.xlu0 %744 }
 0x2fb   :  { %v879_v2 = vpop.permute.xlu1 %878 }
 0x2fc   :  { %2761 = vset.pattern.permute.xlu1 %v4831_v25  ;;  %vm899_vm4 = vcmp.eq.s32.totalorder %v879_v2, %v3726_v56  ;;  %v4879_v2 = vld [vmem:[#allocation40_spill] sm:$0xff] }
 0x2fd   :  { %1553 = vperm.xlu1 %2761, %v4260_v51   ;;  %v2397_v11 = vsel %vm899_vm4, 1.0, %v3035_v31  ;;  %vm320_vm3 = vcmp.eq.s32.totalorder %v4879_v2, %v3726_v56  ;;  %v2446_v2 = vsel %vm1236_vm2, 1.0, %v3035_v31 }
 0x300   :  { %v991_v28 = vpop.permute.xlu1 %990 }
 0x301   :  { %vm1011_vm6 = vcmp.eq.s32.totalorder %v991_v28, %v3726_v56  ;;  %1556 = vperm.xlu1 %2761, %v4254_v34   ;;  %v1392_v34 = vadd.f32 %v2458_v36, %v1280_v55  ;;  %v4880_v28 = vld [vmem:[#allocation76_spill] sm:$0xff]  ;;  %v369_v55 = vadd.f32 %v2315_v6, %v2299_v58 }
 0x302   :  { %v2413_v25 = vsel %vm1011_vm6, 1.0, %v3035_v31  ;;  %vm432_vm4 = vcmp.eq.s32.totalorder %v4880_v28, %v3726_v56 }
 0x303   :  { %v1059_v50 = vadd.f32 %v2413_v25, %v2397_v11  ;;  %v1393_v11 = vadd.f32 %v2459_v57, %v4279_v39  ;;  %v2330_v39 = vsel %vm432_vm4, 1.0, %v3035_v31  ;;  %vm1571_vm4 = vcmp.eq.s32.totalorder %v4887_v37, %v3726_v56 }
 0x305   :  { %2762 = vset.pattern.permute.xlu1 %v4779_v24  ;;  %v1430_v17 = vpop.permute.xlu1 %1429 }
 0x306   :  { %vm1456_vm11 = vcmp.eq.s32.totalorder %v1430_v17, %v3726_v56  ;;  %644 = vperm.xlu1 %2762, %v2803_v10   ;;  %v4882_v17 = vld [vmem:[#allocation91_spill] sm:$0xff] }
 0x307   :  { %v2474_v3 = vsel %vm1456_vm11, 1.0, %v3035_v31  ;;  %vm545_vm7 = vcmp.eq.s32.totalorder %v4882_v17, %v3726_v56 }
 0x308   :  { %v1504_v24 = vadd.f32 %v2474_v3, %v1392_v34  ;;  %v2314_v34 = vsel %vm320_vm3, 1.0, %v3035_v31  ;;  %v4883_v3 = vld [vmem:[#allocation34_spill] sm:$0xff] }
 0x309   :  { %vm657_vm8 = vcmp.eq.s32.totalorder %v4883_v3, %v3726_v56  ;;  %v368_v32 = vadd.f32 %v2314_v34, %v2298_v63 }
 0x30a   :  { %v1616_v26 = vadd.f32 %v2490_v15, %v1504_v24  ;;  %2763 = vset.pattern.permute.xlu1 %v4795_v43  ;;  %v1100_v14 = vpop.permute.xlu1 %1099  ;;  %v2804_v43 = vld [vmem:[#allocation2 + $0x70] sm:$0xff] }
 0x30b   :  { %vm1122_vm12 = vcmp.eq.s32.totalorder %v1100_v14, %v3726_v56  ;;  %1665 = vperm.xlu1 %2763, %v4260_v51  }
 0x30c   :  { %v2428_v19 = vsel %vm1122_vm12, 1.0, %v3035_v31  ;;  %v4422_v21 = vadd.f32 %v2506_v23, %v1616_v26  ;;  %v2347_v23 = vsel %vm545_vm7, 1.0, %v3035_v31  ;;  %v1505_v26 = vadd.f32 %v2475_v40, %v1393_v11 }
 0x30d   :  { %v4424_v59 = vadd.f32 %v2428_v19, %v1058_v22  ;;  %v4884_v22 = vld [vmem:[#allocation66_spill] sm:$0xff]  ;;  %v480_v19 = vadd.f32 %v2330_v39, %v368_v32  ;;  %vm769_vm12 = vcmp.eq.s32.totalorder %v745_v5, %v3726_v56 }
 0x30e   :  { %v1103_v49 = vpop.permute.xlu1 %1102  ;;  %vm544_vm9 = vcmp.eq.s32.totalorder %v4884_v22, %v3726_v56 }
 0x30f   :  { %vm1123_vm13 = vcmp.eq.s32.totalorder %v1103_v49, %v3726_v56  ;;  %2765 = vset.pattern.permute.xlu1 %v4775_v44 }
 0x310   :  { %v2429_v33 = vsel %vm1123_vm13, 1.0, %v3035_v31  ;;  %753 = vperm.xlu1 %2765, %v2804_v43  }
 0x311   :  { %v4429_v27 = vadd.f32 %v2429_v33, %v1059_v50  ;;  %v4881_v50 = vld [vmem:[#allocation54_spill] sm:$0xff] }
 0x312   :  { %vm433_vm6 = vcmp.eq.s32.totalorder %v4881_v50, %v3726_v56 }
 0x313   :  { %v2555_v0 = vpop.f32.mrb[0].mxu0  ;;  %v1545_v7 = vpop.permute.xlu1 %1544  ;;  %v2331_v15 = vsel %vm433_vm6, 1.0, %v3035_v31  ;;  %vm1683_vm6 = vcmp.eq.s32.totalorder %v3907_v4, %v3726_v56 }
 0x314   :  { %v2556_v51 = vpop.f32.mrb[1].mxu0  ;;  %756 = vperm.xlu1 %2765, %v2803_v10   ;;  %vm1569_vm5 = vcmp.eq.s32.totalorder %v1545_v7, %v3726_v56  ;;  %v481_v49 = vadd.f32 %v2331_v15, %v369_v55  ;;  %v2509_v15 = vsel %vm1683_vm6, 1.0, %v3035_v31 }
 0x315   :  { %v2557_v45 = vadd.f32 %v2556_v51, %v2555_v0  ;;  %v2558_v12 = vpop.f32.mrb[2].mxu0  ;;  %v2491_v24 = vsel %vm1569_vm5, 1.0, %v3035_v31  ;;  %v2363_v51 = vsel %vm657_vm8, 1.0, %v3035_v31 }
 0x316   :  { %v2559_v47 = vpop.f32.mrb[3].mxu0  ;;  %v1617_v43 = vadd.f32 %v2491_v24, %v1505_v26  ;;  %v593_v0 = vadd.f32 %v2347_v23, %v481_v49 }
 0x317   :  { %v2560_v60 = vadd.f32 %v2559_v47, %v2558_v12  ;;  %v1920_v46 = vadd.f32 %v2557_v45, %v4431_v53  ;;  %v2346_v45 = vsel %vm544_vm9, 1.0, %v3035_v31 }
 0x318   :  { %v630_v42 = vpop.permute.xlu1 %629 }
 0x319   :  { %v1923_v44 = vadd.f32 %v2560_v60, %v4431_v53  ;;  %v1982_v20 = vmax.f32 %v1920_v46, 0.0  ;;  %vm656_vm11 = vcmp.eq.s32.totalorder %v630_v42, %v3726_v56  ;;  %v592_v60 = vadd.f32 %v2346_v45, %v480_v19 }
 0x31a   :  { %v2362_v12 = vsel %vm656_vm11, 1.0, %v3035_v31  ;;  %v2379_v46 = vsel %vm769_vm12, 1.0, %v3035_v31 }
 0x31b   :  { %v2561_v1 = vpop.f32.mrb[4].mxu0  ;;  %v1983_v30 = vmax.f32 %v1923_v44, 0.0 }
 0x31c   :  { %v2562_v38 = vpop.f32.mrb[5].mxu0 }
 0x31d   :  { %v2563_v8 = vadd.f32 %v2562_v38, %v2561_v1  ;;  %v2564_v13 = vpop.f32.mrb[6].mxu0  ;;  %v4441_v35 = vpop.permute.xlu1 %1211  ;;  %v1998_v41 = vpack.c.bf16 %v1983_v30, %v1982_v20  ;;  %v705_v1 = vadd.f32 %v2363_v51, %v593_v0  ;;  %v704_v20 = vadd.f32 %v2362_v12, %v592_v60  ;;  %v4888_v0 = vld [vmem:[#allocation45_spill] sm:$0xff]  ;;  %v4890_v12 = vld [vmem:[#allocation30_spill] sm:$0xff] }
 0x31e   :  { %v2565_v61 = vpop.f32.mrb[7].mxu0  ;;  %vm1234_vm7 = vcmp.eq.s32.totalorder %v4441_v35, %v3726_v56  ;;  %vm210_vm11 = vcmp.eq.s32.totalorder %v4888_v0, %v3726_v56  ;;  %v4889_v35 = vld [vmem:[#allocation61_spill] sm:$0xff] }
 0x31f   :  { %v1928_v9 = vadd.f32 %v2563_v8, %v4431_v53  ;;  %v2566_v16 = vadd.f32 %v2565_v61, %v2564_v13  ;;  %2635 = vmatprep.mubr.bf16.mxu1 %v1998_v41  ;;  %v817_v62 = vadd.f32 %v2379_v46, %v705_v1  ;;  %v4885_v41 = vld [vmem:[#allocation51_spill] sm:$0xff]  ;;  %vm323_vm12 = vcmp.eq.s32.totalorder %v4889_v35, %v3726_v56 }
 0x320   :  { %vm900_vm14 = vcmp.eq.s32.totalorder %v4885_v41, %v3726_v56  ;;  %v2300_v46 = vsel %vm210_vm11, 1.0, %v3035_v31 }
 0x321   :  { %v1931_v25 = vadd.f32 %v2566_v16, %v4431_v53  ;;  %v1215_v36 = vpop.permute.xlu1 %1214  ;;  %v1984_v10 = vmax.f32 %v1928_v9, 0.0  ;;  %v2398_v48 = vsel %vm900_vm14, 1.0, %v3035_v31 }
 0x322   :  { %vm1235_vm1 = vcmp.eq.s32.totalorder %v1215_v36, %v3726_v56 }
 0x323   :  { %v1985_v52 = vmax.f32 %v1931_v25, 0.0  ;;  %v2445_v16 = vsel %vm1235_vm1, 1.0, %v3035_v31 }
 0x324   :  { %v1283_v11 = vadd.f32 %v2445_v16, %v4429_v27  ;;  %v2493_v27 = vsel %vm1571_vm4, 1.0, %v3035_v31 }
 0x325   :  { %v1999_v14 = vpack.c.bf16 %v1985_v52, %v1984_v10 }
 0x326   :  { %v1657_v33 = vpop.permute.xlu1 %1656 }
 0x327   :  { %vm1681_vm10 = vcmp.eq.s32.totalorder %v1657_v33, %v3726_v56  ;;  %2636 = vmatmul.mubr.bf16.vlgmr.msra.gmra.mrb[0].mxu1 %v1999_v14  ;;  %v2444_v33 = vsel %vm1234_vm7, 1.0, %v3035_v31 }
 0x328   :  { %v2507_v7 = vsel %vm1681_vm10, 1.0, %v3035_v31 }
 0x329   :  { %v1729_v47 = vadd.f32 %v2507_v7, %v1617_v43  ;;  %v1282_v7 = vadd.f32 %v2444_v33, %v4424_v59  ;;  %v4892_v59 = vld [vmem:[#allocation77_spill] sm:$0xff] }
 0x32b   :  { %v742_v42 = vpop.permute.xlu1 %741  ;;  %v1745_v44 = vpack.c.bf16 %v1729_v47, %v4422_v21  ;;  %v4886_v21 = vld [vmem:[#allocation81_spill] sm:$0xff]  ;;  %v4891_v47 = vld [vmem:[#allocation42_spill] sm:$0xff] }
 0x32c   :  { %vm768_vm13 = vcmp.eq.s32.totalorder %v742_v42, %v3726_v56  ;;  %vm1124_vm15 = vcmp.eq.s32.totalorder %v4886_v21, %v3726_v56  ;;  %vm322_vm14 = vcmp.eq.s32.totalorder %v4891_v47, %v3726_v56 }
 0x32d   :  { %v2378_v30 = vsel %vm768_vm13, 1.0, %v3035_v31  ;;  %1957 = vmatprep.mubr.bf16.mxu0 %v1745_v44  ;;  %v2430_v9 = vsel %vm1124_vm15, 1.0, %v3035_v31  ;;  %vm211_vm13 = vcmp.eq.s32.totalorder %v4890_v12, %v3726_v56  ;;  %vm434_vm15 = vcmp.eq.s32.totalorder %v4892_v59, %v3726_v56  ;;  %v4899_v12 = vld [vmem:[#allocation44_spill] sm:$0xff] }
 0x32e   :  { %v816_v38 = vadd.f32 %v2378_v30, %v704_v20  ;;  %v2317_v44 = vsel %vm323_vm12, 1.0, %v3035_v31  ;;  %v2301_v20 = vsel %vm211_vm13, 1.0, %v3035_v31  ;;  %v2316_v30 = vsel %vm322_vm14, 1.0, %v3035_v31 }
 0x32f   :  { %v371_v41 = vadd.f32 %v2317_v44, %v2301_v20 }
 0x330   :  { %v1324_v54 = vpop.permute.xlu1 %1323  ;;  %v1744_v29 = vpack.c.bf16 %v817_v62, %v816_v38  ;;  %v370_v38 = vadd.f32 %v2316_v30, %v2300_v46  ;;  %v4901_v30 = vld [vmem:[#allocation78_spill] sm:$0xff] }
 0x331   :  { %vm1346_vm8 = vcmp.eq.s32.totalorder %v1324_v54, %v3726_v56  ;;  %v2332_v54 = vsel %vm434_vm15, 1.0, %v3035_v31 }
 0x332   :  { %1958 = vmatmul.mubr.bf16.gmra.mrb[20].mxu0 %v1744_v29  ;;  %v2460_v43 = vsel %vm1346_vm8, 1.0, %v3035_v31 }
 0x333   :  { %v1394_v60 = vadd.f32 %v2460_v43, %v1282_v7  ;;  %v4897_v7 = vld [vmem:[#allocation46_spill] sm:$0xff] }
 0x334   :  { %v1327_v8 = vpop.permute.xlu1 %1326 }
 0x335   :  { %vm1347_vm3 = vcmp.eq.s32.totalorder %v1327_v8, %v3726_v56  ;;  %v4893_v8 = vld [vmem:[#allocation56_spill] sm:$0xff] }
 0x336   :  { %v2461_v28 = vsel %vm1347_vm3, 1.0, %v3035_v31  ;;  %vm435_vm1 = vcmp.eq.s32.totalorder %v4893_v8, %v3726_v56 }
 0x337   :  { %v1395_v50 = vadd.f32 %v2461_v28, %v1283_v11 }
 0x339   :  { %v4488_v13 = vpop.permute.xlu1 %884 }
 0x33a   :  { %vm901_vm8 = vcmp.eq.s32.totalorder %v4488_v13, %v3726_v56 }
 0x33e   :  { %v994_v18 = vpop.permute.xlu1 %993 }
 0x33f   :  { %vm1012_vm0 = vcmp.eq.s32.totalorder %v994_v18, %v3726_v56  ;;  %v4894_v18 = vld [vmem:[#allocation92_spill] sm:$0xff] }
 0x340   :  { %v2414_v61 = vsel %vm1012_vm0, 1.0, %v3035_v31  ;;  %vm547_vm2 = vcmp.eq.s32.totalorder %v4894_v18, %v3726_v56 }
 0x341   :  { %v1060_v6 = vadd.f32 %v2414_v61, %v2398_v48  ;;  %v4895_v61 = vld [vmem:[#allocation67_spill] sm:$0xff]  ;;  %v2349_v16 = vsel %vm547_vm2, 1.0, %v3035_v31 }
 0x342   :  { %vm546_vm3 = vcmp.eq.s32.totalorder %v4895_v61, %v3726_v56 }
 0x343   :  { %v1172_v58 = vadd.f32 %v2430_v9, %v1060_v6  ;;  %v1436_v57 = vpop.permute.xlu1 %1435  ;;  %v482_v6 = vadd.f32 %v2332_v54, %v370_v38  ;;  %v2333_v9 = vsel %vm435_vm1, 1.0, %v3035_v31  ;;  %v2348_v28 = vsel %vm546_vm3, 1.0, %v3035_v31 }
 0x344   :  { %vm1458_vm9 = vcmp.eq.s32.totalorder %v1436_v57, %v3726_v56  ;;  %vm212_vm1 = vcmp.eq.s32.totalorder %v4897_v7, %v3726_v56  ;;  %vm324_vm3 = vcmp.eq.s32.totalorder %v4899_v12, %v3726_v56 }
 0x345   :  { %v4505_v63 = vadd.f32 %v2446_v2, %v1172_v58  ;;  %v2476_v45 = vsel %vm1458_vm9, 1.0, %v3035_v31  ;;  %v483_v2 = vadd.f32 %v2333_v9, %v371_v41  ;;  %v594_v37 = vadd.f32 %v2348_v28, %v482_v6  ;;  %v4903_v28 = vld [vmem:[#allocation69_spill] sm:$0xff] }
 0x346   :  { %v1506_v1 = vadd.f32 %v2476_v45, %v1394_v60  ;;  %v4898_v45 = vld [vmem:[#allocation32_spill] sm:$0xff]  ;;  %v4900_v60 = vld [vmem:[#allocation63_spill] sm:$0xff]  ;;  %v2302_v44 = vsel %vm212_vm1, 1.0, %v3035_v31  ;;  %v2318_v38 = vsel %vm324_vm3, 1.0, %v3035_v31 }
 0x347   :  { %v2567_v25 = vpop.f32.mrb[8].mxu0  ;;  %v1439_v36 = vpop.permute.xlu1 %1438  ;;  %vm213_vm2 = vcmp.eq.s32.totalorder %v4898_v45, %v3726_v56  ;;  %v372_v18 = vadd.f32 %v2318_v38, %v2302_v44  ;;  %v4646_v38 = vld [vmem:[#allocation13] ss:$0 sm:$0xff] }
 0x348   :  { %vm1459_vm5 = vcmp.eq.s32.totalorder %v1439_v36, %v3726_v56  ;;  %v2568_v55 = vpop.f32.mrb[9].mxu0  ;;  %v595_v36 = vadd.f32 %v2349_v16, %v483_v2 }
 0x349   :  { %v2477_v17 = vsel %vm1459_vm5, 1.0, %v3035_v31  ;;  %v2569_v40 = vadd.f32 %v2568_v55, %v2567_v25  ;;  %v2570_v34 = vpop.f32.mrb[10].mxu0 }
 0x34a   :  { %v1507_v39 = vadd.f32 %v2477_v17, %v1395_v50  ;;  %v2571_v10 = vpop.f32.mrb[11].mxu0 }
 0x34b   :  { %v1936_v52 = vadd.f32 %v2569_v40, %v4431_v53  ;;  %v2572_v3 = vadd.f32 %v2571_v10, %v2570_v34 }
 0x34c   :  { %v1619_v32 = vadd.f32 %v2493_v27, %v1507_v39  ;;  %v4516_v24 = vpop.permute.xlu1 %1108 }
 0x34d   :  { %v1939_v23 = vadd.f32 %v2572_v3, %v4431_v53  ;;  %v1986_v26 = vmax.f32 %v1936_v52, 0.0  ;;  %v1445_v3 = vpop.permute.xlu0 %1444  ;;  %vm1125_vm11 = vcmp.eq.s32.totalorder %v4516_v24, %v3726_v56 }
 0x34e   :  { %v1731_v5 = vadd.f32 %v2509_v15, %v1619_v32  ;;  %v4896_v15 = vld [vmem:[#allocation72_spill] sm:$0xff]  ;;  %vm1461_vm14 = vcmp.eq.s32.totalorder %v1445_v3, %v3726_v56 }
 0x34f   :  { %v1987_v14 = vmax.f32 %v1939_v23, 0.0  ;;  %vm1013_vm9 = vcmp.eq.s32.totalorder %v4896_v15, %v3726_v56  ;;  %v2479_v46 = vsel %vm1461_vm14, 1.0, %v3035_v31 }
 0x351   :  { %v1548_v22 = vpop.permute.xlu1 %1547  ;;  %v2000_v19 = vpack.c.bf16 %v1987_v14, %v1986_v26  ;;  %v1330_v23 = vpop.permute.xlu0 %1329  ;;  %v2415_v26 = vsel %vm1013_vm9, 1.0, %v3035_v31  ;;  %v2431_v14 = vsel %vm1125_vm11, 1.0, %v3035_v31  ;;  %vm548_vm11 = vcmp.eq.s32.totalorder %v4903_v28, %v3726_v56 }
 0x352   :  { %vm1570_vm10 = vcmp.eq.s32.totalorder %v1548_v22, %v3726_v56  ;;  %vm1348_vm13 = vcmp.eq.s32.totalorder %v1330_v23, %v3726_v56  ;;  %v2350_v3 = vsel %vm548_vm11, 1.0, %v3035_v31 }
 0x353   :  { %2639 = vmatprep.mubr.bf16.mxu1 %v2000_v19  ;;  %v2492_v42 = vsel %vm1570_vm10, 1.0, %v3035_v31 }
 0x354   :  { %v1618_v29 = vadd.f32 %v2492_v42, %v1506_v1 }
 0x356   :  { %v636_v4 = vpop.permute.xlu1 %635 }
 0x357   :  { %vm658_vm4 = vcmp.eq.s32.totalorder %v636_v4, %v3726_v56 }
 0x358   :  { %v2364_v11 = vsel %vm658_vm4, 1.0, %v3035_v31 }
 0x359   :  { %v706_v17 = vadd.f32 %v2364_v11, %v594_v37  ;;  %v4904_v11 = vld [vmem:[#allocation94_spill] sm:$0xff] }
 0x35a   :  { %v639_v49 = vpop.permute.xlu1 %638 }
 0x35b   :  { %vm659_vm5 = vcmp.eq.s32.totalorder %v639_v49, %v3726_v56  ;;  %v4579_v49 = vpop.permute.xlu0 %641 }
 0x35c   :  { %v2365_v25 = vsel %vm659_vm5, 1.0, %v3035_v31  ;;  %vm325_vm5 = vcmp.eq.s32.totalorder %v4900_v60, %v3726_v56 }
 0x35d   :  { %v707_v40 = vadd.f32 %v2365_v25, %v595_v36  ;;  %v2319_v54 = vsel %vm325_vm5, 1.0, %v3035_v31 }
 0x35f   :  { %v4530_v51 = vpop.permute.xlu1 %1220  ;;  %v1669_v35 = vpop.permute.xlu0 %1668 }
 0x360   :  { %vm1237_vm10 = vcmp.eq.s32.totalorder %v4530_v51, %v3726_v56  ;;  %v2462_v51 = vsel %vm1348_vm13, 1.0, %v3035_v31 }
 0x361   :  { %v2447_v13 = vsel %vm1237_vm10, 1.0, %v3035_v31  ;;  %v1396_v1 = vadd.f32 %v2462_v51, %v4505_v63  ;;  %v2303_v63 = vsel %vm213_vm2, 1.0, %v3035_v31  ;;  %vm549_vm10 = vcmp.eq.s32.totalorder %v4904_v11, %v3726_v56 }
 0x362   :  { %v373_v2 = vadd.f32 %v2319_v54, %v2303_v63 }
 0x364   :  { %v1660_v62 = vpop.permute.xlu1 %1659 }
 0x365   :  { %vm1682_vm0 = vcmp.eq.s32.totalorder %v1660_v62, %v3726_v56 }
 0x366   :  { %v2508_v21 = vsel %vm1682_vm0, 1.0, %v3035_v31 }
 0x367   :  { %v1730_v48 = vadd.f32 %v2508_v21, %v1618_v29  ;;  %v4902_v21 = vld [vmem:[#allocation58_spill] sm:$0xff] }
 0x369   :  { %v748_v58 = vpop.permute.xlu1 %747  ;;  %v1747_v57 = vpack.c.bf16 %v1731_v5, %v1730_v48  ;;  %v2399_v5 = vsel %vm901_vm8, 1.0, %v3035_v31  ;;  %vm437_vm8 = vcmp.eq.s32.totalorder %v4902_v21, %v3726_v56 }
 0x36a   :  { %vm770_vm6 = vcmp.eq.s32.totalorder %v748_v58, %v3726_v56  ;;  %v1061_v19 = vadd.f32 %v2415_v26, %v2399_v5 }
 0x36b   :  { %1965 = vmatprep.mubr.bf16.mxu0 %v1747_v57  ;;  %v2380_v50 = vsel %vm770_vm6, 1.0, %v3035_v31  ;;  %vm1685_vm6 = vcmp.eq.s32.totalorder %v1669_v35, %v3726_v56 }
 0x36c   :  { %v818_v39 = vadd.f32 %v2380_v50, %v706_v17  ;;  %v1173_v4 = vadd.f32 %v2431_v14, %v1061_v19  ;;  %v2511_v48 = vsel %vm1685_vm6, 1.0, %v3035_v31 }
 0x36d   :  { %v751_v55 = vpop.permute.xlu1 %750 }
 0x36e   :  { %vm771_vm7 = vcmp.eq.s32.totalorder %v751_v55, %v3726_v56  ;;  %v1285_v43 = vadd.f32 %v2447_v13, %v1173_v4 }
 0x36f   :  { %v2381_v34 = vsel %vm771_vm7, 1.0, %v3035_v31  ;;  %vm436_vm7 = vcmp.eq.s32.totalorder %v4901_v30, %v3726_v56 }
 0x370   :  { %v819_v10 = vadd.f32 %v2381_v34, %v707_v40  ;;  %v2334_v9 = vsel %vm436_vm7, 1.0, %v3035_v31  ;;  %v2335_v34 = vsel %vm437_vm8, 1.0, %v3035_v31 }
 0x371   :  { %v484_v40 = vadd.f32 %v2334_v9, %v372_v18 }
 0x372   :  { %v1333_v27 = vpop.permute.xlu1 %1332  ;;  %v1746_v52 = vpack.c.bf16 %v819_v10, %v818_v39  ;;  %v2351_v39 = vsel %vm549_vm10, 1.0, %v3035_v31 }
 0x373   :  { %vm1349_vm12 = vcmp.eq.s32.totalorder %v1333_v27, %v3726_v56 }
 0x374   :  { %1966 = vmatmul.mubr.bf16.gmra.mrb[24].mxu0 %v1746_v52  ;;  %v2463_v24 = vsel %vm1349_vm12, 1.0, %v3035_v31  ;;  %vm660_vm12 = vcmp.eq.s32.totalorder %v4579_v49, %v3726_v56 }
 0x375   :  { %v1397_v0 = vadd.f32 %v2463_v24, %v1285_v43  ;;  %v2366_v15 = vsel %vm660_vm12, 1.0, %v3035_v31 }
 0x377   :  { %v1442_v32 = vpop.permute.xlu1 %1441  ;;  %v1509_v20 = vadd.f32 %v2479_v46, %v1397_v0 }
 0x378   :  { %vm1460_vm15 = vcmp.eq.s32.totalorder %v1442_v32, %v3726_v56  ;;  %v485_v32 = vadd.f32 %v2335_v34, %v373_v2 }
 0x379   :  { %v2478_v59 = vsel %vm1460_vm15, 1.0, %v3035_v31 }
 0x37a   :  { %v1508_v29 = vadd.f32 %v2478_v59, %v1396_v1  ;;  %v597_v14 = vadd.f32 %v2351_v39, %v485_v32 }
 0x37c   :  { %v1554_v22 = vpop.permute.xlu1 %1553 }
 0x37d   :  { %vm1572_vm4 = vcmp.eq.s32.totalorder %v1554_v22, %v3726_v56  ;;  %v596_v22 = vadd.f32 %v2350_v3, %v484_v40 }
 0x37e   :  { %v2494_v62 = vsel %vm1572_vm4, 1.0, %v3035_v31 }
 0x37f   :  { %v1620_v16 = vadd.f32 %v2494_v62, %v1508_v29  ;;  %v708_v49 = vadd.f32 %v2366_v15, %v596_v22 }
 0x380   :  { %v1557_v33 = vpop.permute.xlu1 %1556 }
 0x381   :  { %vm1573_vm0 = vcmp.eq.s32.totalorder %v1557_v33, %v3726_v56 }
 0x382   :  { %v2495_v42 = vsel %vm1573_vm0, 1.0, %v3035_v31 }
 0x383   :  { %v1621_v8 = vadd.f32 %v2495_v42, %v1509_v20 }
 0x385   :  { %v645_v47 = vpop.permute.xlu1 %644  ;;  %v1733_v37 = vadd.f32 %v2511_v48, %v1621_v8 }
 0x386   :  { %vm661_vm13 = vcmp.eq.s32.totalorder %v645_v47, %v3726_v56 }
 0x387   :  { %v2367_v23 = vsel %vm661_vm13, 1.0, %v3035_v31 }
 0x388   :  { %v709_v24 = vadd.f32 %v2367_v23, %v597_v14 }
 0x389   :  { %v2573_v41 = vpop.f32.mrb[12].mxu0 }
 0x38a   :  { %v2574_v61 = vpop.f32.mrb[13].mxu0  ;;  %v1666_v6 = vpop.permute.xlu1 %1665 }
 0x38b   :  { %v2575_v58 = vadd.f32 %v2574_v61, %v2573_v41  ;;  %vm1684_vm9 = vcmp.eq.s32.totalorder %v1666_v6, %v3726_v56  ;;  %v2576_v57 = vpop.f32.mrb[14].mxu0 }
 0x38c   :  { %v2510_v25 = vsel %vm1684_vm9, 1.0, %v3035_v31  ;;  %v2577_v36 = vpop.f32.mrb[15].mxu0 }
 0x38d   :  { %v1944_v50 = vadd.f32 %v2575_v58, %v4431_v53  ;;  %v1732_v55 = vadd.f32 %v2510_v25, %v1620_v16  ;;  %v2578_v17 = vadd.f32 %v2577_v36, %v2576_v57 }
 0x38f   :  { %v1947_v10 = vadd.f32 %v2578_v17, %v4431_v53  ;;  %v754_v27 = vpop.permute.xlu1 %753  ;;  %v1749_v52 = vpack.c.bf16 %v1733_v37, %v1732_v55  ;;  %v1988_v5 = vmax.f32 %v1944_v50, 0.0 }
 0x390   :  { %vm772_vm14 = vcmp.eq.s32.totalorder %v754_v27, %v3726_v56 }
 0x391   :  { %v1989_v26 = vmax.f32 %v1947_v10, 0.0  ;;  %1973 = vmatprep.mubr.bf16.mxu0 %v1749_v52  ;;  %v2382_v19 = vsel %vm772_vm14, 1.0, %v3035_v31 }
 0x392   :  { %v820_v43 = vadd.f32 %v2382_v19, %v708_v49 }
 0x393   :  { %v757_v13 = vpop.permute.xlu1 %756  ;;  %v2001_v4 = vpack.c.bf16 %v1989_v26, %v1988_v5 }
 0x394   :  { %vm773_vm15 = vcmp.eq.s32.totalorder %v757_v13, %v3726_v56 }
 0x395   :  { %v2383_v33 = vsel %vm773_vm15, 1.0, %v3035_v31  ;;  %2640 = vmatmul.mubr.bf16.gmra.mrb[4].mxu1 %v2001_v4  ;;  %v4643_v31 = vld [vmem:[#allocation11] ss:$0 sm:$0xff] }
 0x396   :  { %v821_v0 = vadd.f32 %v2383_v33, %v709_v24 }
 0x398   :  { %v1748_v7 = vpack.c.bf16 %v821_v0, %v820_v43 }
 0x39a   :  { %1974 = vmatmul.mubr.bf16.gmra.mrb[28].mxu0 %v1748_v7 }
 0x3c7   :  { %v2579_v51 = vpop.f32.mrb[16].mxu0 }
 0x3c8   :  { %v2580_v35 = vpop.f32.mrb[17].mxu0 }
 0x3c9   :  { %v2581_v45 = vadd.f32 %v2580_v35, %v2579_v51  ;;  %v2582_v12 = vpop.f32.mrb[18].mxu0 }
 0x3ca   :  { %v2583_v47 = vpop.f32.mrb[19].mxu0 }
 0x3cb   :  { %v1952_v60 = vadd.f32 %v2581_v45, %v4431_v53  ;;  %v2584_v46 = vadd.f32 %v2583_v47, %v2582_v12 }
 0x3cd   :  { %v1955_v59 = vadd.f32 %v2584_v46, %v4431_v53  ;;  %v1990_v42 = vmax.f32 %v1952_v60, 0.0 }
 0x3cf   :  { %v1991_v44 = vmax.f32 %v1955_v59, 0.0 }
 0x3d1   :  { %v2002_v56 = vpack.c.bf16 %v1991_v44, %v1990_v42 }
 0x3d3   :  { %2643 = vmatprep.mubr.bf16.mxu1 %v2002_v56 }
 0x3fa   :  { %v2637_v1 = vpop.f32.mrb[0].mxu1 }
 0x3fb   :  { %v2111_v20 = vpop.f32.mrb[1].mxu1  ;;  %v2120_v41 = vadd.f32 %v2637_v1, %v4643_v31 }
 0x3fc   :  { %v2112_v30 = vadd.f32 %v4643_v31, %v2111_v20  ;;  %v2638_v62 = vpop.f32.mrb[2].mxu1 }
 0x3fd   :  { %v2114_v54 = vpop.f32.mrb[3].mxu1  ;;  %v2176_v21 = vmax.f32 %v2120_v41, 0.0  ;;  %v2123_v48 = vadd.f32 %v2638_v62, %v4643_v31 }
 0x3fe   :  { %v2174_v29 = vmax.f32 %v2112_v30, 0.0  ;;  %v2115_v8 = vadd.f32 %v4643_v31, %v2114_v54 }
 0x3ff   :  { %v2199_v57 = vmul.f32 %v4646_v38, %v2176_v21  ;;  %v2177_v2 = vmax.f32 %v2123_v48, 0.0 }
 0x400   :  { %v2197_v63 = vmul.f32 %v4646_v38, %v2174_v29  ;;  %v2175_v18 = vmax.f32 %v2115_v8, 0.0 }
 0x401   :  { %v2200_v37 = vmul.f32 %v4646_v38, %v2177_v2 }
 0x402   :  { %2214 = vxpose.xlu0.b32.start [1/16] %v2197_v63, 128  ;;  %v2198_v61 = vmul.f32 %v4646_v38, %v2175_v18 }
 0x405   :  { %v2585_v6 = vpop.f32.mrb[20].mxu0 }
 0x406   :  { %2215 = vxpose.xlu0.b32.cont [2/16] %v2198_v61, 128  ;;  %v2586_v9 = vpop.f32.mrb[21].mxu0 }
 0x407   :  { %v2587_v16 = vadd.f32 %v2586_v9, %v2585_v6  ;;  %v2588_v58 = vpop.f32.mrb[22].mxu0 }
 0x408   :  { %v2589_v28 = vpop.f32.mrb[23].mxu0 }
 0x409   :  { %v1960_v11 = vadd.f32 %v2587_v16, %v4431_v53  ;;  %v2590_v25 = vadd.f32 %v2589_v28, %v2588_v58 }
 0x40a   :  { %2216 = vxpose.xlu0.b32.cont [3/16] %v2199_v57, 128 }
 0x40b   :  { %v1963_v36 = vadd.f32 %v2590_v25, %v4431_v53  ;;  %v1992_v50 = vmax.f32 %v1960_v11, 0.0 }
 0x40d   :  { %v1993_v55 = vmax.f32 %v1963_v36, 0.0 }
 0x40e   :  { %2217 = vxpose.xlu0.b32.cont [4/16] %v2200_v37, 128 }
 0x40f   :  { %v2003_v17 = vpack.c.bf16 %v1993_v55, %v1992_v50 }
 0x411   :  { %2644 = vmatmul.mubr.bf16.gmra.mrb[8].mxu1 %v2003_v17 }
 0x447   :  { %v2591_v40 = vpop.f32.mrb[24].mxu0 }
 0x448   :  { %v2592_v34 = vpop.f32.mrb[25].mxu0 }
 0x449   :  { %v2593_v39 = vadd.f32 %v2592_v34, %v2591_v40  ;;  %v2594_v10 = vpop.f32.mrb[26].mxu0 }
 0x44a   :  { %v2595_v27 = vpop.f32.mrb[27].mxu0 }
 0x44b   :  { %v1968_v52 = vadd.f32 %v2593_v39, %v4431_v53  ;;  %v2596_v3 = vadd.f32 %v2595_v27, %v2594_v10 }
 0x44d   :  { %v1971_v32 = vadd.f32 %v2596_v3, %v4431_v53  ;;  %v1994_v15 = vmax.f32 %v1968_v52, 0.0 }
 0x44f   :  { %v1995_v23 = vmax.f32 %v1971_v32, 0.0 }
 0x451   :  { %v2004_v5 = vpack.c.bf16 %v1995_v23, %v1994_v15 }
 0x453   :  { %2647 = vmatprep.mubr.bf16.mxu1 %v2004_v5 }
 0x468   :  { %v2641_v26 = vpop.f32.mrb[4].mxu1 }
 0x469   :  { %v2127_v14 = vpop.f32.mrb[5].mxu1  ;;  %v2136_v33 = vadd.f32 %v2641_v26, %v4643_v31 }
 0x46a   :  { %v2128_v22 = vadd.f32 %v4643_v31, %v2127_v14  ;;  %v2642_v19 = vpop.f32.mrb[6].mxu1 }
 0x46b   :  { %v2130_v13 = vpop.f32.mrb[7].mxu1  ;;  %v2180_v60 = vmax.f32 %v2136_v33, 0.0  ;;  %v2139_v46 = vadd.f32 %v2642_v19, %v4643_v31 }
 0x46c   :  { %v2178_v4 = vmax.f32 %v2128_v22, 0.0  ;;  %v2131_v49 = vadd.f32 %v4643_v31, %v2130_v13 }
 0x46d   :  { %v2597_v24 = vpop.f32.mrb[28].mxu0  ;;  %v2203_v1 = vmul.f32 %v4646_v38, %v2180_v60  ;;  %v2181_v20 = vmax.f32 %v2139_v46, 0.0 }
 0x46e   :  { %v2201_v43 = vmul.f32 %v4646_v38, %v2178_v4  ;;  %v2179_v0 = vmax.f32 %v2131_v49, 0.0  ;;  %v2598_v7 = vpop.f32.mrb[29].mxu0 }
 0x46f   :  { %v2599_v51 = vadd.f32 %v2598_v7, %v2597_v24  ;;  %v2600_v35 = vpop.f32.mrb[30].mxu0  ;;  %v2204_v62 = vmul.f32 %v4646_v38, %v2181_v20 }
 0x470   :  { %2218 = vxpose.xlu0.b32.cont [5/16] %v2201_v43, 128  ;;  %v2601_v45 = vpop.f32.mrb[31].mxu0  ;;  %v2202_v59 = vmul.f32 %v4646_v38, %v2179_v0 }
 0x471   :  { %v1976_v12 = vadd.f32 %v2599_v51, %v4431_v53  ;;  %v2602_v47 = vadd.f32 %v2601_v45, %v2600_v35 }
 0x473   :  { %v1979_v42 = vadd.f32 %v2602_v47, %v4431_v53  ;;  %v1996_v44 = vmax.f32 %v1976_v12, 0.0 }
 0x474   :  { %2219 = vxpose.xlu0.b32.cont [6/16] %v2202_v59, 128 }
 0x475   :  { %v1997_v56 = vmax.f32 %v1979_v42, 0.0 }
 0x477   :  { %v2005_v30 = vpack.c.bf16 %v1997_v56, %v1996_v44 }
 0x478   :  { %2220 = vxpose.xlu0.b32.cont [7/16] %v2203_v1, 128 }
 0x479   :  { %2648 = vmatmul.mubr.bf16.gmra.mrb[12].mxu1 %v2005_v30 }
 0x47c   :  { %2221 = vxpose.xlu0.b32.cont [8/16] %v2204_v62, 128 }
 0x4e4   :  { %v2645_v54 = vpop.f32.mrb[8].mxu1 }
 0x4e5   :  { %v2143_v29 = vpop.f32.mrb[9].mxu1  ;;  %v2152_v21 = vadd.f32 %v2645_v54, %v4643_v31 }
 0x4e6   :  { %v2144_v8 = vadd.f32 %v4643_v31, %v2143_v29  ;;  %v2646_v41 = vpop.f32.mrb[10].mxu1 }
 0x4e7   :  { %v2146_v63 = vpop.f32.mrb[11].mxu1  ;;  %v2184_v6 = vmax.f32 %v2152_v21, 0.0  ;;  %v2155_v9 = vadd.f32 %v2646_v41, %v4643_v31 }
 0x4e8   :  { %v2182_v18 = vmax.f32 %v2144_v8, 0.0  ;;  %v2147_v53 = vadd.f32 %v4643_v31, %v2146_v63  ;;  %v2213_v63 = vld [vmem:[#allocation14] sm:$0x1] }
 0x4e9   :  { %v2207_v58 = vmul.f32 %v4646_v38, %v2184_v6  ;;  %v2185_v57 = vmax.f32 %v2155_v9, 0.0 }
 0x4ea   :  { %v2205_v48 = vmul.f32 %v4646_v38, %v2182_v18  ;;  %v2183_v61 = vmax.f32 %v2147_v53, 0.0 }
 0x4eb   :  { %v2208_v2 = vmul.f32 %v4646_v38, %v2185_v57 }
 0x4ec   :  { %2222 = vxpose.xlu0.b32.cont [9/16] %v2205_v48, 128  ;;  %v2206_v16 = vmul.f32 %v4646_v38, %v2183_v61 }
 0x4f0   :  { %2223 = vxpose.xlu0.b32.cont [10/16] %v2206_v16, 128 }
 0x4f4   :  { %2224 = vxpose.xlu0.b32.cont [11/16] %v2207_v58, 128 }
 0x4f8   :  { %2225 = vxpose.xlu0.b32.cont [12/16] %v2208_v2, 128 }
 0x54c   :  { %v2649_v28 = vpop.f32.mrb[12].mxu1 }
 0x54d   :  { %v2159_v11 = vpop.f32.mrb[13].mxu1  ;;  %v2168_v17 = vadd.f32 %v2649_v28, %v4643_v31 }
 0x54e   :  { %v2160_v25 = vadd.f32 %v4643_v31, %v2159_v11  ;;  %v2650_v36 = vpop.f32.mrb[14].mxu1 }
 0x54f   :  { %v2162_v37 = vpop.f32.mrb[15].mxu1  ;;  %v2188_v39 = vmax.f32 %v2168_v17, 0.0  ;;  %v2171_v10 = vadd.f32 %v2650_v36, %v4643_v31 }
 0x550   :  { %v2186_v50 = vmax.f32 %v2160_v25, 0.0  ;;  %v2163_v55 = vadd.f32 %v4643_v31, %v2162_v37 }
 0x551   :  { %v2211_v52 = vmul.f32 %v4646_v38, %v2188_v39  ;;  %v2189_v3 = vmax.f32 %v2171_v10, 0.0 }
 0x552   :  { %v2209_v40 = vmul.f32 %v4646_v38, %v2186_v50  ;;  %v2187_v34 = vmax.f32 %v2163_v55, 0.0 }
 0x553   :  { %v2212_v32 = vmul.f32 %v4646_v38, %v2189_v3 }
 0x554   :  { %2226 = vxpose.xlu0.b32.cont [13/16] %v2209_v40, 128  ;;  %v2210_v27 = vmul.f32 %v4646_v38, %v2187_v34 }
 0x558   :  { %2227 = vxpose.xlu0.b32.cont [14/16] %v2210_v27, 128 }
 0x55c   :  { %2228 = vxpose.xlu0.b32.cont [15/16] %v2211_v52, 128 }
 0x560   :  { %2229 = vxpose.xlu0.b32.end [16/16] %v2212_v32, 128 }
 0x5a4   :  { %v2230_v15 = vpop.trf.xlu0 }
 0x5a8   :  { %v2231_v23 = vpop.trf.xlu0 }
 0x5a9   :  { %v2246_v31 = vadd.f32 %v2231_v23, %v2230_v15 }
 0x5ac   :  { %v2232_v5 = vpop.trf.xlu0 }
 0x5ad   :  { %v2247_v49 = vadd.f32 %v2246_v31, %v2232_v5 }
 0x5b0   :  { %v2233_v26 = vpop.trf.xlu0 }
 0x5b1   :  { %v2248_v33 = vadd.f32 %v2247_v49, %v2233_v26 }
 0x5b4   :  { %v2234_v14 = vpop.trf.xlu0 }
 0x5b5   :  { %v2249_v43 = vadd.f32 %v2248_v33, %v2234_v14 }
 0x5b8   :  { %v2235_v22 = vpop.trf.xlu0 }
 0x5b9   :  { %v2250_v7 = vadd.f32 %v2249_v43, %v2235_v22 }
 0x5bc   :  { %v2236_v19 = vpop.trf.xlu0 }
 0x5bd   :  { %v2251_v51 = vadd.f32 %v2250_v7, %v2236_v19 }
 0x5c0   :  { %v2237_v13 = vpop.trf.xlu0 }
 0x5c1   :  { %v2252_v38 = vadd.f32 %v2251_v51, %v2237_v13 }
 0x5c4   :  { %v2238_v4 = vpop.trf.xlu0 }
 0x5c5   :  { %v2253_v45 = vadd.f32 %v2252_v38, %v2238_v4 }
 0x5c8   :  { %v2239_v24 = vpop.trf.xlu0 }
 0x5c9   :  { %v2254_v47 = vadd.f32 %v2253_v45, %v2239_v24 }
 0x5cc   :  { %v2240_v0 = vpop.trf.xlu0 }
 0x5cd   :  { %v2255_v60 = vadd.f32 %v2254_v47, %v2240_v0 }
 0x5d0   :  { %v2241_v35 = vpop.trf.xlu0 }
 0x5d1   :  { %v2256_v59 = vadd.f32 %v2255_v60, %v2241_v35 }
 0x5d4   :  { %v2242_v12 = vpop.trf.xlu0 }
 0x5d5   :  { %v2257_v42 = vadd.f32 %v2256_v59, %v2242_v12 }
 0x5d8   :  { %v2243_v46 = vpop.trf.xlu0 }
 0x5d9   :  { %v2258_v56 = vadd.f32 %v2257_v42, %v2243_v46 }
 0x5dc   :  { %v2244_v44 = vpop.trf.xlu0 }
 0x5dd   :  { %v2259_v1 = vadd.f32 %v2258_v56, %v2244_v44 }
 0x5e0   :  { %v2245_v20 = vpop.trf.xlu0 }
 0x5e1   :  { %v2260_v30 = vadd.f32 %v2259_v1, %v2245_v20 }
 0x5e3   :  { %v2261_v62 = vrot.slane %v2260_v30, 4 }
 0x5e5   :  { %v2262_v54 = vadd.f32 %v2261_v62, %v2260_v30 }
 0x5e7   :  { %v2263_v29 = vrot.slane %v2262_v54, 2 }
 0x5e9   :  { %v2264_v8 = vadd.f32 %v2263_v29, %v2262_v54 }
 0x5eb   :  { %v2265_v41 = vrot.slane %v2264_v8, 1 }
 0x5ed   :  { %v2266_v18 = vadd.f32 %v2265_v41, %v2264_v8 }
 0x5ef   :  { %v2267_v53 = vadd.f32 %v2266_v18, %v2213_v63 }
 0x5f1   :  { %2268 = vst [vmem:[#allocation16] sm:$0x1] %v2267_v53 }
 0x5f2   :  { %2992 = shalt.err (!%p2989_p12)
}
 0x5f3   :  { %s2993_s14 = scalar_lea.hbm %s4705_s8, 16 }
 0x5f4   :  { %p2994_p13 = scmp.ne.s32.totalorder %s4705_s8, %s2993_s14  ;;  %p2997_p0 = scmp.lt.u32.totalorder %s2993_s14, %s4705_s8 }
 0x5f6   :  { %p2999_p1 = pnand %p2997_p0, %p2994_p13 }
 0x5f8   :  { %3002 = shalt.err (!%p2999_p1)
}
 0x5f9   :  { %2278 = dma.vmem_to_hbm [thread:$0]  %s2276_s10, 16, %s4705_s8, [#allocation4]  }
 0x5fa   :  { %3013 = dma.done.wait [#allocation4], 16  }
 0x5fb   :  { %3014 = vsyncadd [#allocation4], 4294967280 }
 0x5fc   :  { %2282 = vsyncpa [#allocation3], 1 }
 0x5fd   :  { %2283 = vsyncpa [#allocation6], 1 }
 0x5fe   :  { %2284 = vsyncpa [#allocation9], 1 }
 0x5ff   :  { %2285 = vsyncpa [#allocation12], 1 }
 0x600   :  { %2286 = vsyncpa [#allocation15], 1 }
 0x601   :  { %2287 = vsyncpa [#allocation4], 1 }

</bundles_post_ra>
